<compile_context>
chip_gen: v6e
topology: v6e:2x2x1
jax: 0.10.0
libtpu: 0.0.40
codegen_flags: <defaults>
</compile_context>

<pallas_src>
import math
import numpy as np
import jax
import jax.numpy as jnp
from jax.experimental import pallas as pl
from jax.experimental.pallas import tpu as pltpu

HIDDEN = 32          # LSTM hidden size (== Attention1D in_channel)
NUM_LAYERS = 3


def _sigmoid(x):
    # shared by kernel and reference so the transcendental path matches
    return 1.0 / (1.0 + jnp.exp(-x))


# ----------------------------------------------------------------------------
# Fused Pallas kernel (wavefront over the 3 LSTM layers)
# ----------------------------------------------------------------------------
def make_kernel(B_pad, T, D):
    H = HIDDEN
    G = 4 * H          # per-layer gate width (128)
    GW = NUM_LAYERS * G  # fused gate width (384)

    def kernel(x_ref, wbig_ref, wrec_ref, btile_ref, wa_ref, ba_ref,
               out_ref, xp_ref, hseq_ref):
        # x_ref:    (B_pad, T*D)    batch-major raw input, row = batch
        # wbig_ref: (T*D, T*GW)     block-diag layer-0 input projection (+zero cols)
        # wrec_ref: (3H, GW)        fused recurrent / inter-layer block weights
        # btile_ref:(1, T*GW)       [b0|b1|b2] tiled per timestep block
        # xp_ref:   (B_pad, T*GW)   scratch: per-t gate pre-activation blocks
        # hseq_ref: (T*B_pad, H)    scratch: top-layer hidden sequence (time-major)

        # ---- one batched input projection for layer 0, all timesteps -------
        # column block t holds [ x_t @ Wih0 + b0 | b1 | b2 ]  (lane-aligned, 384 wide)
        xp_ref[...] = (jnp.dot(x_ref[...], wbig_ref[...],
                               preferred_element_type=jnp.float32)
                       + btile_ref[...])

        # ---- wavefront recurrence: T+2 dependent steps instead of 3*T ------
        zeros_h = jnp.zeros((B_pad, H), jnp.float32)
        h0, c0 = zeros_h, zeros_h
        h1, c1 = zeros_h, zeros_h
        h2, c2 = zeros_h, zeros_h
        h_cat = jnp.zeros((B_pad, 3 * H), jnp.float32)

        # Static unroll (T == 8 here); switch to lax.fori_loop(unroll=k) for large T.
        for s in range(T + 2):
            base = min(s, T - 1) * GW        # for s >= T only the b1|b2 columns matter
            g = (jnp.dot(h_cat, wrec_ref[...],
                         preferred_element_type=jnp.float32)
                 + xp_ref[:, base:base + GW])                      # (B_pad, GW)

            # full-width activations: 2 transcendental passes over the whole gate slab
            sig = _sigmoid(g)
            tg = jnp.tanh(g)

            def cell(layer, c_prev):
                o = layer * G
                i_g = sig[:, o + 0 * H: o + 1 * H]   # PyTorch gate order [i|f|g|o]
                f_g = sig[:, o + 1 * H: o + 2 * H]
                g_g = tg[:,  o + 2 * H: o + 3 * H]
                o_g = sig[:, o + 3 * H: o + 4 * H]
                c_new = f_g * c_prev + i_g * g_g
                return c_new, o_g * jnp.tanh(c_new)

            if s <= T - 1:                 # layer 0 computes t = s
                c0, h0 = cell(0, c0)
            if 1 <= s <= T:                # layer 1 computes t = s - 1
                c1, h1 = cell(1, c1)
            if 2 <= s <= T + 1:            # layer 2 computes t = s - 2
                c2, h2 = cell(2, c2)
                t_out = s - 2
                hseq_ref[t_out * B_pad:(t_out + 1) * B_pad, :] = h2

            h_cat = jnp.concatenate([h0, h1, h2], axis=1)

        # ---- Attention1D over the top-layer sequence -----------------------
        hseq = hseq_ref[...]                                        # (T*B_pad, H)
        m = jnp.tanh(hseq)
        lg = jnp.sum(m * wa_ref[...], axis=-1, keepdims=True) + ba_ref[0]
        mx = lg[0:B_pad, :]
        for t in range(1, T):
            mx = jnp.maximum(mx, lg[t * B_pad:(t + 1) * B_pad, :])
        ssum = jnp.zeros((B_pad, 1), jnp.float32)
        r = jnp.zeros((B_pad, H), jnp.float32)
        for t in range(T):
            e = jnp.exp(lg[t * B_pad:(t + 1) * B_pad, :] - mx)      # (B_pad, 1)
            ssum = ssum + e
            r = r + e * hseq[t * B_pad:(t + 1) * B_pad, :]
        r = r * pl.reciprocal(ssum, approx=True)    # == sum_t softmax(alpha)_t * h_t

        # ---- max over time of the raw input (torch.max(x, 1)[0]) -----------
        xin = x_ref[...]                                            # (B_pad, T*D)
        x2 = xin[:, 0:D]
        for t in range(1, T):
            x2 = jnp.maximum(x2, xin[:, t * D:(t + 1) * D])

        # ---- single lane-dense concat store ---------------------------------
        out_ref[...] = jnp.concatenate([r, x2], axis=1).astype(out_ref.dtype)

    return kernel


def attentional_lstm_pool_pallas(x, prep):
    """x: (B, T, d_size), batch_first like the PyTorch module. prep: prepared params."""
    B, T, D = x.shape
    H = HIDDEN
    B_pad = ((B + 7) // 8) * 8                 # pad batch to a full f32 sublane group
    x_pad = jnp.pad(x.astype(jnp.float32), ((0, B_pad - B), (0, 0), (0, 0)))
    x_in = x_pad.reshape(B_pad, T * D)         # batch-major; free (metadata) reshape

    vmem = pl.BlockSpec(memory_space=pltpu.MemorySpace.VMEM)
    smem = pl.BlockSpec(memory_space=pltpu.MemorySpace.SMEM)

    out = pl.pallas_call(
        make_kernel(B_pad, T, D),
        out_shape=jax.ShapeDtypeStruct((B_pad, H + D), jnp.float32),
        in_specs=[vmem, vmem, vmem, vmem, vmem, smem],
        out_specs=vmem,
        scratch_shapes=[
            pltpu.VMEM((B_pad, T * NUM_LAYERS * 4 * H), jnp.float32),  # xp
            pltpu.VMEM((T * B_pad, H), jnp.float32),                   # top-layer seq
        ],
        compiler_params=pltpu.CompilerParams(vmem_limit_bytes=32 * 1024 * 1024),
    )(x_in, prep["wbig"], prep["wrec"], prep["btile"], prep["wa"], prep["ba"])
    return out[:B]


# ----------------------------------------------------------------------------
# Parameters.  init_params keeps the "PyTorch-equivalent" layout
# (wih: (C_in,4H) = weight_ih^T, whh: (H,4H) = weight_hh^T, b = b_ih+b_hh),
# prepare_params builds the fused kernel-layout tensors ONCE (no per-call prep).
# ----------------------------------------------------------------------------
def init_params(key, d_size):
    ks = jax.random.split(key, NUM_LAYERS + 2)
    k = 1.0 / math.sqrt(HIDDEN)
    lstm = []
    d_in = d_size
    for l in range(NUM_LAYERS):
        k1, k2, k3 = jax.random.split(ks[l], 3)
        lstm.append(dict(
            wih=jax.random.uniform(k1, (d_in, 4 * HIDDEN), jnp.float32, -k, k),
            whh=jax.random.uniform(k2, (HIDDEN, 4 * HIDDEN), jnp.float32, -k, k),
            b=jax.random.uniform(k3, (1, 4 * HIDDEN), jnp.float32, -2 * k, 2 * k),
        ))
        d_in = HIDDEN
    wa = jax.random.uniform(ks[NUM_LAYERS], (1, HIDDEN), jnp.float32, -k, k)
    ba = jax.random.uniform(ks[NUM_LAYERS + 1], (1,), jnp.float32, -k, k)
    return dict(lstm=lstm, wa=wa, ba=ba)


def prepare_params(params, T):
    H = HIDDEN
    G = 4 * H
    GW = NUM_LAYERS * G
    l0, l1, l2 = params["lstm"]
    D = l0["wih"].shape[0]

    # fused per-super-step recurrent / inter-layer block weights (3H, 3*4H):
    #   rows  0:32  (h0): [ Whh0 | Wih1 |  0   ]
    #   rows 32:64  (h1): [  0   | Whh1 | Wih2 ]
    #   rows 64:96  (h2): [  0   |  0   | Whh2 ]
    z = jnp.zeros((H, G), jnp.float32)
    wrec = jnp.concatenate([
        jnp.concatenate([l0["whh"], l1["wih"], z], axis=1),
        jnp.concatenate([z, l1["whh"], l2["wih"]], axis=1),
        jnp.concatenate([z, z, l2["whh"]], axis=1),
    ], axis=0)                                                   # (3H, GW)

    # block-diagonal layer-0 input projection: (T*D, T*GW); block t maps x_t into the
    # first 128 columns of that timestep's 384-wide gate block (other 256 cols zero).
    blk = jnp.concatenate([l0["wih"],
                           jnp.zeros((D, 2 * G), jnp.float32)], axis=1)  # (D, GW)
    wbig = jax.scipy.linalg.block_diag(*([blk] * T))              # (T*D, T*GW)

    bias_full = jnp.concatenate([l0["b"], l1["b"], l2["b"]], axis=1)   # (1, GW)
    btile = jnp.tile(bias_full, (1, T))                                # (1, T*GW)

    return dict(wbig=wbig, wrec=wrec, btile=btile,
                wa=params["wa"], ba=params["ba"])


# ----------------------------------------------------------------------------
# Pure-JAX reference (same math, batch-major, lax.scan recurrence)
# ----------------------------------------------------------------------------
def attentional_lstm_pool_ref(x, params):
    B, T, D = x.shape
    H = HIDDEN
    HP = jax.lax.Precision.HIGHEST
    seq = x
    for lp in params["lstm"]:
        wih, whh, b = lp["wih"], lp["whh"], lp["b"]

        def step(carry, x_t):
            h, c = carry
            g = (jnp.dot(x_t, wih, precision=HP)
                 + jnp.dot(h, whh, precision=HP) + b)
            i = _sigmoid(g[:, 0 * H:1 * H])
            f = _sigmoid(g[:, 1 * H:2 * H])
            gg = jnp.tanh(g[:, 2 * H:3 * H])
            o = _sigmoid(g[:, 3 * H:4 * H])
            c = f * c + i * gg
            h = o * jnp.tanh(c)
            return (h, c), h

        init = (jnp.zeros((B, H), jnp.float32), jnp.zeros((B, H), jnp.float32))
        _, ys = jax.lax.scan(step, init, jnp.transpose(seq, (1, 0, 2)))
        seq = jnp.transpose(ys, (1, 0, 2))                 # (B, T, H)

    m = jnp.tanh(seq)
    logits = jnp.einsum("bth,h->bt", m, params["wa"][0],
                        precision=HP) + params["ba"][0]
    alpha = jax.nn.softmax(logits, axis=1)
    r = jnp.sum(seq * alpha[:, :, None], axis=1)           # (B, H)
    x2 = jnp.max(x, axis=1)                                # (B, D)
    return jnp.concatenate([r, x2], axis=1)


if __name__ == "__main__":
    d_size, B, T = 4, 2, 8

    root = jax.random.PRNGKey(0)
    kx, kp = jax.random.split(root)
    x = jax.random.normal(kx, (B, T, d_size), jnp.float32)   # batch_first, like PyTorch
    params = init_params(kp, d_size)
    prep = jax.tree_util.tree_map(jnp.asarray, prepare_params(params, T))

    fwd = jax.jit(attentional_lstm_pool_pallas)
    out = jax.block_until_ready(fwd(x, prep))
    ref = jax.block_until_ready(jax.jit(attentional_lstm_pool_ref)(x, params))

    assert out.shape == (B, HIDDEN + d_size), out.shape
    np.testing.assert_allclose(np.asarray(out), np.asarray(ref),
                               rtol=1e-3, atol=1e-3)
    print("KERNEL_OK")
</pallas_src>

<mosaic_0001>
module attributes {stable_mosaic.version = 11 : i64} {
  func.func @kernel(%arg0: memref<8x32xf32, #tpu.memory_space<vmem>>, %arg1: memref<32x3072xf32, #tpu.memory_space<vmem>>, %arg2: memref<96x384xf32, #tpu.memory_space<vmem>>, %arg3: memref<1x3072xf32, #tpu.memory_space<vmem>>, %arg4: memref<1x32xf32, #tpu.memory_space<vmem>>, %arg5: memref<1xf32, #tpu.memory_space<smem>>, %arg6: memref<8x36xf32, #tpu.memory_space<vmem>>, %arg7: memref<8x3072xf32, #tpu.memory_space<vmem>>, %arg8: memref<64x32xf32, #tpu.memory_space<vmem>>) attributes {dimension_semantics = [], scalar_prefetch = 0 : i64, scratch_operands = 2 : i64, tpu.core_type = #tpu.core_type<tc>} {
    %c0 = arith.constant 0 : index
    %c0_0 = arith.constant 0 : index
    %0 = vector.load %arg0[%c0, %c0_0] : memref<8x32xf32, #tpu.memory_space<vmem>>, vector<8x32xf32>
    %c0_1 = arith.constant 0 : index
    %c0_2 = arith.constant 0 : index
    %1 = vector.load %arg1[%c0_1, %c0_2] : memref<32x3072xf32, #tpu.memory_space<vmem>>, vector<32x3072xf32>
    %cst = arith.constant dense<0.000000e+00> : vector<8x3072xf32>
    %2 = tpu.matmul %0, %1, %cst {dimension_numbers = #tpu.dot_dimension_numbers<[1], [0], [0], [1], [0, 0, 1, 1], [], []>} : vector<8x32xf32>, vector<32x3072xf32>, vector<8x3072xf32> -> vector<8x3072xf32>
    %c0_3 = arith.constant 0 : index
    %c0_4 = arith.constant 0 : index
    %3 = vector.load %arg3[%c0_3, %c0_4] : memref<1x3072xf32, #tpu.memory_space<vmem>>, vector<1x3072xf32>
    %4 = vector.broadcast %3 : vector<1x3072xf32> to vector<8x3072xf32>
    %5 = arith.addf %2, %4 : vector<8x3072xf32>
    %c0_5 = arith.constant 0 : index
    %c0_6 = arith.constant 0 : index
    %6 = vector.load %arg7[%c0_5, %c0_6] : memref<8x3072xf32, #tpu.memory_space<vmem>>, vector<8x3072xf32>
    tpu.vector_store %arg7[%c0_5, %c0_6], %5 {strides = array<i32>} : memref<8x3072xf32, #tpu.memory_space<vmem>>, vector<8x3072xf32>,
    %cst_7 = arith.constant 0.000000e+00 : f32
    %7 = vector.broadcast %cst_7 : f32 to vector<8x32xf32>
    %cst_8 = arith.constant 0.000000e+00 : f32
    %8 = vector.broadcast %cst_8 : f32 to vector<8x96xf32>
    %c0_9 = arith.constant 0 : index
    %c0_10 = arith.constant 0 : index
    %9 = vector.load %arg2[%c0_9, %c0_10] : memref<96x384xf32, #tpu.memory_space<vmem>>, vector<96x384xf32>
    %cst_11 = arith.constant dense<0.000000e+00> : vector<8x384xf32>
    %10 = tpu.matmul %8, %9, %cst_11 {dimension_numbers = #tpu.dot_dimension_numbers<[1], [0], [0], [1], [0, 0, 1, 1], [], []>} : vector<8x96xf32>, vector<96x384xf32>, vector<8x384xf32> -> vector<8x384xf32>
    %c0_12 = arith.constant 0 : index
    %c0_13 = arith.constant 0 : index
    %11 = vector.load %arg7[%c0_12, %c0_13] : memref<8x3072xf32, #tpu.memory_space<vmem>>, vector<8x384xf32>
    %12 = arith.addf %10, %11 : vector<8x384xf32>
    %cst_14 = arith.constant 0.000000e+00 : f32
    %13 = vector.broadcast %cst_14 : f32 to vector<8x384xf32>
    %14 = arith.subf %13, %12 : vector<8x384xf32>
    %15 = math.exp %14 : vector<8x384xf32>
    %cst_15 = arith.constant 1.000000e+00 : f32
    %16 = vector.broadcast %cst_15 : f32 to vector<8x384xf32>
    %17 = arith.addf %16, %15 : vector<8x384xf32>
    %cst_16 = arith.constant 1.000000e+00 : f32
    %18 = vector.broadcast %cst_16 : f32 to vector<8x384xf32>
    %19 = arith.divf %18, %17 : vector<8x384xf32>
    %20 = math.tanh %12 : vector<8x384xf32>
    %21 = vector.extract_strided_slice %19 {offsets = [0, 0], sizes = [8, 32], strides = [1, 1]} : vector<8x384xf32> to vector<8x32xf32>
    %22 = vector.extract_strided_slice %19 {offsets = [0, 32], sizes = [8, 32], strides = [1, 1]} : vector<8x384xf32> to vector<8x32xf32>
    %23 = vector.extract_strided_slice %20 {offsets = [0, 64], sizes = [8, 32], strides = [1, 1]} : vector<8x384xf32> to vector<8x32xf32>
    %24 = vector.extract_strided_slice %19 {offsets = [0, 96], sizes = [8, 32], strides = [1, 1]} : vector<8x384xf32> to vector<8x32xf32>
    %25 = arith.mulf %22, %7 : vector<8x32xf32>
    %26 = arith.mulf %21, %23 : vector<8x32xf32>
    %27 = arith.addf %25, %26 : vector<8x32xf32>
    %28 = math.tanh %27 : vector<8x32xf32>
    %29 = arith.mulf %24, %28 : vector<8x32xf32>
    %30 = tpu.concatenate %29, %7, %7 in 1 : vector<8x32xf32>, vector<8x32xf32>, vector<8x32xf32> -> vector<8x96xf32>
    %c0_17 = arith.constant 0 : index
    %c0_18 = arith.constant 0 : index
    %31 = vector.load %arg2[%c0_17, %c0_18] : memref<96x384xf32, #tpu.memory_space<vmem>>, vector<96x384xf32>
    %cst_19 = arith.constant dense<0.000000e+00> : vector<8x384xf32>
    %32 = tpu.matmul %30, %31, %cst_19 {dimension_numbers = #tpu.dot_dimension_numbers<[1], [0], [0], [1], [0, 0, 1, 1], [], []>} : vector<8x96xf32>, vector<96x384xf32>, vector<8x384xf32> -> vector<8x384xf32>
    %c0_20 = arith.constant 0 : index
    %c384 = arith.constant 384 : index
    %33 = vector.load %arg7[%c0_20, %c384] : memref<8x3072xf32, #tpu.memory_space<vmem>>, vector<8x384xf32>
    %34 = arith.addf %32, %33 : vector<8x384xf32>
    %cst_21 = arith.constant 0.000000e+00 : f32
    %35 = vector.broadcast %cst_21 : f32 to vector<8x384xf32>
    %36 = arith.subf %35, %34 : vector<8x384xf32>
    %37 = math.exp %36 : vector<8x384xf32>
    %cst_22 = arith.constant 1.000000e+00 : f32
    %38 = vector.broadcast %cst_22 : f32 to vector<8x384xf32>
    %39 = arith.addf %38, %37 : vector<8x384xf32>
    %cst_23 = arith.constant 1.000000e+00 : f32
    %40 = vector.broadcast %cst_23 : f32 to vector<8x384xf32>
    %41 = arith.divf %40, %39 : vector<8x384xf32>
    %42 = math.tanh %34 : vector<8x384xf32>
    %43 = vector.extract_strided_slice %41 {offsets = [0, 0], sizes = [8, 32], strides = [1, 1]} : vector<8x384xf32> to vector<8x32xf32>
    %44 = vector.extract_strided_slice %41 {offsets = [0, 32], sizes = [8, 32], strides = [1, 1]} : vector<8x384xf32> to vector<8x32xf32>
    %45 = vector.extract_strided_slice %42 {offsets = [0, 64], sizes = [8, 32], strides = [1, 1]} : vector<8x384xf32> to vector<8x32xf32>
    %46 = vector.extract_strided_slice %41 {offsets = [0, 96], sizes = [8, 32], strides = [1, 1]} : vector<8x384xf32> to vector<8x32xf32>
    %47 = arith.mulf %44, %27 : vector<8x32xf32>
    %48 = arith.mulf %43, %45 : vector<8x32xf32>
    %49 = arith.addf %47, %48 : vector<8x32xf32>
    %50 = math.tanh %49 : vector<8x32xf32>
    %51 = arith.mulf %46, %50 : vector<8x32xf32>
    %52 = vector.extract_strided_slice %41 {offsets = [0, 128], sizes = [8, 32], strides = [1, 1]} : vector<8x384xf32> to vector<8x32xf32>
    %53 = vector.extract_strided_slice %41 {offsets = [0, 160], sizes = [8, 32], strides = [1, 1]} : vector<8x384xf32> to vector<8x32xf32>
    %54 = vector.extract_strided_slice %42 {offsets = [0, 192], sizes = [8, 32], strides = [1, 1]} : vector<8x384xf32> to vector<8x32xf32>
    %55 = vector.extract_strided_slice %41 {offsets = [0, 224], sizes = [8, 32], strides = [1, 1]} : vector<8x384xf32> to vector<8x32xf32>
    %56 = arith.mulf %53, %7 : vector<8x32xf32>
    %57 = arith.mulf %52, %54 : vector<8x32xf32>
    %58 = arith.addf %56, %57 : vector<8x32xf32>
    %59 = math.tanh %58 : vector<8x32xf32>
    %60 = arith.mulf %55, %59 : vector<8x32xf32>
    %61 = tpu.concatenate %51, %60, %7 in 1 : vector<8x32xf32>, vector<8x32xf32>, vector<8x32xf32> -> vector<8x96xf32>
    %c0_24 = arith.constant 0 : index
    %c0_25 = arith.constant 0 : index
    %62 = vector.load %arg2[%c0_24, %c0_25] : memref<96x384xf32, #tpu.memory_space<vmem>>, vector<96x384xf32>
    %cst_26 = arith.constant dense<0.000000e+00> : vector<8x384xf32>
    %63 = tpu.matmul %61, %62, %cst_26 {dimension_numbers = #tpu.dot_dimension_numbers<[1], [0], [0], [1], [0, 0, 1, 1], [], []>} : vector<8x96xf32>, vector<96x384xf32>, vector<8x384xf32> -> vector<8x384xf32>
    %c0_27 = arith.constant 0 : index
    %c768 = arith.constant 768 : index
    %64 = vector.load %arg7[%c0_27, %c768] : memref<8x3072xf32, #tpu.memory_space<vmem>>, vector<8x384xf32>
    %65 = arith.addf %63, %64 : vector<8x384xf32>
    %cst_28 = arith.constant 0.000000e+00 : f32
    %66 = vector.broadcast %cst_28 : f32 to vector<8x384xf32>
    %67 = arith.subf %66, %65 : vector<8x384xf32>
    %68 = math.exp %67 : vector<8x384xf32>
    %cst_29 = arith.constant 1.000000e+00 : f32
    %69 = vector.broadcast %cst_29 : f32 to vector<8x384xf32>
    %70 = arith.addf %69, %68 : vector<8x384xf32>
    %cst_30 = arith.constant 1.000000e+00 : f32
    %71 = vector.broadcast %cst_30 : f32 to vector<8x384xf32>
    %72 = arith.divf %71, %70 : vector<8x384xf32>
    %73 = math.tanh %65 : vector<8x384xf32>
    %74 = vector.extract_strided_slice %72 {offsets = [0, 0], sizes = [8, 32], strides = [1, 1]} : vector<8x384xf32> to vector<8x32xf32>
    %75 = vector.extract_strided_slice %72 {offsets = [0, 32], sizes = [8, 32], strides = [1, 1]} : vector<8x384xf32> to vector<8x32xf32>
    %76 = vector.extract_strided_slice %73 {offsets = [0, 64], sizes = [8, 32], strides = [1, 1]} : vector<8x384xf32> to vector<8x32xf32>
    %77 = vector.extract_strided_slice %72 {offsets = [0, 96], sizes = [8, 32], strides = [1, 1]} : vector<8x384xf32> to vector<8x32xf32>
    %78 = arith.mulf %75, %49 : vector<8x32xf32>
    %79 = arith.mulf %74, %76 : vector<8x32xf32>
    %80 = arith.addf %78, %79 : vector<8x32xf32>
    %81 = math.tanh %80 : vector<8x32xf32>
    %82 = arith.mulf %77, %81 : vector<8x32xf32>
    %83 = vector.extract_strided_slice %72 {offsets = [0, 128], sizes = [8, 32], strides = [1, 1]} : vector<8x384xf32> to vector<8x32xf32>
    %84 = vector.extract_strided_slice %72 {offsets = [0, 160], sizes = [8, 32], strides = [1, 1]} : vector<8x384xf32> to vector<8x32xf32>
    %85 = vector.extract_strided_slice %73 {offsets = [0, 192], sizes = [8, 32], strides = [1, 1]} : vector<8x384xf32> to vector<8x32xf32>
    %86 = vector.extract_strided_slice %72 {offsets = [0, 224], sizes = [8, 32], strides = [1, 1]} : vector<8x384xf32> to vector<8x32xf32>
    %87 = arith.mulf %84, %58 : vector<8x32xf32>
    %88 = arith.mulf %83, %85 : vector<8x32xf32>
    %89 = arith.addf %87, %88 : vector<8x32xf32>
    %90 = math.tanh %89 : vector<8x32xf32>
    %91 = arith.mulf %86, %90 : vector<8x32xf32>
    %92 = vector.extract_strided_slice %72 {offsets = [0, 256], sizes = [8, 32], strides = [1, 1]} : vector<8x384xf32> to vector<8x32xf32>
    %93 = vector.extract_strided_slice %72 {offsets = [0, 288], sizes = [8, 32], strides = [1, 1]} : vector<8x384xf32> to vector<8x32xf32>
    %94 = vector.extract_strided_slice %73 {offsets = [0, 320], sizes = [8, 32], strides = [1, 1]} : vector<8x384xf32> to vector<8x32xf32>
    %95 = vector.extract_strided_slice %72 {offsets = [0, 352], sizes = [8, 32], strides = [1, 1]} : vector<8x384xf32> to vector<8x32xf32>
    %96 = arith.mulf %93, %7 : vector<8x32xf32>
    %97 = arith.mulf %92, %94 : vector<8x32xf32>
    %98 = arith.addf %96, %97 : vector<8x32xf32>
    %99 = math.tanh %98 : vector<8x32xf32>
    %100 = arith.mulf %95, %99 : vector<8x32xf32>
    %c0_31 = arith.constant 0 : index
    %c0_32 = arith.constant 0 : index
    %101 = vector.load %arg8[%c0_31, %c0_32] : memref<64x32xf32, #tpu.memory_space<vmem>>, vector<8x32xf32>
    tpu.vector_store %arg8[%c0_31, %c0_32], %100 {strides = array<i32>} : memref<64x32xf32, #tpu.memory_space<vmem>>, vector<8x32xf32>,
    %102 = tpu.concatenate %82, %91, %100 in 1 : vector<8x32xf32>, vector<8x32xf32>, vector<8x32xf32> -> vector<8x96xf32>
    %c0_33 = arith.constant 0 : index
    %c0_34 = arith.constant 0 : index
    %103 = vector.load %arg2[%c0_33, %c0_34] : memref<96x384xf32, #tpu.memory_space<vmem>>, vector<96x384xf32>
    %cst_35 = arith.constant dense<0.000000e+00> : vector<8x384xf32>
    %104 = tpu.matmul %102, %103, %cst_35 {dimension_numbers = #tpu.dot_dimension_numbers<[1], [0], [0], [1], [0, 0, 1, 1], [], []>} : vector<8x96xf32>, vector<96x384xf32>, vector<8x384xf32> -> vector<8x384xf32>
    %c0_36 = arith.constant 0 : index
    %c1152 = arith.constant 1152 : index
    %105 = vector.load %arg7[%c0_36, %c1152] : memref<8x3072xf32, #tpu.memory_space<vmem>>, vector<8x384xf32>
    %106 = arith.addf %104, %105 : vector<8x384xf32>
    %cst_37 = arith.constant 0.000000e+00 : f32
    %107 = vector.broadcast %cst_37 : f32 to vector<8x384xf32>
    %108 = arith.subf %107, %106 : vector<8x384xf32>
    %109 = math.exp %108 : vector<8x384xf32>
    %cst_38 = arith.constant 1.000000e+00 : f32
    %110 = vector.broadcast %cst_38 : f32 to vector<8x384xf32>
    %111 = arith.addf %110, %109 : vector<8x384xf32>
    %cst_39 = arith.constant 1.000000e+00 : f32
    %112 = vector.broadcast %cst_39 : f32 to vector<8x384xf32>
    %113 = arith.divf %112, %111 : vector<8x384xf32>
    %114 = math.tanh %106 : vector<8x384xf32>
    %115 = vector.extract_strided_slice %113 {offsets = [0, 0], sizes = [8, 32], strides = [1, 1]} : vector<8x384xf32> to vector<8x32xf32>
    %116 = vector.extract_strided_slice %113 {offsets = [0, 32], sizes = [8, 32], strides = [1, 1]} : vector<8x384xf32> to vector<8x32xf32>
    %117 = vector.extract_strided_slice %114 {offsets = [0, 64], sizes = [8, 32], strides = [1, 1]} : vector<8x384xf32> to vector<8x32xf32>
    %118 = vector.extract_strided_slice %113 {offsets = [0, 96], sizes = [8, 32], strides = [1, 1]} : vector<8x384xf32> to vector<8x32xf32>
    %119 = arith.mulf %116, %80 : vector<8x32xf32>
    %120 = arith.mulf %115, %117 : vector<8x32xf32>
    %121 = arith.addf %119, %120 : vector<8x32xf32>
    %122 = math.tanh %121 : vector<8x32xf32>
    %123 = arith.mulf %118, %122 : vector<8x32xf32>
    %124 = vector.extract_strided_slice %113 {offsets = [0, 128], sizes = [8, 32], strides = [1, 1]} : vector<8x384xf32> to vector<8x32xf32>
    %125 = vector.extract_strided_slice %113 {offsets = [0, 160], sizes = [8, 32], strides = [1, 1]} : vector<8x384xf32> to vector<8x32xf32>
    %126 = vector.extract_strided_slice %114 {offsets = [0, 192], sizes = [8, 32], strides = [1, 1]} : vector<8x384xf32> to vector<8x32xf32>
    %127 = vector.extract_strided_slice %113 {offsets = [0, 224], sizes = [8, 32], strides = [1, 1]} : vector<8x384xf32> to vector<8x32xf32>
    %128 = arith.mulf %125, %89 : vector<8x32xf32>
    %129 = arith.mulf %124, %126 : vector<8x32xf32>
    %130 = arith.addf %128, %129 : vector<8x32xf32>
    %131 = math.tanh %130 : vector<8x32xf32>
    %132 = arith.mulf %127, %131 : vector<8x32xf32>
    %133 = vector.extract_strided_slice %113 {offsets = [0, 256], sizes = [8, 32], strides = [1, 1]} : vector<8x384xf32> to vector<8x32xf32>
    %134 = vector.extract_strided_slice %113 {offsets = [0, 288], sizes = [8, 32], strides = [1, 1]} : vector<8x384xf32> to vector<8x32xf32>
    %135 = vector.extract_strided_slice %114 {offsets = [0, 320], sizes = [8, 32], strides = [1, 1]} : vector<8x384xf32> to vector<8x32xf32>
    %136 = vector.extract_strided_slice %113 {offsets = [0, 352], sizes = [8, 32], strides = [1, 1]} : vector<8x384xf32> to vector<8x32xf32>
    %137 = arith.mulf %134, %98 : vector<8x32xf32>
    %138 = arith.mulf %133, %135 : vector<8x32xf32>
    %139 = arith.addf %137, %138 : vector<8x32xf32>
    %140 = math.tanh %139 : vector<8x32xf32>
    %141 = arith.mulf %136, %140 : vector<8x32xf32>
    %c8 = arith.constant 8 : index
    %c0_40 = arith.constant 0 : index
    %142 = vector.load %arg8[%c8, %c0_40] : memref<64x32xf32, #tpu.memory_space<vmem>>, vector<8x32xf32>
    tpu.vector_store %arg8[%c8, %c0_40], %141 {strides = array<i32>} : memref<64x32xf32, #tpu.memory_space<vmem>>, vector<8x32xf32>,
    %143 = tpu.concatenate %123, %132, %141 in 1 : vector<8x32xf32>, vector<8x32xf32>, vector<8x32xf32> -> vector<8x96xf32>
    %c0_41 = arith.constant 0 : index
    %c0_42 = arith.constant 0 : index
    %144 = vector.load %arg2[%c0_41, %c0_42] : memref<96x384xf32, #tpu.memory_space<vmem>>, vector<96x384xf32>
    %cst_43 = arith.constant dense<0.000000e+00> : vector<8x384xf32>
    %145 = tpu.matmul %143, %144, %cst_43 {dimension_numbers = #tpu.dot_dimension_numbers<[1], [0], [0], [1], [0, 0, 1, 1], [], []>} : vector<8x96xf32>, vector<96x384xf32>, vector<8x384xf32> -> vector<8x384xf32>
    %c0_44 = arith.constant 0 : index
    %c1536 = arith.constant 1536 : index
    %146 = vector.load %arg7[%c0_44, %c1536] : memref<8x3072xf32, #tpu.memory_space<vmem>>, vector<8x384xf32>
    %147 = arith.addf %145, %146 : vector<8x384xf32>
    %cst_45 = arith.constant 0.000000e+00 : f32
    %148 = vector.broadcast %cst_45 : f32 to vector<8x384xf32>
    %149 = arith.subf %148, %147 : vector<8x384xf32>
    %150 = math.exp %149 : vector<8x384xf32>
    %cst_46 = arith.constant 1.000000e+00 : f32
    %151 = vector.broadcast %cst_46 : f32 to vector<8x384xf32>
    %152 = arith.addf %151, %150 : vector<8x384xf32>
    %cst_47 = arith.constant 1.000000e+00 : f32
    %153 = vector.broadcast %cst_47 : f32 to vector<8x384xf32>
    %154 = arith.divf %153, %152 : vector<8x384xf32>
    %155 = math.tanh %147 : vector<8x384xf32>
    %156 = vector.extract_strided_slice %154 {offsets = [0, 0], sizes = [8, 32], strides = [1, 1]} : vector<8x384xf32> to vector<8x32xf32>
    %157 = vector.extract_strided_slice %154 {offsets = [0, 32], sizes = [8, 32], strides = [1, 1]} : vector<8x384xf32> to vector<8x32xf32>
    %158 = vector.extract_strided_slice %155 {offsets = [0, 64], sizes = [8, 32], strides = [1, 1]} : vector<8x384xf32> to vector<8x32xf32>
    %159 = vector.extract_strided_slice %154 {offsets = [0, 96], sizes = [8, 32], strides = [1, 1]} : vector<8x384xf32> to vector<8x32xf32>
    %160 = arith.mulf %157, %121 : vector<8x32xf32>
    %161 = arith.mulf %156, %158 : vector<8x32xf32>
    %162 = arith.addf %160, %161 : vector<8x32xf32>
    %163 = math.tanh %162 : vector<8x32xf32>
    %164 = arith.mulf %159, %163 : vector<8x32xf32>
    %165 = vector.extract_strided_slice %154 {offsets = [0, 128], sizes = [8, 32], strides = [1, 1]} : vector<8x384xf32> to vector<8x32xf32>
    %166 = vector.extract_strided_slice %154 {offsets = [0, 160], sizes = [8, 32], strides = [1, 1]} : vector<8x384xf32> to vector<8x32xf32>
    %167 = vector.extract_strided_slice %155 {offsets = [0, 192], sizes = [8, 32], strides = [1, 1]} : vector<8x384xf32> to vector<8x32xf32>
    %168 = vector.extract_strided_slice %154 {offsets = [0, 224], sizes = [8, 32], strides = [1, 1]} : vector<8x384xf32> to vector<8x32xf32>
    %169 = arith.mulf %166, %130 : vector<8x32xf32>
    %170 = arith.mulf %165, %167 : vector<8x32xf32>
    %171 = arith.addf %169, %170 : vector<8x32xf32>
    %172 = math.tanh %171 : vector<8x32xf32>
    %173 = arith.mulf %168, %172 : vector<8x32xf32>
    %174 = vector.extract_strided_slice %154 {offsets = [0, 256], sizes = [8, 32], strides = [1, 1]} : vector<8x384xf32> to vector<8x32xf32>
    %175 = vector.extract_strided_slice %154 {offsets = [0, 288], sizes = [8, 32], strides = [1, 1]} : vector<8x384xf32> to vector<8x32xf32>
    %176 = vector.extract_strided_slice %155 {offsets = [0, 320], sizes = [8, 32], strides = [1, 1]} : vector<8x384xf32> to vector<8x32xf32>
    %177 = vector.extract_strided_slice %154 {offsets = [0, 352], sizes = [8, 32], strides = [1, 1]} : vector<8x384xf32> to vector<8x32xf32>
    %178 = arith.mulf %175, %139 : vector<8x32xf32>
    %179 = arith.mulf %174, %176 : vector<8x32xf32>
    %180 = arith.addf %178, %179 : vector<8x32xf32>
    %181 = math.tanh %180 : vector<8x32xf32>
    %182 = arith.mulf %177, %181 : vector<8x32xf32>
    %c16 = arith.constant 16 : index
    %c0_48 = arith.constant 0 : index
    %183 = vector.load %arg8[%c16, %c0_48] : memref<64x32xf32, #tpu.memory_space<vmem>>, vector<8x32xf32>
    tpu.vector_store %arg8[%c16, %c0_48], %182 {strides = array<i32>} : memref<64x32xf32, #tpu.memory_space<vmem>>, vector<8x32xf32>,
    %184 = tpu.concatenate %164, %173, %182 in 1 : vector<8x32xf32>, vector<8x32xf32>, vector<8x32xf32> -> vector<8x96xf32>
    %c0_49 = arith.constant 0 : index
    %c0_50 = arith.constant 0 : index
    %185 = vector.load %arg2[%c0_49, %c0_50] : memref<96x384xf32, #tpu.memory_space<vmem>>, vector<96x384xf32>
    %cst_51 = arith.constant dense<0.000000e+00> : vector<8x384xf32>
    %186 = tpu.matmul %184, %185, %cst_51 {dimension_numbers = #tpu.dot_dimension_numbers<[1], [0], [0], [1], [0, 0, 1, 1], [], []>} : vector<8x96xf32>, vector<96x384xf32>, vector<8x384xf32> -> vector<8x384xf32>
    %c0_52 = arith.constant 0 : index
    %c1920 = arith.constant 1920 : index
    %187 = vector.load %arg7[%c0_52, %c1920] : memref<8x3072xf32, #tpu.memory_space<vmem>>, vector<8x384xf32>
    %188 = arith.addf %186, %187 : vector<8x384xf32>
    %cst_53 = arith.constant 0.000000e+00 : f32
    %189 = vector.broadcast %cst_53 : f32 to vector<8x384xf32>
    %190 = arith.subf %189, %188 : vector<8x384xf32>
    %191 = math.exp %190 : vector<8x384xf32>
    %cst_54 = arith.constant 1.000000e+00 : f32
    %192 = vector.broadcast %cst_54 : f32 to vector<8x384xf32>
    %193 = arith.addf %192, %191 : vector<8x384xf32>
    %cst_55 = arith.constant 1.000000e+00 : f32
    %194 = vector.broadcast %cst_55 : f32 to vector<8x384xf32>
    %195 = arith.divf %194, %193 : vector<8x384xf32>
    %196 = math.tanh %188 : vector<8x384xf32>
    %197 = vector.extract_strided_slice %195 {offsets = [0, 0], sizes = [8, 32], strides = [1, 1]} : vector<8x384xf32> to vector<8x32xf32>
    %198 = vector.extract_strided_slice %195 {offsets = [0, 32], sizes = [8, 32], strides = [1, 1]} : vector<8x384xf32> to vector<8x32xf32>
    %199 = vector.extract_strided_slice %196 {offsets = [0, 64], sizes = [8, 32], strides = [1, 1]} : vector<8x384xf32> to vector<8x32xf32>
    %200 = vector.extract_strided_slice %195 {offsets = [0, 96], sizes = [8, 32], strides = [1, 1]} : vector<8x384xf32> to vector<8x32xf32>
    %201 = arith.mulf %198, %162 : vector<8x32xf32>
    %202 = arith.mulf %197, %199 : vector<8x32xf32>
    %203 = arith.addf %201, %202 : vector<8x32xf32>
    %204 = math.tanh %203 : vector<8x32xf32>
    %205 = arith.mulf %200, %204 : vector<8x32xf32>
    %206 = vector.extract_strided_slice %195 {offsets = [0, 128], sizes = [8, 32], strides = [1, 1]} : vector<8x384xf32> to vector<8x32xf32>
    %207 = vector.extract_strided_slice %195 {offsets = [0, 160], sizes = [8, 32], strides = [1, 1]} : vector<8x384xf32> to vector<8x32xf32>
    %208 = vector.extract_strided_slice %196 {offsets = [0, 192], sizes = [8, 32], strides = [1, 1]} : vector<8x384xf32> to vector<8x32xf32>
    %209 = vector.extract_strided_slice %195 {offsets = [0, 224], sizes = [8, 32], strides = [1, 1]} : vector<8x384xf32> to vector<8x32xf32>
    %210 = arith.mulf %207, %171 : vector<8x32xf32>
    %211 = arith.mulf %206, %208 : vector<8x32xf32>
    %212 = arith.addf %210, %211 : vector<8x32xf32>
    %213 = math.tanh %212 : vector<8x32xf32>
    %214 = arith.mulf %209, %213 : vector<8x32xf32>
    %215 = vector.extract_strided_slice %195 {offsets = [0, 256], sizes = [8, 32], strides = [1, 1]} : vector<8x384xf32> to vector<8x32xf32>
    %216 = vector.extract_strided_slice %195 {offsets = [0, 288], sizes = [8, 32], strides = [1, 1]} : vector<8x384xf32> to vector<8x32xf32>
    %217 = vector.extract_strided_slice %196 {offsets = [0, 320], sizes = [8, 32], strides = [1, 1]} : vector<8x384xf32> to vector<8x32xf32>
    %218 = vector.extract_strided_slice %195 {offsets = [0, 352], sizes = [8, 32], strides = [1, 1]} : vector<8x384xf32> to vector<8x32xf32>
    %219 = arith.mulf %216, %180 : vector<8x32xf32>
    %220 = arith.mulf %215, %217 : vector<8x32xf32>
    %221 = arith.addf %219, %220 : vector<8x32xf32>
    %222 = math.tanh %221 : vector<8x32xf32>
    %223 = arith.mulf %218, %222 : vector<8x32xf32>
    %c24 = arith.constant 24 : index
    %c0_56 = arith.constant 0 : index
    %224 = vector.load %arg8[%c24, %c0_56] : memref<64x32xf32, #tpu.memory_space<vmem>>, vector<8x32xf32>
    tpu.vector_store %arg8[%c24, %c0_56], %223 {strides = array<i32>} : memref<64x32xf32, #tpu.memory_space<vmem>>, vector<8x32xf32>,
    %225 = tpu.concatenate %205, %214, %223 in 1 : vector<8x32xf32>, vector<8x32xf32>, vector<8x32xf32> -> vector<8x96xf32>
    %c0_57 = arith.constant 0 : index
    %c0_58 = arith.constant 0 : index
    %226 = vector.load %arg2[%c0_57, %c0_58] : memref<96x384xf32, #tpu.memory_space<vmem>>, vector<96x384xf32>
    %cst_59 = arith.constant dense<0.000000e+00> : vector<8x384xf32>
    %227 = tpu.matmul %225, %226, %cst_59 {dimension_numbers = #tpu.dot_dimension_numbers<[1], [0], [0], [1], [0, 0, 1, 1], [], []>} : vector<8x96xf32>, vector<96x384xf32>, vector<8x384xf32> -> vector<8x384xf32>
    %c0_60 = arith.constant 0 : index
    %c2304 = arith.constant 2304 : index
    %228 = vector.load %arg7[%c0_60, %c2304] : memref<8x3072xf32, #tpu.memory_space<vmem>>, vector<8x384xf32>
    %229 = arith.addf %227, %228 : vector<8x384xf32>
    %cst_61 = arith.constant 0.000000e+00 : f32
    %230 = vector.broadcast %cst_61 : f32 to vector<8x384xf32>
    %231 = arith.subf %230, %229 : vector<8x384xf32>
    %232 = math.exp %231 : vector<8x384xf32>
    %cst_62 = arith.constant 1.000000e+00 : f32
    %233 = vector.broadcast %cst_62 : f32 to vector<8x384xf32>
    %234 = arith.addf %233, %232 : vector<8x384xf32>
    %cst_63 = arith.constant 1.000000e+00 : f32
    %235 = vector.broadcast %cst_63 : f32 to vector<8x384xf32>
    %236 = arith.divf %235, %234 : vector<8x384xf32>
    %237 = math.tanh %229 : vector<8x384xf32>
    %238 = vector.extract_strided_slice %236 {offsets = [0, 0], sizes = [8, 32], strides = [1, 1]} : vector<8x384xf32> to vector<8x32xf32>
    %239 = vector.extract_strided_slice %236 {offsets = [0, 32], sizes = [8, 32], strides = [1, 1]} : vector<8x384xf32> to vector<8x32xf32>
    %240 = vector.extract_strided_slice %237 {offsets = [0, 64], sizes = [8, 32], strides = [1, 1]} : vector<8x384xf32> to vector<8x32xf32>
    %241 = vector.extract_strided_slice %236 {offsets = [0, 96], sizes = [8, 32], strides = [1, 1]} : vector<8x384xf32> to vector<8x32xf32>
    %242 = arith.mulf %239, %203 : vector<8x32xf32>
    %243 = arith.mulf %238, %240 : vector<8x32xf32>
    %244 = arith.addf %242, %243 : vector<8x32xf32>
    %245 = math.tanh %244 : vector<8x32xf32>
    %246 = arith.mulf %241, %245 : vector<8x32xf32>
    %247 = vector.extract_strided_slice %236 {offsets = [0, 128], sizes = [8, 32], strides = [1, 1]} : vector<8x384xf32> to vector<8x32xf32>
    %248 = vector.extract_strided_slice %236 {offsets = [0, 160], sizes = [8, 32], strides = [1, 1]} : vector<8x384xf32> to vector<8x32xf32>
    %249 = vector.extract_strided_slice %237 {offsets = [0, 192], sizes = [8, 32], strides = [1, 1]} : vector<8x384xf32> to vector<8x32xf32>
    %250 = vector.extract_strided_slice %236 {offsets = [0, 224], sizes = [8, 32], strides = [1, 1]} : vector<8x384xf32> to vector<8x32xf32>
    %251 = arith.mulf %248, %212 : vector<8x32xf32>
    %252 = arith.mulf %247, %249 : vector<8x32xf32>
    %253 = arith.addf %251, %252 : vector<8x32xf32>
    %254 = math.tanh %253 : vector<8x32xf32>
    %255 = arith.mulf %250, %254 : vector<8x32xf32>
    %256 = vector.extract_strided_slice %236 {offsets = [0, 256], sizes = [8, 32], strides = [1, 1]} : vector<8x384xf32> to vector<8x32xf32>
    %257 = vector.extract_strided_slice %236 {offsets = [0, 288], sizes = [8, 32], strides = [1, 1]} : vector<8x384xf32> to vector<8x32xf32>
    %258 = vector.extract_strided_slice %237 {offsets = [0, 320], sizes = [8, 32], strides = [1, 1]} : vector<8x384xf32> to vector<8x32xf32>
    %259 = vector.extract_strided_slice %236 {offsets = [0, 352], sizes = [8, 32], strides = [1, 1]} : vector<8x384xf32> to vector<8x32xf32>
    %260 = arith.mulf %257, %221 : vector<8x32xf32>
    %261 = arith.mulf %256, %258 : vector<8x32xf32>
    %262 = arith.addf %260, %261 : vector<8x32xf32>
    %263 = math.tanh %262 : vector<8x32xf32>
    %264 = arith.mulf %259, %263 : vector<8x32xf32>
    %c32 = arith.constant 32 : index
    %c0_64 = arith.constant 0 : index
    %265 = vector.load %arg8[%c32, %c0_64] : memref<64x32xf32, #tpu.memory_space<vmem>>, vector<8x32xf32>
    tpu.vector_store %arg8[%c32, %c0_64], %264 {strides = array<i32>} : memref<64x32xf32, #tpu.memory_space<vmem>>, vector<8x32xf32>,
    %266 = tpu.concatenate %246, %255, %264 in 1 : vector<8x32xf32>, vector<8x32xf32>, vector<8x32xf32> -> vector<8x96xf32>
    %c0_65 = arith.constant 0 : index
    %c0_66 = arith.constant 0 : index
    %267 = vector.load %arg2[%c0_65, %c0_66] : memref<96x384xf32, #tpu.memory_space<vmem>>, vector<96x384xf32>
    %cst_67 = arith.constant dense<0.000000e+00> : vector<8x384xf32>
    %268 = tpu.matmul %266, %267, %cst_67 {dimension_numbers = #tpu.dot_dimension_numbers<[1], [0], [0], [1], [0, 0, 1, 1], [], []>} : vector<8x96xf32>, vector<96x384xf32>, vector<8x384xf32> -> vector<8x384xf32>
    %c0_68 = arith.constant 0 : index
    %c2688 = arith.constant 2688 : index
    %269 = vector.load %arg7[%c0_68, %c2688] : memref<8x3072xf32, #tpu.memory_space<vmem>>, vector<8x384xf32>
    %270 = arith.addf %268, %269 : vector<8x384xf32>
    %cst_69 = arith.constant 0.000000e+00 : f32
    %271 = vector.broadcast %cst_69 : f32 to vector<8x384xf32>
    %272 = arith.subf %271, %270 : vector<8x384xf32>
    %273 = math.exp %272 : vector<8x384xf32>
    %cst_70 = arith.constant 1.000000e+00 : f32
    %274 = vector.broadcast %cst_70 : f32 to vector<8x384xf32>
    %275 = arith.addf %274, %273 : vector<8x384xf32>
    %cst_71 = arith.constant 1.000000e+00 : f32
    %276 = vector.broadcast %cst_71 : f32 to vector<8x384xf32>
    %277 = arith.divf %276, %275 : vector<8x384xf32>
    %278 = math.tanh %270 : vector<8x384xf32>
    %279 = vector.extract_strided_slice %277 {offsets = [0, 0], sizes = [8, 32], strides = [1, 1]} : vector<8x384xf32> to vector<8x32xf32>
    %280 = vector.extract_strided_slice %277 {offsets = [0, 32], sizes = [8, 32], strides = [1, 1]} : vector<8x384xf32> to vector<8x32xf32>
    %281 = vector.extract_strided_slice %278 {offsets = [0, 64], sizes = [8, 32], strides = [1, 1]} : vector<8x384xf32> to vector<8x32xf32>
    %282 = vector.extract_strided_slice %277 {offsets = [0, 96], sizes = [8, 32], strides = [1, 1]} : vector<8x384xf32> to vector<8x32xf32>
    %283 = arith.mulf %280, %244 : vector<8x32xf32>
    %284 = arith.mulf %279, %281 : vector<8x32xf32>
    %285 = arith.addf %283, %284 : vector<8x32xf32>
    %286 = math.tanh %285 : vector<8x32xf32>
    %287 = arith.mulf %282, %286 : vector<8x32xf32>
    %288 = vector.extract_strided_slice %277 {offsets = [0, 128], sizes = [8, 32], strides = [1, 1]} : vector<8x384xf32> to vector<8x32xf32>
    %289 = vector.extract_strided_slice %277 {offsets = [0, 160], sizes = [8, 32], strides = [1, 1]} : vector<8x384xf32> to vector<8x32xf32>
    %290 = vector.extract_strided_slice %278 {offsets = [0, 192], sizes = [8, 32], strides = [1, 1]} : vector<8x384xf32> to vector<8x32xf32>
    %291 = vector.extract_strided_slice %277 {offsets = [0, 224], sizes = [8, 32], strides = [1, 1]} : vector<8x384xf32> to vector<8x32xf32>
    %292 = arith.mulf %289, %253 : vector<8x32xf32>
    %293 = arith.mulf %288, %290 : vector<8x32xf32>
    %294 = arith.addf %292, %293 : vector<8x32xf32>
    %295 = math.tanh %294 : vector<8x32xf32>
    %296 = arith.mulf %291, %295 : vector<8x32xf32>
    %297 = vector.extract_strided_slice %277 {offsets = [0, 256], sizes = [8, 32], strides = [1, 1]} : vector<8x384xf32> to vector<8x32xf32>
    %298 = vector.extract_strided_slice %277 {offsets = [0, 288], sizes = [8, 32], strides = [1, 1]} : vector<8x384xf32> to vector<8x32xf32>
    %299 = vector.extract_strided_slice %278 {offsets = [0, 320], sizes = [8, 32], strides = [1, 1]} : vector<8x384xf32> to vector<8x32xf32>
    %300 = vector.extract_strided_slice %277 {offsets = [0, 352], sizes = [8, 32], strides = [1, 1]} : vector<8x384xf32> to vector<8x32xf32>
    %301 = arith.mulf %298, %262 : vector<8x32xf32>
    %302 = arith.mulf %297, %299 : vector<8x32xf32>
    %303 = arith.addf %301, %302 : vector<8x32xf32>
    %304 = math.tanh %303 : vector<8x32xf32>
    %305 = arith.mulf %300, %304 : vector<8x32xf32>
    %c40 = arith.constant 40 : index
    %c0_72 = arith.constant 0 : index
    %306 = vector.load %arg8[%c40, %c0_72] : memref<64x32xf32, #tpu.memory_space<vmem>>, vector<8x32xf32>
    tpu.vector_store %arg8[%c40, %c0_72], %305 {strides = array<i32>} : memref<64x32xf32, #tpu.memory_space<vmem>>, vector<8x32xf32>,
    %307 = tpu.concatenate %287, %296, %305 in 1 : vector<8x32xf32>, vector<8x32xf32>, vector<8x32xf32> -> vector<8x96xf32>
    %c0_73 = arith.constant 0 : index
    %c0_74 = arith.constant 0 : index
    %308 = vector.load %arg2[%c0_73, %c0_74] : memref<96x384xf32, #tpu.memory_space<vmem>>, vector<96x384xf32>
    %cst_75 = arith.constant dense<0.000000e+00> : vector<8x384xf32>
    %309 = tpu.matmul %307, %308, %cst_75 {dimension_numbers = #tpu.dot_dimension_numbers<[1], [0], [0], [1], [0, 0, 1, 1], [], []>} : vector<8x96xf32>, vector<96x384xf32>, vector<8x384xf32> -> vector<8x384xf32>
    %c0_76 = arith.constant 0 : index
    %c2688_77 = arith.constant 2688 : index
    %310 = vector.load %arg7[%c0_76, %c2688_77] : memref<8x3072xf32, #tpu.memory_space<vmem>>, vector<8x384xf32>
    %311 = arith.addf %309, %310 : vector<8x384xf32>
    %cst_78 = arith.constant 0.000000e+00 : f32
    %312 = vector.broadcast %cst_78 : f32 to vector<8x384xf32>
    %313 = arith.subf %312, %311 : vector<8x384xf32>
    %314 = math.exp %313 : vector<8x384xf32>
    %cst_79 = arith.constant 1.000000e+00 : f32
    %315 = vector.broadcast %cst_79 : f32 to vector<8x384xf32>
    %316 = arith.addf %315, %314 : vector<8x384xf32>
    %cst_80 = arith.constant 1.000000e+00 : f32
    %317 = vector.broadcast %cst_80 : f32 to vector<8x384xf32>
    %318 = arith.divf %317, %316 : vector<8x384xf32>
    %319 = math.tanh %311 : vector<8x384xf32>
    %320 = vector.extract_strided_slice %318 {offsets = [0, 128], sizes = [8, 32], strides = [1, 1]} : vector<8x384xf32> to vector<8x32xf32>
    %321 = vector.extract_strided_slice %318 {offsets = [0, 160], sizes = [8, 32], strides = [1, 1]} : vector<8x384xf32> to vector<8x32xf32>
    %322 = vector.extract_strided_slice %319 {offsets = [0, 192], sizes = [8, 32], strides = [1, 1]} : vector<8x384xf32> to vector<8x32xf32>
    %323 = vector.extract_strided_slice %318 {offsets = [0, 224], sizes = [8, 32], strides = [1, 1]} : vector<8x384xf32> to vector<8x32xf32>
    %324 = arith.mulf %321, %294 : vector<8x32xf32>
    %325 = arith.mulf %320, %322 : vector<8x32xf32>
    %326 = arith.addf %324, %325 : vector<8x32xf32>
    %327 = math.tanh %326 : vector<8x32xf32>
    %328 = arith.mulf %323, %327 : vector<8x32xf32>
    %329 = vector.extract_strided_slice %318 {offsets = [0, 256], sizes = [8, 32], strides = [1, 1]} : vector<8x384xf32> to vector<8x32xf32>
    %330 = vector.extract_strided_slice %318 {offsets = [0, 288], sizes = [8, 32], strides = [1, 1]} : vector<8x384xf32> to vector<8x32xf32>
    %331 = vector.extract_strided_slice %319 {offsets = [0, 320], sizes = [8, 32], strides = [1, 1]} : vector<8x384xf32> to vector<8x32xf32>
    %332 = vector.extract_strided_slice %318 {offsets = [0, 352], sizes = [8, 32], strides = [1, 1]} : vector<8x384xf32> to vector<8x32xf32>
    %333 = arith.mulf %330, %303 : vector<8x32xf32>
    %334 = arith.mulf %329, %331 : vector<8x32xf32>
    %335 = arith.addf %333, %334 : vector<8x32xf32>
    %336 = math.tanh %335 : vector<8x32xf32>
    %337 = arith.mulf %332, %336 : vector<8x32xf32>
    %c48 = arith.constant 48 : index
    %c0_81 = arith.constant 0 : index
    %338 = vector.load %arg8[%c48, %c0_81] : memref<64x32xf32, #tpu.memory_space<vmem>>, vector<8x32xf32>
    tpu.vector_store %arg8[%c48, %c0_81], %337 {strides = array<i32>} : memref<64x32xf32, #tpu.memory_space<vmem>>, vector<8x32xf32>,
    %339 = tpu.concatenate %287, %328, %337 in 1 : vector<8x32xf32>, vector<8x32xf32>, vector<8x32xf32> -> vector<8x96xf32>
    %c0_82 = arith.constant 0 : index
    %c0_83 = arith.constant 0 : index
    %340 = vector.load %arg2[%c0_82, %c0_83] : memref<96x384xf32, #tpu.memory_space<vmem>>, vector<96x384xf32>
    %cst_84 = arith.constant dense<0.000000e+00> : vector<8x384xf32>
    %341 = tpu.matmul %339, %340, %cst_84 {dimension_numbers = #tpu.dot_dimension_numbers<[1], [0], [0], [1], [0, 0, 1, 1], [], []>} : vector<8x96xf32>, vector<96x384xf32>, vector<8x384xf32> -> vector<8x384xf32>
    %c0_85 = arith.constant 0 : index
    %c2688_86 = arith.constant 2688 : index
    %342 = vector.load %arg7[%c0_85, %c2688_86] : memref<8x3072xf32, #tpu.memory_space<vmem>>, vector<8x384xf32>
    %343 = arith.addf %341, %342 : vector<8x384xf32>
    %cst_87 = arith.constant 0.000000e+00 : f32
    %344 = vector.broadcast %cst_87 : f32 to vector<8x384xf32>
    %345 = arith.subf %344, %343 : vector<8x384xf32>
    %346 = math.exp %345 : vector<8x384xf32>
    %cst_88 = arith.constant 1.000000e+00 : f32
    %347 = vector.broadcast %cst_88 : f32 to vector<8x384xf32>
    %348 = arith.addf %347, %346 : vector<8x384xf32>
    %cst_89 = arith.constant 1.000000e+00 : f32
    %349 = vector.broadcast %cst_89 : f32 to vector<8x384xf32>
    %350 = arith.divf %349, %348 : vector<8x384xf32>
    %351 = math.tanh %343 : vector<8x384xf32>
    %352 = vector.extract_strided_slice %350 {offsets = [0, 256], sizes = [8, 32], strides = [1, 1]} : vector<8x384xf32> to vector<8x32xf32>
    %353 = vector.extract_strided_slice %350 {offsets = [0, 288], sizes = [8, 32], strides = [1, 1]} : vector<8x384xf32> to vector<8x32xf32>
    %354 = vector.extract_strided_slice %351 {offsets = [0, 320], sizes = [8, 32], strides = [1, 1]} : vector<8x384xf32> to vector<8x32xf32>
    %355 = vector.extract_strided_slice %350 {offsets = [0, 352], sizes = [8, 32], strides = [1, 1]} : vector<8x384xf32> to vector<8x32xf32>
    %356 = arith.mulf %353, %335 : vector<8x32xf32>
    %357 = arith.mulf %352, %354 : vector<8x32xf32>
    %358 = arith.addf %356, %357 : vector<8x32xf32>
    %359 = math.tanh %358 : vector<8x32xf32>
    %360 = arith.mulf %355, %359 : vector<8x32xf32>
    %c56 = arith.constant 56 : index
    %c0_90 = arith.constant 0 : index
    %361 = vector.load %arg8[%c56, %c0_90] : memref<64x32xf32, #tpu.memory_space<vmem>>, vector<8x32xf32>
    tpu.vector_store %arg8[%c56, %c0_90], %360 {strides = array<i32>} : memref<64x32xf32, #tpu.memory_space<vmem>>, vector<8x32xf32>,
    %c0_91 = arith.constant 0 : index
    %c0_92 = arith.constant 0 : index
    %362 = vector.load %arg8[%c0_91, %c0_92] : memref<64x32xf32, #tpu.memory_space<vmem>>, vector<64x32xf32>
    %363 = math.tanh %362 : vector<64x32xf32>
    %c0_93 = arith.constant 0 : index
    %c0_94 = arith.constant 0 : index
    %364 = vector.load %arg4[%c0_93, %c0_94] : memref<1x32xf32, #tpu.memory_space<vmem>>, vector<1x32xf32>
    %365 = vector.broadcast %364 : vector<1x32xf32> to vector<64x32xf32>
    %366 = arith.mulf %363, %365 : vector<64x32xf32>
    %cst_95 = arith.constant dense<0.000000e+00> : vector<64xf32>
    %367 = vector.multi_reduction <add>, %366, %cst_95 [1] : vector<64x32xf32> to vector<64xf32>
    %368 = vector.shape_cast %367 : vector<64xf32> to vector<64x1xf32>
    %c0_96 = arith.constant 0 : index
    %369 = memref.load %arg5[%c0_96] : memref<1xf32, #tpu.memory_space<smem>>
    %370 = vector.broadcast %369 : f32 to vector<64x1xf32>
    %371 = arith.addf %368, %370 : vector<64x1xf32>
    %372 = vector.extract_strided_slice %371 {offsets = [0, 0], sizes = [8, 1], strides = [1, 1]} : vector<64x1xf32> to vector<8x1xf32>
    %373 = vector.extract_strided_slice %371 {offsets = [8, 0], sizes = [8, 1], strides = [1, 1]} : vector<64x1xf32> to vector<8x1xf32>
    %374 = arith.maximumf %372, %373 : vector<8x1xf32>
    %375 = vector.extract_strided_slice %371 {offsets = [16, 0], sizes = [8, 1], strides = [1, 1]} : vector<64x1xf32> to vector<8x1xf32>
    %376 = arith.maximumf %374, %375 : vector<8x1xf32>
    %377 = vector.extract_strided_slice %371 {offsets = [24, 0], sizes = [8, 1], strides = [1, 1]} : vector<64x1xf32> to vector<8x1xf32>
    %378 = arith.maximumf %376, %377 : vector<8x1xf32>
    %379 = vector.extract_strided_slice %371 {offsets = [32, 0], sizes = [8, 1], strides = [1, 1]} : vector<64x1xf32> to vector<8x1xf32>
    %380 = arith.maximumf %378, %379 : vector<8x1xf32>
    %381 = vector.extract_strided_slice %371 {offsets = [40, 0], sizes = [8, 1], strides = [1, 1]} : vector<64x1xf32> to vector<8x1xf32>
    %382 = arith.maximumf %380, %381 : vector<8x1xf32>
    %383 = vector.extract_strided_slice %371 {offsets = [48, 0], sizes = [8, 1], strides = [1, 1]} : vector<64x1xf32> to vector<8x1xf32>
    %384 = arith.maximumf %382, %383 : vector<8x1xf32>
    %385 = vector.extract_strided_slice %371 {offsets = [56, 0], sizes = [8, 1], strides = [1, 1]} : vector<64x1xf32> to vector<8x1xf32>
    %386 = arith.maximumf %384, %385 : vector<8x1xf32>
    %cst_97 = arith.constant 0.000000e+00 : f32
    %387 = vector.broadcast %cst_97 : f32 to vector<8x1xf32>
    %cst_98 = arith.constant 0.000000e+00 : f32
    %388 = vector.broadcast %cst_98 : f32 to vector<8x32xf32>
    %389 = vector.extract_strided_slice %371 {offsets = [0, 0], sizes = [8, 1], strides = [1, 1]} : vector<64x1xf32> to vector<8x1xf32>
    %390 = arith.subf %389, %386 : vector<8x1xf32>
    %391 = math.exp %390 : vector<8x1xf32>
    %392 = arith.addf %387, %391 : vector<8x1xf32>
    %393 = vector.extract_strided_slice %362 {offsets = [0, 0], sizes = [8, 32], strides = [1, 1]} : vector<64x32xf32> to vector<8x32xf32>
    %394 = vector.broadcast %391 : vector<8x1xf32> to vector<8x32xf32>
    %395 = arith.mulf %394, %393 : vector<8x32xf32>
    %396 = arith.addf %388, %395 : vector<8x32xf32>
    %397 = vector.extract_strided_slice %371 {offsets = [8, 0], sizes = [8, 1], strides = [1, 1]} : vector<64x1xf32> to vector<8x1xf32>
    %398 = arith.subf %397, %386 : vector<8x1xf32>
    %399 = math.exp %398 : vector<8x1xf32>
    %400 = arith.addf %392, %399 : vector<8x1xf32>
    %401 = vector.extract_strided_slice %362 {offsets = [8, 0], sizes = [8, 32], strides = [1, 1]} : vector<64x32xf32> to vector<8x32xf32>
    %402 = vector.broadcast %399 : vector<8x1xf32> to vector<8x32xf32>
    %403 = arith.mulf %402, %401 : vector<8x32xf32>
    %404 = arith.addf %396, %403 : vector<8x32xf32>
    %405 = vector.extract_strided_slice %371 {offsets = [16, 0], sizes = [8, 1], strides = [1, 1]} : vector<64x1xf32> to vector<8x1xf32>
    %406 = arith.subf %405, %386 : vector<8x1xf32>
    %407 = math.exp %406 : vector<8x1xf32>
    %408 = arith.addf %400, %407 : vector<8x1xf32>
    %409 = vector.extract_strided_slice %362 {offsets = [16, 0], sizes = [8, 32], strides = [1, 1]} : vector<64x32xf32> to vector<8x32xf32>
    %410 = vector.broadcast %407 : vector<8x1xf32> to vector<8x32xf32>
    %411 = arith.mulf %410, %409 : vector<8x32xf32>
    %412 = arith.addf %404, %411 : vector<8x32xf32>
    %413 = vector.extract_strided_slice %371 {offsets = [24, 0], sizes = [8, 1], strides = [1, 1]} : vector<64x1xf32> to vector<8x1xf32>
    %414 = arith.subf %413, %386 : vector<8x1xf32>
    %415 = math.exp %414 : vector<8x1xf32>
    %416 = arith.addf %408, %415 : vector<8x1xf32>
    %417 = vector.extract_strided_slice %362 {offsets = [24, 0], sizes = [8, 32], strides = [1, 1]} : vector<64x32xf32> to vector<8x32xf32>
    %418 = vector.broadcast %415 : vector<8x1xf32> to vector<8x32xf32>
    %419 = arith.mulf %418, %417 : vector<8x32xf32>
    %420 = arith.addf %412, %419 : vector<8x32xf32>
    %421 = vector.extract_strided_slice %371 {offsets = [32, 0], sizes = [8, 1], strides = [1, 1]} : vector<64x1xf32> to vector<8x1xf32>
    %422 = arith.subf %421, %386 : vector<8x1xf32>
    %423 = math.exp %422 : vector<8x1xf32>
    %424 = arith.addf %416, %423 : vector<8x1xf32>
    %425 = vector.extract_strided_slice %362 {offsets = [32, 0], sizes = [8, 32], strides = [1, 1]} : vector<64x32xf32> to vector<8x32xf32>
    %426 = vector.broadcast %423 : vector<8x1xf32> to vector<8x32xf32>
    %427 = arith.mulf %426, %425 : vector<8x32xf32>
    %428 = arith.addf %420, %427 : vector<8x32xf32>
    %429 = vector.extract_strided_slice %371 {offsets = [40, 0], sizes = [8, 1], strides = [1, 1]} : vector<64x1xf32> to vector<8x1xf32>
    %430 = arith.subf %429, %386 : vector<8x1xf32>
    %431 = math.exp %430 : vector<8x1xf32>
    %432 = arith.addf %424, %431 : vector<8x1xf32>
    %433 = vector.extract_strided_slice %362 {offsets = [40, 0], sizes = [8, 32], strides = [1, 1]} : vector<64x32xf32> to vector<8x32xf32>
    %434 = vector.broadcast %431 : vector<8x1xf32> to vector<8x32xf32>
    %435 = arith.mulf %434, %433 : vector<8x32xf32>
    %436 = arith.addf %428, %435 : vector<8x32xf32>
    %437 = vector.extract_strided_slice %371 {offsets = [48, 0], sizes = [8, 1], strides = [1, 1]} : vector<64x1xf32> to vector<8x1xf32>
    %438 = arith.subf %437, %386 : vector<8x1xf32>
    %439 = math.exp %438 : vector<8x1xf32>
    %440 = arith.addf %432, %439 : vector<8x1xf32>
    %441 = vector.extract_strided_slice %362 {offsets = [48, 0], sizes = [8, 32], strides = [1, 1]} : vector<64x32xf32> to vector<8x32xf32>
    %442 = vector.broadcast %439 : vector<8x1xf32> to vector<8x32xf32>
    %443 = arith.mulf %442, %441 : vector<8x32xf32>
    %444 = arith.addf %436, %443 : vector<8x32xf32>
    %445 = vector.extract_strided_slice %371 {offsets = [56, 0], sizes = [8, 1], strides = [1, 1]} : vector<64x1xf32> to vector<8x1xf32>
    %446 = arith.subf %445, %386 : vector<8x1xf32>
    %447 = math.exp %446 : vector<8x1xf32>
    %448 = arith.addf %440, %447 : vector<8x1xf32>
    %449 = vector.extract_strided_slice %362 {offsets = [56, 0], sizes = [8, 32], strides = [1, 1]} : vector<64x32xf32> to vector<8x32xf32>
    %450 = vector.broadcast %447 : vector<8x1xf32> to vector<8x32xf32>
    %451 = arith.mulf %450, %449 : vector<8x32xf32>
    %452 = arith.addf %444, %451 : vector<8x32xf32>
    %453 = tpu.reciprocal %448 {approx = true} : vector<8x1xf32> -> vector<8x1xf32>
    %454 = vector.broadcast %453 : vector<8x1xf32> to vector<8x32xf32>
    %455 = arith.mulf %452, %454 : vector<8x32xf32>
    %c0_99 = arith.constant 0 : index
    %c0_100 = arith.constant 0 : index
    %456 = vector.load %arg0[%c0_99, %c0_100] : memref<8x32xf32, #tpu.memory_space<vmem>>, vector<8x32xf32>
    %457 = vector.extract_strided_slice %456 {offsets = [0, 0], sizes = [8, 4], strides = [1, 1]} : vector<8x32xf32> to vector<8x4xf32>
    %458 = vector.extract_strided_slice %456 {offsets = [0, 4], sizes = [8, 4], strides = [1, 1]} : vector<8x32xf32> to vector<8x4xf32>
    %459 = arith.maximumf %457, %458 : vector<8x4xf32>
    %460 = vector.extract_strided_slice %456 {offsets = [0, 8], sizes = [8, 4], strides = [1, 1]} : vector<8x32xf32> to vector<8x4xf32>
    %461 = arith.maximumf %459, %460 : vector<8x4xf32>
    %462 = vector.extract_strided_slice %456 {offsets = [0, 12], sizes = [8, 4], strides = [1, 1]} : vector<8x32xf32> to vector<8x4xf32>
    %463 = arith.maximumf %461, %462 : vector<8x4xf32>
    %464 = vector.extract_strided_slice %456 {offsets = [0, 16], sizes = [8, 4], strides = [1, 1]} : vector<8x32xf32> to vector<8x4xf32>
    %465 = arith.maximumf %463, %464 : vector<8x4xf32>
    %466 = vector.extract_strided_slice %456 {offsets = [0, 20], sizes = [8, 4], strides = [1, 1]} : vector<8x32xf32> to vector<8x4xf32>
    %467 = arith.maximumf %465, %466 : vector<8x4xf32>
    %468 = vector.extract_strided_slice %456 {offsets = [0, 24], sizes = [8, 4], strides = [1, 1]} : vector<8x32xf32> to vector<8x4xf32>
    %469 = arith.maximumf %467, %468 : vector<8x4xf32>
    %470 = vector.extract_strided_slice %456 {offsets = [0, 28], sizes = [8, 4], strides = [1, 1]} : vector<8x32xf32> to vector<8x4xf32>
    %471 = arith.maximumf %469, %470 : vector<8x4xf32>
    %472 = tpu.concatenate %455, %471 in 1 : vector<8x32xf32>, vector<8x4xf32> -> vector<8x36xf32>
    %c0_101 = arith.constant 0 : index
    %c0_102 = arith.constant 0 : index
    %473 = vector.load %arg6[%c0_101, %c0_102] : memref<8x36xf32, #tpu.memory_space<vmem>>, vector<8x36xf32>
    tpu.vector_store %arg6[%c0_101, %c0_102], %472 {strides = array<i32>} : memref<8x36xf32, #tpu.memory_space<vmem>>, vector<8x36xf32>,
    return
  }
}

</mosaic_0001>

<bundles_post_ra>
// kernel: attentional_lstm_pool_pallas.1
= control target key start
LH: loop header
LB: loop body
LE: loop exit
PB: predicated region body
PF: predicated region fallthrough
CT: control target
= control target key end

     0   :  { %12 = vsyncpa [#allocation6], 0  ;;  %s5363_s0 = inlined_call_operand.vmem [shape: f32[8,32], index: 0, kind: input, shape index: {}]   ;;  %s5364_s1 = inlined_call_operand.hbm [shape: f32[32,3072], index: 1, kind: input, shape index: {}]   ;;  %s5365_s2 = inlined_call_operand.hbm [shape: f32[96,384], index: 2, kind: input, shape index: {}]   ;;  %s5366_s3 = inlined_call_operand.vmem [shape: f32[1,3072], index: 3, kind: input, shape index: {}]   ;;  %s5367_s4 = inlined_call_operand.vmem [shape: f32[1,32], index: 4, kind: input, shape index: {}]   ;;  %s5368_s5 = inlined_call_operand.<no memory space> [shape: f32[1], index: 5, kind: input, shape index: {}]   ;;  %s5369_s6 = inlined_call_operand.vmem [shape: f32[8,36], index: 6, kind: output, shape index: {}]  }
   0x1   :  { %13 = vsyncpa [#allocation8], 0  ;;  %s4195_s21 = smov [#allocation5]  }
   0x2   :  { %s21_s22 = sshll.u32 %s4195_s21, 4  ;;  %s22_s22 = int_to_ptr.vmem [resolvable:$true] %s21_s22 }
   0x3   :  { %s4159_s23 = scalar_lea.vmem %s22_s22, 12288  ;;  %p4164_p1 = scmp.lt.s32.totalorder %s22_s22, %s22_s22 }
   0x4   :  { %p4160_p0 = scmp.ne.s32.totalorder %s22_s22, %s4159_s23  ;;  %p4165_p2 = scmp.lt.s32.totalorder %s4159_s23, %s4159_s23 }
   0x6   :  { %p4166_p3 = por %p4165_p2, %p4164_p1 }
   0x8   :  { %p4167_p4 = pnand %p4166_p3, %p4160_p0 }
   0xa   :  { %4170 = shalt.err (!%p4167_p4)
}
   0xb   :  { %s4196_s24 = smov 3072   ;;  %s4197_s25 = smov 192  }
   0xc   :  { %27 = dma.hbm_to_vmem [thread:$0]  %s5364_s1, 12288, %s22_s22, [#allocation6], %s4196_s24, %s4196_s24, %s4197_s25  }
   0xd   :  { %s4198_s28 = smov [#allocation7]  }
   0xe   :  { %s33_s29 = sshll.u32 %s4198_s28, 4  ;;  %s34_s29 = int_to_ptr.vmem [resolvable:$true] %s33_s29 }
   0xf   :  { %s4179_s30 = scalar_lea.vmem %s34_s29, 4608  ;;  %p4184_p6 = scmp.lt.s32.totalorder %s34_s29, %s34_s29 }
  0x10   :  { %p4180_p5 = scmp.ne.s32.totalorder %s34_s29, %s4179_s30  ;;  %p4185_p7 = scmp.lt.s32.totalorder %s4179_s30, %s4179_s30 }
  0x12   :  { %p4186_p8 = por %p4185_p7, %p4184_p6 }
  0x14   :  { %p4187_p9 = pnand %p4186_p8, %p4180_p5 }
  0x16   :  { %4190 = shalt.err (!%p4187_p9)
}
  0x17   :  { %s4199_s7 = smov 384   ;;  %s4200_s8 = smov 24  }
  0x18   :  { %39 = dma.hbm_to_vmem [thread:$0]  %s5365_s2, 4608, %s34_s29, [#allocation8], %s4199_s7, %s4199_s7, %s4200_s8  }
  0x19   :  { %4191 = dma.done.wait [#allocation6], 12288  }
  0x1a   :  { %4192 = vsyncadd [#allocation6], 4294955008 }
  0x1b   :  { %4193 = dma.done.wait [#allocation8], 4608  }
  0x1c   :  { %4194 = vsyncadd [#allocation8], 4294962688  ;;  %v5373_v0 = vmov 0.0   ;;  %v130_v1 = vld [vmem:[#allocation5 + $0x268] sm:$0xff]  ;;  %v129_v2 = vld [vmem:[#allocation5 + $0x260] sm:$0xff]  ;;  %vm275_vm0 = vcmask 261120  }
  0x1d   :  { %485 = vmatprep.mubr.f32.mxu0 %v5373_v0  ;;  %343 = vmatprep.mubr.f32.mxu1 %v5373_v0  ;;  %v106_v3 = vld [vmem:[#allocation5 + $0x1a8] sm:$0xff]  ;;  %v105_v4 = vld [vmem:[#allocation5 + $0x1a0] sm:$0xff]  ;;  %v4276_v50 = vld [vmem:[#allocation7 + $0x110] sm:$0xff]  ;;  %s4202_s17 = smov 64   ;;  %s4203_s18 = smov 32   ;;  %vm1295_vm1 = vcmask 523264  }
  0x1e   :  { %445 = vmatprep.subr.mxu0 %v130_v1  ;;  %v82_v5 = vld [vmem:[#allocation5 + $0xe8] sm:$0xff]  ;;  %v81_v6 = vld [vmem:[#allocation5 + $0xe0] sm:$0xff]  ;;  %v4280_v52 = vld [vmem:[#allocation7 + $0xf8] sm:$0xff]  ;;  %vm1192_vm2 = vcmask 785408   ;;  %vm4204_vm3 = vmmov 0   ;;  %s4205_s19 = smov 96  }
  0x1f   :  { %446 = vmatpush1.msra.mxu0 %v129_v2  ;;  %v58_v7 = vld [vmem:[#allocation5 + $0x28] sm:$0xff]  ;;  %v57_v8 = vld [vmem:[#allocation5 + $0x20] sm:$0xff]  ;;  %v4285_v53 = vld [vmem:[#allocation7 + $0xf0] sm:$0xff]  ;;  %s4206_s26 = smov 120   ;;  %s4207_s27 = smov 116   ;;  %vm3548_vm4 = vcmask 293888  }
  0x20   :  { %447 = vmatprep.subr.mxu0 %v106_v3  ;;  %v4259_v9 = vld [vmem:[%s5363_s0] sm:$0xff]  ;;  %v134_v10 = vld [vmem:[#allocation5 + $0x288] sm:$0xff]  ;;  %v4292_v55 = vld [vmem:[#allocation7 + $0xd8] sm:$0xff]  ;;  %s4208_s29 = smov 124   ;;  %s4209_s30 = smov 112  }
  0x21   :  { %448 = vmatpush1.msra.mxu0 %v105_v4  ;;  %v133_v11 = vld [vmem:[#allocation5 + $0x280] sm:$0xff]  ;;  %v110_v12 = vld [vmem:[#allocation5 + $0x1c8] sm:$0xff]  ;;  %v4301_v58 = vld [vmem:[#allocation7 + $0xb0] sm:$0xff]  ;;  %s4211_s7 = smov 100   ;;  %s4212_s8 = smov 108  }
  0x22   :  { %449 = vmatprep.subr.mxu0 %v82_v5  ;;  %v109_v13 = vld [vmem:[#allocation5 + $0x1c0] sm:$0xff]  ;;  %v86_v14 = vld [vmem:[#allocation5 + $0x108] sm:$0xff]  ;;  %v4307_v60 = vld [vmem:[#allocation7 + $0x98] sm:$0xff] }
  0x23   :  { %450 = vmatpush1.msra.mxu0 %v81_v6  ;;  %v85_v15 = vld [vmem:[#allocation5 + $0x100] sm:$0xff]  ;;  %v62_v16 = vld [vmem:[#allocation5 + $0x48] sm:$0xff]  ;;  %v4310_v61 = vld [vmem:[#allocation7 + $0x90] sm:$0xff] }
  0x24   :  { %451 = vmatprep.subr.mxu0 %v58_v7  ;;  %v61_v17 = vld [vmem:[#allocation5 + $0x40] sm:$0xff]  ;;  %v138_v18 = vld [vmem:[#allocation5 + $0x2a8] sm:$0xff]  ;;  %v4316_v63 = vld [vmem:[#allocation7 + $0x78] sm:$0xff] }
  0x25   :  { %452 = vmatpush1.msra.mxu0 %v57_v8  ;;  %v137_v19 = vld [vmem:[#allocation5 + $0x2a0] sm:$0xff]  ;;  %v114_v20 = vld [vmem:[#allocation5 + $0x1e8] sm:$0xff]  ;;  %v4325_v3 = vld [vmem:[#allocation7 + $0x50] sm:$0xff] }
  0x26   :  { %3558 = vmatmul.mubr.msk.f32.vlgmr.msra.gmra.mxu0 %vm275_vm0, %v4259_v9  ;;  %587 = vmatprep.subr.mxu0 %v134_v10  ;;  %v113_v21 = vld [vmem:[#allocation5 + $0x1e0] sm:$0xff]  ;;  %v126_v22 = vld [vmem:[#allocation5 + $0x248] sm:$0xff]  ;;  %v4331_v5 = vld [vmem:[#allocation7 + $0x38] sm:$0xff] }
  0x27   :  { %588 = vmatpush1.msra.mxu0 %v133_v11  ;;  %627 = vmatprep.mubr.f32.mxu0 %v5373_v0  ;;  %v90_v23 = vld [vmem:[#allocation5 + $0x128] sm:$0xff]  ;;  %v125_v24 = vld [vmem:[#allocation5 + $0x240] sm:$0xff]  ;;  %v4334_v6 = vld [vmem:[#allocation7 + $0x30] sm:$0xff] }
  0x28   :  { %589 = vmatprep.subr.mxu0 %v110_v12  ;;  %v89_v25 = vld [vmem:[#allocation5 + $0x120] sm:$0xff]  ;;  %303 = vmatprep.subr.mxu1 %v126_v22  ;;  %v102_v26 = vld [vmem:[#allocation5 + $0x188] sm:$0xff]  ;;  %v4340_v8 = vld [vmem:[#allocation7 + $0x18] sm:$0xff]  ;;  %v155_v12 = vlaneseq }
  0x29   :  { %590 = vmatpush1.msra.mxu0 %v109_v13  ;;  %v101_v27 = vld [vmem:[#allocation5 + $0x180] sm:$0xff]  ;;  %v66_v28 = vld [vmem:[#allocation5 + $0x68] sm:$0xff]  ;;  %304 = vmatpush1.msra.mxu1 %v125_v24 }
  0x2a   :  { %591 = vmatprep.subr.mxu0 %v86_v14  ;;  %v78_v29 = vld [vmem:[#allocation5 + $0xc8] sm:$0xff]  ;;  %v65_v30 = vld [vmem:[#allocation5 + $0x60] sm:$0xff]  ;;  %305 = vmatprep.subr.mxu1 %v102_v26  ;;  %v4378_v13 = vshrl.u32 %v155_v12, 7 }
  0x2b   :  { %592 = vmatpush1.msra.mxu0 %v85_v15  ;;  %v77_v31 = vld [vmem:[#allocation5 + $0xc0] sm:$0xff]  ;;  %v142_v32 = vld [vmem:[#allocation5 + $0x2c8] sm:$0xff]  ;;  %306 = vmatpush1.msra.mxu1 %v101_v27 }
  0x2c   :  { %593 = vmatprep.subr.mxu0 %v62_v16  ;;  %v141_v33 = vld [vmem:[#allocation5 + $0x2c0] sm:$0xff]  ;;  %307 = vmatprep.subr.mxu1 %v78_v29  ;;  %v118_v34 = vld [vmem:[#allocation5 + $0x208] sm:$0xff]  ;;  %v157_v15 = vsub.s32 0, %v4378_v13 }
  0x2d   :  { %594 = vmatpush1.msra.mxu0 %v61_v17  ;;  %308 = vmatpush1.msra.mxu1 %v77_v31  ;;  %v54_v35 = vld [vmem:[#allocation5 + $0x8] sm:$0xff]  ;;  %v117_v36 = vld [vmem:[#allocation5 + $0x200] sm:$0xff] }
  0x2e   :  { %3560 = vmatmul.mubr.msk.f32.vlgmr.msra.gmra.mxu0 %vm275_vm0, %v4259_v9  ;;  %729 = vmatprep.subr.mxu0 %v138_v18  ;;  %v53_v37 = vld [vmem:[#allocation5] sm:$0xff]  ;;  %v94_v38 = vld [vmem:[#allocation5 + $0x148] sm:$0xff] }
  0x2f   :  { %730 = vmatpush1.msra.mxu0 %v137_v19  ;;  %769 = vmatprep.mubr.f32.mxu0 %v5373_v0  ;;  %v93_v39 = vld [vmem:[#allocation5 + $0x140] sm:$0xff]  ;;  %v70_v40 = vld [vmem:[#allocation5 + $0x88] sm:$0xff] }
  0x30   :  { %731 = vmatprep.subr.mxu0 %v114_v20  ;;  %309 = vmatprep.subr.mxu1 %v54_v35  ;;  %v69_v41 = vld [vmem:[#allocation5 + $0x80] sm:$0xff]  ;;  %v146_v42 = vld [vmem:[#allocation5 + $0x2e8] sm:$0xff] }
  0x31   :  { %732 = vmatpush1.msra.mxu0 %v113_v21  ;;  %310 = vmatpush1.msra.mxu1 %v53_v37  ;;  %v145_v43 = vld [vmem:[#allocation5 + $0x2e0] sm:$0xff]  ;;  %v122_v44 = vld [vmem:[#allocation5 + $0x228] sm:$0xff] }
  0x32   :  { %733 = vmatprep.subr.mxu0 %v90_v23  ;;  %3556 = vmatmul.mubr.msk.f32.vlgmr.msra.gmra.mxu1 %vm275_vm0, %v4259_v9  ;;  %v121_v45 = vld [vmem:[#allocation5 + $0x220] sm:$0xff]  ;;  %v98_v46 = vld [vmem:[#allocation5 + $0x168] sm:$0xff]  ;;  %v4398_v23 = vld [vmem:[%s5366_s3 + $0x10] sm:$0xff] }
  0x33   :  { %734 = vmatpush1.msra.mxu0 %v89_v25  ;;  %414 = vmatprep.mubr.f32.mxu1 %v5373_v0  ;;  %v97_v47 = vld [vmem:[#allocation5 + $0x160] sm:$0xff]  ;;  %v74_v48 = vld [vmem:[#allocation5 + $0xa8] sm:$0xff]  ;;  %v5372_v25 = vsub.s32 1, %v4378_v13  ;;  %v222_v26 = vrot.slane %v4398_v23, %v157_v15 }
  0x34   :  { %735 = vmatprep.subr.mxu0 %v66_v28  ;;  %v73_v49 = vld [vmem:[#allocation5 + $0xa0] sm:$0xff]  ;;  %v4278_v51 = vld [vmem:[#allocation7 + $0x108] sm:$0xff] }
  0x35   :  { %736 = vmatpush1.msra.mxu0 %v65_v30  ;;  %v4288_v54 = vld [vmem:[#allocation7 + $0xe0] sm:$0xff]  ;;  %v4295_v56 = vld [vmem:[#allocation7 + $0xc8] sm:$0xff]  ;;  %v226_v29 = vrot.slane %v4398_v23, %v5372_v25 }
  0x36   :  { %3562 = vmatmul.mubr.msk.f32.vlgmr.msra.gmra.mxu0 %vm275_vm0, %v4259_v9  ;;  %871 = vmatprep.subr.mxu0 %v142_v32  ;;  %v4298_v57 = vld [vmem:[#allocation7 + $0xc0] sm:$0xff]  ;;  %v4304_v59 = vld [vmem:[#allocation7 + $0xa8] sm:$0xff] }
  0x37   :  { %872 = vmatpush1.msra.mxu0 %v141_v33  ;;  %911 = vmatprep.mubr.f32.mxu0 %v5373_v0  ;;  %v4313_v62 = vld [vmem:[#allocation7 + $0x80] sm:$0xff]  ;;  %v4319_v1 = vld [vmem:[#allocation7 + $0x68] sm:$0xff] }
  0x38   :  { %873 = vmatprep.subr.mxu0 %v118_v34  ;;  %v4322_v2 = vld [vmem:[#allocation7 + $0x60] sm:$0xff]  ;;  %v4328_v4 = vld [vmem:[#allocation7 + $0x48] sm:$0xff]  ;;  %v5370_v34 = vsub.s32 5, %v4378_v13 }
  0x39   :  { %874 = vmatpush1.msra.mxu0 %v117_v36  ;;  %v4337_v7 = vld [vmem:[#allocation7 + $0x20] sm:$0xff]  ;;  %v4343_v10 = vld [vmem:[#allocation7 + $0x8] sm:$0xff] }
  0x3a   :  { %875 = vmatprep.subr.mxu0 %v94_v38  ;;  %v4346_v11 = vld [vmem:[#allocation7] sm:$0xff]  ;;  %v4386_v17 = vld [vmem:[%s5366_s3 + $0x8] sm:$0xff]  ;;  %v242_v35 = vrot.slane %v4398_v23, %v5370_v34 }
  0x3b   :  { %876 = vmatpush1.msra.mxu0 %v93_v39  ;;  %v190_v18 = vrot.slane %v4386_v17, %v157_v15  ;;  %v4422_v39 = vld [vmem:[%s5366_s3] sm:$0xff] }
  0x3c   :  { %877 = vmatprep.subr.mxu0 %v70_v40  ;;  %v158_v40 = vrot.slane %v4422_v39, %v157_v15 }
  0x3d   :  { %878 = vmatpush1.msra.mxu0 %v69_v41 }
  0x3e   :  { %3564 = vmatmul.mubr.msk.f32.vlgmr.msra.gmra.mxu0 %vm275_vm0, %v4259_v9  ;;  %1013 = vmatprep.subr.mxu0 %v146_v42 }
  0x3f   :  { %1014 = vmatpush1.msra.mxu0 %v145_v43  ;;  %1053 = vmatprep.mubr.f32.mxu0 %v5373_v0 }
  0x40   :  { %1015 = vmatprep.subr.mxu0 %v122_v44 }
  0x41   :  { %1016 = vmatpush1.msra.mxu0 %v121_v45 }
  0x42   :  { %1017 = vmatprep.subr.mxu0 %v98_v46 }
  0x43   :  { %1018 = vmatpush1.msra.mxu0 %v97_v47 }
  0x44   :  { %1019 = vmatprep.subr.mxu0 %v74_v48 }
  0x45   :  { %1020 = vmatpush1.msra.mxu0 %v73_v49 }
  0x46   :  { %3566 = vmatmul.mubr.msk.f32.vlgmr.msra.gmra.mxu0 %vm275_vm0, %v4259_v9  ;;  %1204 = vmatprep.subr.mxu0 %v4276_v50 }
  0x47   :  { %1205 = vmatpush1.msra.mxu0 %v4278_v51  ;;  %1260 = vmatprep.mubr.f32.mxu0 %v5373_v0 }
  0x48   :  { %1206 = vmatprep.subr.mxu0 %v4280_v52 }
  0x49   :  { %1207 = vmatpush1.msra.mxu0 %v4285_v53 }
  0x4a   :  { %1208 = vmatprep.subr.mxu0 %v4288_v54 }
  0x4b   :  { %1209 = vmatpush1.msra.mxu0 %v4292_v55 }
  0x4c   :  { %1210 = vmatprep.subr.mxu0 %v4295_v56 }
  0x4d   :  { %1211 = vmatpush1.msra.mxu0 %v4298_v57 }
  0x4e   :  { %1212 = vmatprep.subr.mxu0 %v4301_v58 }
  0x4f   :  { %1213 = vmatpush1.msra.mxu0 %v4304_v59 }
  0x50   :  { %1214 = vmatprep.subr.mxu0 %v4307_v60 }
  0x51   :  { %1215 = vmatpush1.msra.mxu0 %v4310_v61 }
  0x52   :  { %1216 = vmatprep.subr.mxu0 %v4313_v62 }
  0x53   :  { %1217 = vmatpush1.msra.mxu0 %v4316_v63 }
  0x54   :  { %1218 = vmatprep.subr.mxu0 %v4319_v1 }
  0x55   :  { %1219 = vmatpush1.msra.mxu0 %v4322_v2 }
  0x56   :  { %1220 = vmatprep.subr.mxu0 %v4325_v3 }
  0x57   :  { %1221 = vmatpush1.msra.mxu0 %v4328_v4 }
  0x58   :  { %1222 = vmatprep.subr.mxu0 %v4331_v5 }
  0x59   :  { %1223 = vmatpush1.msra.mxu0 %v4334_v6 }
  0x5a   :  { %1224 = vmatprep.subr.mxu0 %v4337_v7 }
  0x5b   :  { %1225 = vmatpush1.msra.mxu0 %v4340_v8 }
  0x5c   :  { %1226 = vmatprep.subr.mxu0 %v4343_v10 }
  0x5d   :  { %1227 = vmatpush1.msra.mxu0 %v4346_v11 }
  0x5e   :  { %1261 = vmatmul.mubr.f32.vlgmr.msra.gmra.mxu0 %v5373_v0  ;;  %1445 = vmatprep.subr.mxu0 %v4276_v50 }
  0x5f   :  { %1446 = vmatpush1.msra.mxu0 %v4278_v51  ;;  %1501 = vmatprep.mubr.f32.mxu0 %v5373_v0 }
  0x60   :  { %1447 = vmatprep.subr.mxu0 %v4280_v52 }
  0x61   :  { %1448 = vmatpush1.msra.mxu0 %v4285_v53 }
  0x62   :  { %1449 = vmatprep.subr.mxu0 %v4288_v54 }
  0x63   :  { %1450 = vmatpush1.msra.mxu0 %v4292_v55 }
  0x64   :  { %1451 = vmatprep.subr.mxu0 %v4295_v56 }
  0x65   :  { %1452 = vmatpush1.msra.mxu0 %v4298_v57 }
  0x66   :  { %1453 = vmatprep.subr.mxu0 %v4301_v58 }
  0x67   :  { %1454 = vmatpush1.msra.mxu0 %v4304_v59 }
  0x68   :  { %1455 = vmatprep.subr.mxu0 %v4307_v60 }
  0x69   :  { %1456 = vmatpush1.msra.mxu0 %v4310_v61 }
  0x6a   :  { %1457 = vmatprep.subr.mxu0 %v4313_v62 }
  0x6b   :  { %1458 = vmatpush1.msra.mxu0 %v4316_v63 }
  0x6c   :  { %1459 = vmatprep.subr.mxu0 %v4319_v1 }
  0x6d   :  { %1460 = vmatpush1.msra.mxu0 %v4322_v2 }
  0x6e   :  { %1461 = vmatprep.subr.mxu0 %v4325_v3 }
  0x6f   :  { %1462 = vmatpush1.msra.mxu0 %v4328_v4 }
  0x70   :  { %1463 = vmatprep.subr.mxu0 %v4331_v5 }
  0x71   :  { %1464 = vmatpush1.msra.mxu0 %v4334_v6 }
  0x72   :  { %1465 = vmatprep.subr.mxu0 %v4337_v7 }
  0x73   :  { %1466 = vmatpush1.msra.mxu0 %v4340_v8 }
  0x74   :  { %1467 = vmatprep.subr.mxu0 %v4343_v10 }
  0x75   :  { %1468 = vmatpush1.msra.mxu0 %v4346_v11 }
  0x76   :  { %1718 = vmatprep.subr.mxu0 %v4276_v50 }
  0xe6   :  { %v4380_v14 = vpop.f32.mrf.mxu0 }
  0xe8   :  { %v489_v16 = vpop.f32.mrf.mxu0 }
  0xee   :  { %v629_v19 = vpop.f32.mrf.mxu0 }
  0xef   :  { %v4389_v20 = vadd.f32 %v629_v19, %v190_v18 }
  0xf0   :  { %v4391_v21 = vpop.f32.mrf.mxu0 }
  0xf2   :  { %v345_v24 = vpop.f32.mrf.mxu1 }
  0xf3   :  { %v346_v41 = vadd.f32 %v345_v24, %v158_v40  ;;  %v55_v40 = vld [vmem:[#allocation5 + $0x10] sm:$0xff] }
  0xf4   :  { %v347_v28 = vpop.f32.mrf.mxu1 }
  0xf5   :  { %v127_v28 = vld [vmem:[#allocation5 + $0x250] sm:$0xff] }
  0xf6   :  { %v4393_v22 = vpop.f32.mrf.mxu0 }
  0xf8   :  { %v4402_v27 = vpop.f32.mrf.mxu0 }
  0xfe   :  { %v913_v30 = vpop.f32.mrf.mxu0 }
  0xff   :  { %v4407_v31 = vadd.f32 %v913_v30, %v222_v26  ;;  %v128_v26 = vld [vmem:[#allocation5 + $0x258] sm:$0xff]  ;;  %v103_v30 = vld [vmem:[#allocation5 + $0x190] sm:$0xff] }
 0x100   :  { %v915_v32 = vpop.f32.mrf.mxu0  ;;  %374 = vmatprep.subr.mxu1 %v128_v26  ;;  %v88_v26 = vld [vmem:[#allocation5 + $0x118] sm:$0xff] }
 0x101   :  { %5376 = vst [vmem:[#allocation11_spill] sm:$0xff] %v4407_v31  ;;  %v4409_v33 = vadd.f32 %v915_v32, %v226_v29  ;;  %v104_v29 = vld [vmem:[#allocation5 + $0x198] sm:$0xff]  ;;  %375 = vmatpush1.msra.mxu1 %v127_v28  ;;  %v87_v28 = vld [vmem:[#allocation5 + $0x110] sm:$0xff] }
 0x102   :  { %v80_v32 = vld [vmem:[#allocation5 + $0xd8] sm:$0xff]  ;;  %376 = vmatprep.subr.mxu1 %v104_v29 }
 0x103   :  { %5377 = vst [vmem:[#allocation12_spill] sm:$0xff] %v4409_v33  ;;  %377 = vmatpush1.msra.mxu1 %v103_v30  ;;  %v64_v29 = vld [vmem:[#allocation5 + $0x58] sm:$0xff]  ;;  %v63_v30 = vld [vmem:[#allocation5 + $0x50] sm:$0xff] }
 0x104   :  { %378 = vmatprep.subr.mxu1 %v80_v32  ;;  %v140_v32 = vld [vmem:[#allocation5 + $0x2b8] sm:$0xff] }
 0x106   :  { %v4415_v36 = vpop.f32.mrf.mxu0 }
 0x107   :  { %5378 = vst [vmem:[#allocation13_spill] sm:$0xff] %v4415_v36 }
 0x108   :  { %v1057_v37 = vpop.f32.mrf.mxu0 }
 0x109   :  { %v4417_v38 = vadd.f32 %v1057_v37, %v242_v35  ;;  %v79_v35 = vld [vmem:[#allocation5 + $0xd0] sm:$0xff]  ;;  %v56_v37 = vld [vmem:[#allocation5 + $0x18] sm:$0xff] }
 0x10a   :  { %379 = vmatpush1.msra.mxu1 %v79_v35  ;;  %v139_v35 = vld [vmem:[#allocation5 + $0x2b0] sm:$0xff] }
 0x10b   :  { %5379 = vst [vmem:[#allocation14_spill] sm:$0xff] %v4417_v38  ;;  %380 = vmatprep.subr.mxu1 %v56_v37  ;;  %v116_v37 = vld [vmem:[#allocation5 + $0x1f8] sm:$0xff] }
 0x10c   :  { %381 = vmatpush1.msra.mxu1 %v55_v40  ;;  %v115_v40 = vld [vmem:[#allocation5 + $0x1f0] sm:$0xff] }
 0x10d   :  { %3557 = vmatmul.mubr.msk.f32.vlgmr.msra.gmra.mxu1 %vm275_vm0, %v4259_v9 }
 0x10e   :  { %556 = vmatprep.mubr.f32.mxu1 %v5373_v0 }
 0x11e   :  { %v1262_v42 = vpop.f32.mrf.mxu0 }
 0x11f   :  { %v1263_v43 = vadd.f32 %v1262_v42, %v346_v41  ;;  %v132_v41 = vld [vmem:[#allocation5 + $0x278] sm:$0xff]  ;;  %v131_v42 = vld [vmem:[#allocation5 + $0x270] sm:$0xff] }
 0x120   :  { %v1264_v44 = vpop.f32.mrf.mxu0  ;;  %516 = vmatprep.subr.mxu1 %v132_v41  ;;  %v92_v41 = vld [vmem:[#allocation5 + $0x138] sm:$0xff] }
 0x121   :  { %3923 = vtanh.f32 %v1263_v43  ;;  %v1266_v46 = vsub.f32 0.0, %v1263_v43  ;;  %v108_v43 = vld [vmem:[#allocation5 + $0x1b8] sm:$0xff]  ;;  %v107_v44 = vld [vmem:[#allocation5 + $0x1b0] sm:$0xff]  ;;  %517 = vmatpush1.msra.mxu1 %v131_v42 }
 0x122   :  { %518 = vmatprep.subr.mxu1 %v108_v43  ;;  %v91_v42 = vld [vmem:[#allocation5 + $0x130] sm:$0xff]  ;;  %v68_v43 = vld [vmem:[#allocation5 + $0x78] sm:$0xff] }
 0x123   :  { %v1267_v47 = vmul.f32 1.442695, %v1266_v46  ;;  %v84_v46 = vld [vmem:[#allocation5 + $0xf8] sm:$0xff]  ;;  %519 = vmatpush1.msra.mxu1 %v107_v44  ;;  %v67_v44 = vld [vmem:[#allocation5 + $0x70] sm:$0xff] }
 0x124   :  { %520 = vmatprep.subr.mxu1 %v84_v46  ;;  %v143_v46 = vld [vmem:[#allocation5 + $0x2d0] sm:$0xff] }
 0x125   :  { %3925 = vpow2.f32 %v1267_v47  ;;  %v83_v47 = vld [vmem:[#allocation5 + $0xf0] sm:$0xff] }
 0x126   :  { %521 = vmatpush1.msra.mxu1 %v83_v47  ;;  %v120_v47 = vld [vmem:[#allocation5 + $0x218] sm:$0xff] }
 0x12e   :  { %v3924_v45 = vpop.eup %3923 }
 0x12f   :  { %1275 = vrot.lane.b32.xlu0 %v3924_v45, %s4202_s17 }
 0x132   :  { %v3926_v48 = vpop.eup %3925 }
 0x133   :  { %v1269_v49 = vadd.f32 1.0, %v3926_v48  ;;  %v60_v48 = vld [vmem:[#allocation5 + $0x38] sm:$0xff] }
 0x134   :  { %522 = vmatprep.subr.mxu1 %v60_v48  ;;  %v119_v48 = vld [vmem:[#allocation5 + $0x210] sm:$0xff] }
 0x135   :  { %3927 = vrcp.f32 %v1269_v49  ;;  %v59_v49 = vld [vmem:[#allocation5 + $0x30] sm:$0xff] }
 0x136   :  { %523 = vmatpush1.msra.mxu1 %v59_v49  ;;  %v96_v49 = vld [vmem:[#allocation5 + $0x158] sm:$0xff] }
 0x137   :  { %3559 = vmatmul.mubr.msk.f32.vlgmr.msra.gmra.mxu1 %vm275_vm0, %v4259_v9 }
 0x138   :  { %698 = vmatprep.mubr.f32.mxu1 %v5373_v0 }
 0x142   :  { %v4426_v12 = vpop.eup %3927 }
 0x143   :  { %v1273_v18 = vmul.f32 0.0, %v4426_v12 }
 0x1a1   :  { %v1276_v16 = vpop.permute.xlu0 %1275 }
 0x1a2   :  { %v1278_v15 = vmul.f32 %v4426_v12, %v1276_v16  ;;  %v136_v16 = vld [vmem:[#allocation5 + $0x298] sm:$0xff] }
 0x1a3   :  { %658 = vmatprep.subr.mxu1 %v136_v16  ;;  %v95_v16 = vld [vmem:[#allocation5 + $0x150] sm:$0xff] }
 0x1a4   :  { %1280 = vrot.lane.b32.xlu0 %v1278_v15, %s4203_s18  ;;  %v135_v15 = vld [vmem:[#allocation5 + $0x290] sm:$0xff] }
 0x1a5   :  { %659 = vmatpush1.msra.mxu1 %v135_v15  ;;  %v72_v15 = vld [vmem:[#allocation5 + $0x98] sm:$0xff] }
 0x216   :  { %v1281_v19 = vpop.permute.xlu0 %1280 }
 0x217   :  { %v4431_v24 = vadd.f32 %v1281_v19, %v1273_v18  ;;  %v112_v18 = vld [vmem:[#allocation5 + $0x1d8] sm:$0xff]  ;;  %v111_v19 = vld [vmem:[#allocation5 + $0x1d0] sm:$0xff] }
 0x218   :  { %660 = vmatprep.subr.mxu1 %v112_v18  ;;  %v71_v18 = vld [vmem:[#allocation5 + $0x90] sm:$0xff] }
 0x219   :  { %3929 = vtanh.f32 %v4431_v24  ;;  %661 = vmatpush1.msra.mxu1 %v111_v19  ;;  %v148_v19 = vld [vmem:[#allocation5 + $0x2f8] sm:$0xff] }
 0x21a   :  { %662 = vmatprep.subr.mxu1 %v88_v26  ;;  %v147_v26 = vld [vmem:[#allocation5 + $0x2f0] sm:$0xff] }
 0x21b   :  { %663 = vmatpush1.msra.mxu1 %v87_v28  ;;  %v124_v28 = vld [vmem:[#allocation5 + $0x238] sm:$0xff] }
 0x21c   :  { %664 = vmatprep.subr.mxu1 %v64_v29  ;;  %v123_v29 = vld [vmem:[#allocation5 + $0x230] sm:$0xff] }
 0x21d   :  { %665 = vmatpush1.msra.mxu1 %v63_v30  ;;  %v100_v30 = vld [vmem:[#allocation5 + $0x178] sm:$0xff] }
 0x21e   :  { %3561 = vmatmul.mubr.msk.f32.vlgmr.msra.gmra.mxu1 %vm275_vm0, %v4259_v9  ;;  %800 = vmatprep.subr.mxu1 %v140_v32  ;;  %v99_v32 = vld [vmem:[#allocation5 + $0x170] sm:$0xff] }
 0x21f   :  { %801 = vmatpush1.msra.mxu1 %v139_v35  ;;  %840 = vmatprep.mubr.f32.mxu1 %v5373_v0  ;;  %v76_v35 = vld [vmem:[#allocation5 + $0xb8] sm:$0xff] }
 0x220   :  { %802 = vmatprep.subr.mxu1 %v116_v37  ;;  %v75_v37 = vld [vmem:[#allocation5 + $0xb0] sm:$0xff] }
 0x221   :  { %803 = vmatpush1.msra.mxu1 %v115_v40  ;;  %v416_v40 = vpop.f32.mrf.mxu1 }
 0x222   :  { %804 = vmatprep.subr.mxu1 %v92_v41 }
 0x223   :  { %805 = vmatpush1.msra.mxu1 %v91_v42  ;;  %v418_v41 = vpop.f32.mrf.mxu1 }
 0x224   :  { %806 = vmatprep.subr.mxu1 %v68_v43  ;;  %v169_v43 = vsub.s32 3, %v4378_v13 }
 0x225   :  { %807 = vmatpush1.msra.mxu1 %v67_v44  ;;  %v4480_v42 = vpop.f32.mrf.mxu1 }
 0x226   :  { %v3930_v45 = vpop.eup %3929  ;;  %3563 = vmatmul.mubr.msk.f32.vlgmr.msra.gmra.mxu1 %vm275_vm0, %v4259_v9 }
 0x227   :  { %1286 = vrot.lane.b32.xlu1 %v3930_v45, %s4202_s17  ;;  %v144_v45 = vld [vmem:[#allocation5 + $0x2d8] sm:$0xff]  ;;  %982 = vmatprep.mubr.f32.mxu1 %v5373_v0  ;;  %v4483_v44 = vpop.f32.mrf.mxu1 }
 0x228   :  { %942 = vmatprep.subr.mxu1 %v144_v45  ;;  %v202_v45 = vrot.slane %v4386_v17, %v169_v43 }
 0x229   :  { %943 = vmatpush1.msra.mxu1 %v143_v46 }
 0x22a   :  { %944 = vmatprep.subr.mxu1 %v120_v47 }
 0x22b   :  { %945 = vmatpush1.msra.mxu1 %v119_v48  ;;  %v4489_v48 = vsub.s32 6, %v4378_v13 }
 0x22c   :  { %946 = vmatprep.subr.mxu1 %v96_v49 }
 0x22d   :  { %947 = vmatpush1.msra.mxu1 %v95_v16  ;;  %v214_v16 = vrot.slane %v4386_v17, %v4489_v48  ;;  %v246_v40 = vrot.slane %v4398_v23, %v4489_v48 }
 0x22e   :  { %948 = vmatprep.subr.mxu1 %v72_v15 }
 0x22f   :  { %949 = vmatpush1.msra.mxu1 %v71_v18 }
 0x230   :  { %3565 = vmatmul.mubr.msk.f32.vlgmr.msra.gmra.mxu1 %vm275_vm0, %v4259_v9  ;;  %1084 = vmatprep.subr.mxu1 %v148_v19 }
 0x231   :  { %1085 = vmatpush1.msra.mxu1 %v147_v26  ;;  %1124 = vmatprep.mubr.f32.mxu1 %v5373_v0 }
 0x232   :  { %1086 = vmatprep.subr.mxu1 %v124_v28  ;;  %v5371_v28 = vsub.s32 2, %v4378_v13 }
 0x233   :  { %1087 = vmatpush1.msra.mxu1 %v123_v29 }
 0x234   :  { %1088 = vmatprep.subr.mxu1 %v100_v30  ;;  %v230_v30 = vrot.slane %v4398_v23, %v5371_v28 }
 0x235   :  { %1089 = vmatpush1.msra.mxu1 %v99_v32  ;;  %v234_v32 = vrot.slane %v4398_v23, %v169_v43 }
 0x236   :  { %1090 = vmatprep.subr.mxu1 %v76_v35 }
 0x237   :  { %1091 = vmatpush1.msra.mxu1 %v75_v37 }
 0x238   :  { %3567 = vmatmul.mubr.msk.f32.vlgmr.msra.gmra.mxu1 %vm275_vm0, %v4259_v9  ;;  %1310 = vmatprep.subr.mxu1 %v4276_v50 }
 0x239   :  { %1311 = vmatpush1.msra.mxu1 %v4278_v51  ;;  %1366 = vmatprep.mubr.f32.mxu1 %v5373_v0 }
 0x23a   :  { %1312 = vmatprep.subr.mxu1 %v4280_v52 }
 0x23b   :  { %1313 = vmatpush1.msra.mxu1 %v4285_v53 }
 0x23c   :  { %1314 = vmatprep.subr.mxu1 %v4288_v54 }
 0x23d   :  { %1315 = vmatpush1.msra.mxu1 %v4292_v55 }
 0x23e   :  { %1316 = vmatprep.subr.mxu1 %v4295_v56 }
 0x23f   :  { %1317 = vmatpush1.msra.mxu1 %v4298_v57 }
 0x240   :  { %1318 = vmatprep.subr.mxu1 %v4301_v58 }
 0x241   :  { %1319 = vmatpush1.msra.mxu1 %v4304_v59 }
 0x242   :  { %1320 = vmatprep.subr.mxu1 %v4307_v60 }
 0x243   :  { %1321 = vmatpush1.msra.mxu1 %v4310_v61 }
 0x244   :  { %1322 = vmatprep.subr.mxu1 %v4313_v62 }
 0x245   :  { %1323 = vmatpush1.msra.mxu1 %v4316_v63 }
 0x246   :  { %1324 = vmatprep.subr.mxu1 %v4319_v1 }
 0x247   :  { %1325 = vmatpush1.msra.mxu1 %v4322_v2 }
 0x248   :  { %1326 = vmatprep.subr.mxu1 %v4325_v3 }
 0x249   :  { %1327 = vmatpush1.msra.mxu1 %v4328_v4 }
 0x24a   :  { %1328 = vmatprep.subr.mxu1 %v4331_v5 }
 0x24b   :  { %1329 = vmatpush1.msra.mxu1 %v4334_v6 }
 0x24c   :  { %1330 = vmatprep.subr.mxu1 %v4337_v7 }
 0x24d   :  { %1331 = vmatpush1.msra.mxu1 %v4340_v8 }
 0x24e   :  { %1332 = vmatprep.subr.mxu1 %v4343_v10 }
 0x24f   :  { %1333 = vmatpush1.msra.mxu1 %v4346_v11 }
 0x250   :  { %3689 = vmatprep.subr.mxu1 %v5373_v0 }
 0x299   :  { %v1287_v9 = vpop.permute.xlu1 %1286 }
 0x29a   :  { %v1289_v50 = vmul.f32 %v4426_v12, %v1287_v9  ;;  %v4494_v12 = vsub.s32 7, %v4378_v13 }
 0x29c   :  { %1291 = vrot.lane.b32.xlu1 %v1289_v50, %s4203_s18  ;;  %v218_v15 = vrot.slane %v4386_v17, %v4494_v12 }
 0x2de   :  { %v4486_v46 = vpop.f32.mrf.mxu1 }
 0x2e0   :  { %v702_v47 = vpop.f32.mrf.mxu1 }
 0x2e1   :  { %v4491_v49 = vadd.f32 %v702_v47, %v202_v45 }
 0x2e6   :  { %v842_v18 = vpop.f32.mrf.mxu1 }
 0x2e7   :  { %v4500_v19 = vadd.f32 %v842_v18, %v214_v16 }
 0x2e8   :  { %v844_v26 = vpop.f32.mrf.mxu1 }
 0x2e9   :  { %v4503_v29 = vadd.f32 %v844_v26, %v218_v15  ;;  %v4521_v26 = vsub.s32 4, %v4378_v13 }
 0x2eb   :  { %v174_v23 = vrot.slane %v4422_v39, %v4521_v26 }
 0x2f0   :  { %v984_v35 = vpop.f32.mrf.mxu1 }
 0x2f1   :  { %v4509_v37 = vadd.f32 %v984_v35, %v230_v30  ;;  %v170_v30 = vrot.slane %v4422_v39, %v169_v43 }
 0x2f2   :  { %v986_v9 = vpop.f32.mrf.mxu1 }
 0x2f3   :  { %5380 = vst [vmem:[#allocation15_spill] sm:$0xff] %v4509_v37  ;;  %v4511_v50 = vadd.f32 %v986_v9, %v234_v32  ;;  %v419_v35 = vadd.f32 %v418_v41, %v170_v30 }
 0x2f5   :  { %5381 = vst [vmem:[#allocation16_spill] sm:$0xff] %v4511_v50 }
 0x2f8   :  { %v1126_v45 = vpop.f32.mrf.mxu1 }
 0x2f9   :  { %v4515_v16 = vadd.f32 %v1126_v45, %v246_v40  ;;  %v488_v40 = vadd.f32 %v4380_v14, %v174_v23 }
 0x2fa   :  { %v4526_v32 = vpop.f32.mrf.mxu1 }
 0x2fb   :  { %5382 = vst [vmem:[#allocation17_spill] sm:$0xff] %v4515_v16  ;;  %5383 = vst [vmem:[#allocation18_spill] sm:$0xff] %v4526_v32 }
 0x30e   :  { %v1292_v47 = vpop.permute.xlu1 %1291 }
 0x30f   :  { %v1294_v15 = vsel %vm275_vm0, %v1292_v47, 0.0 }
 0x310   :  { %v1296_v18 = vsel %vm1295_vm1, %v1294_v15, 0.0 }
 0x311   :  { %3568 = vmatmul.mubr.msk.f32.vlgmr.msra.gmra.mxu1 %vm1192_vm2, %v1296_v18 }
 0x3d1   :  { %v1368_v9 = vpop.f32.mrf.mxu1 }
 0x3d2   :  { %v1369_v45 = vadd.f32 %v1368_v9, %v419_v35 }
 0x3d3   :  { %v1370_v47 = vpop.f32.mrf.mxu1 }
 0x3d4   :  { %3931 = vtanh.f32 %v1369_v45  ;;  %v1371_v15 = vadd.f32 %v1370_v47, %v488_v40  ;;  %v1373_v43 = vsub.f32 0.0, %v1369_v45 }
 0x3d6   :  { %3933 = vtanh.f32 %v1371_v15  ;;  %v1374_v28 = vsub.f32 0.0, %v1371_v15  ;;  %v1375_v25 = vmul.f32 1.442695, %v1373_v43  ;;  %v4540_v43 = vld [vmem:[#allocation7 + $0x118] sm:$0xff] }
 0x3d7   :  { %3690 = vmatpush3.msra.mxu1 %v4540_v43 }
 0x3d8   :  { %v1377_v0 = vmul.f32 1.442695, %v1374_v28  ;;  %3935 = vpow2.f32 %v1375_v25 }
 0x3da   :  { %3937 = vpow2.f32 %v1377_v0 }
 0x3e1   :  { %v3932_v18 = vpop.eup %3931 }
 0x3e2   :  { %1389 = vrot.lane.b32.xlu0 %v3932_v18, %s4202_s17 }
 0x3e3   :  { %v3934_v34 = vpop.eup %3933 }
 0x3e4   :  { %1406 = vrot.lane.b32.xlu1 %v3934_v34, %s4202_s17 }
 0x3e5   :  { %v3936_v41 = vpop.eup %3935 }
 0x3e6   :  { %v1379_v14 = vadd.f32 1.0, %v3936_v41  ;;  %v4542_v41 = vld [vmem:[#allocation7 + $0x100] sm:$0xff] }
 0x3e7   :  { %v3938_v30 = vpop.eup %3937 }
 0x3e8   :  { %v1380_v23 = vadd.f32 1.0, %v3938_v30  ;;  %3939 = vrcp.f32 %v1379_v14  ;;  %v4550_v30 = vld [vmem:[#allocation7 + $0xd0] sm:$0xff]  ;;  %v4554_v14 = vld [vmem:[#allocation7 + $0xb8] sm:$0xff] }
 0x3ea   :  { %3941 = vrcp.f32 %v1380_v23 }
 0x3f5   :  { %v3940_v35 = vpop.eup %3939 }
 0x3f6   :  { %v1387_v34 = vmul.f32 %v3940_v35, %v4431_v24  ;;  %v4546_v24 = vld [vmem:[#allocation7 + $0xe8] sm:$0xff] }
 0x3f7   :  { %v3942_v47 = vpop.eup %3941 }
 0x3f8   :  { %v1404_v28 = vmul.f32 0.0, %v3942_v47 }
 0x454   :  { %v1390_v9 = vpop.permute.xlu0 %1389 }
 0x455   :  { %v1392_v40 = vmul.f32 %v3940_v35, %v1390_v9  ;;  %v4558_v9 = vld [vmem:[#allocation7 + $0xa0] sm:$0xff] }
 0x456   :  { %v1407_v18 = vpop.permute.xlu1 %1406 }
 0x457   :  { %v1409_v16 = vmul.f32 %v3942_v47, %v1407_v18  ;;  %1394 = vrot.lane.b32.xlu0 %v1392_v40, %s4203_s18  ;;  %v4563_v18 = vld [vmem:[#allocation7 + $0x88] sm:$0xff] }
 0x459   :  { %1411 = vrot.lane.b32.xlu1 %v1409_v16, %s4203_s18  ;;  %v5384_v16 = vmov 0.0  }
 0x45a   :  { %3691 = vmatprep.subr.mxu1 %v5384_v16  ;;  %3713 = vmatprep.mubr.msk.f32.mxu1 %vm4204_vm3, %v5384_v16 }
 0x45b   :  { %3692 = vmatpush3.msra.mxu1 %v4542_v41 }
 0x45c   :  { %3693 = vmatprep.subr.mxu1 %v5384_v16 }
 0x45d   :  { %3694 = vmatpush3.msra.mxu1 %v4546_v24 }
 0x45e   :  { %3695 = vmatprep.subr.mxu1 %v5384_v16 }
 0x45f   :  { %3696 = vmatpush3.msra.mxu1 %v4550_v30 }
 0x460   :  { %3697 = vmatprep.subr.mxu1 %v5384_v16 }
 0x461   :  { %3698 = vmatpush3.msra.mxu1 %v4554_v14 }
 0x462   :  { %3699 = vmatprep.subr.mxu1 %v5384_v16 }
 0x463   :  { %3700 = vmatpush3.msra.mxu1 %v4558_v9 }
 0x464   :  { %3701 = vmatprep.subr.mxu1 %v5384_v16 }
 0x465   :  { %3702 = vmatpush3.msra.mxu1 %v4563_v18 }
 0x466   :  { %3703 = vmatprep.subr.mxu1 %v5384_v16 }
 0x4c9   :  { %v1395_v25 = vpop.permute.xlu0 %1394 }
 0x4ca   :  { %v4534_v0 = vadd.f32 %v1395_v25, %v1387_v34  ;;  %v4568_v34 = vld [vmem:[#allocation7 + $0x70] sm:$0xff]  ;;  %v4572_v25 = vld [vmem:[#allocation7 + $0x58] sm:$0xff] }
 0x4cb   :  { %v1412_v45 = vpop.permute.xlu1 %1411  ;;  %3704 = vmatpush3.msra.mxu1 %v4568_v34 }
 0x4cc   :  { %3943 = vtanh.f32 %v4534_v0  ;;  %v4537_v15 = vadd.f32 %v1412_v45, %v1404_v28  ;;  %3705 = vmatprep.subr.mxu1 %v5384_v16  ;;  %v4576_v28 = vld [vmem:[#allocation7 + $0x40] sm:$0xff]  ;;  %v4582_v45 = vld [vmem:[#allocation7 + $0x28] sm:$0xff] }
 0x4cd   :  { %3706 = vmatpush3.msra.mxu1 %v4572_v25 }
 0x4ce   :  { %3945 = vtanh.f32 %v4537_v15  ;;  %3707 = vmatprep.subr.mxu1 %v5384_v16 }
 0x4cf   :  { %3708 = vmatpush3.msra.mxu1 %v4576_v28 }
 0x4d0   :  { %3709 = vmatprep.subr.mxu1 %v5384_v16 }
 0x4d1   :  { %3710 = vmatpush3.msra.mxu1 %v4582_v45 }
 0x4d2   :  { %3711 = vmatprep.subr.mxu1 %v5384_v16 }
 0x4d9   :  { %v3944_v23 = vpop.eup %3943 }
 0x4da   :  { %1400 = vrot.lane.b32.xlu0 %v3944_v23, %s4202_s17  ;;  %v4586_v23 = vld [vmem:[#allocation7 + $0x10] sm:$0xff] }
 0x4db   :  { %v3946_v40 = vpop.eup %3945  ;;  %3712 = vmatpush3.msra.mxu1 %v4586_v23 }
 0x4dc   :  { %1417 = vrot.lane.b32.xlu1 %v3946_v40, %s4202_s17  ;;  %3716 = vmatprep.subr.mxu1 %v5384_v16 }
 0x54c   :  { %v1401_v40 = vpop.permute.xlu0 %1400 }
 0x54d   :  { %v1403_v38 = vmul.f32 %v3940_v35, %v1401_v40 }
 0x54e   :  { %v1418_v32 = vpop.permute.xlu1 %1417 }
 0x54f   :  { %v1420_v50 = vmul.f32 %v3942_v47, %v1418_v32  ;;  %1422 = vrot.lane.b32.xlu0 %v1403_v38, %s4203_s18 }
 0x551   :  { %1426 = vrot.lane.b32.xlu1 %v1420_v50, %s4202_s17 }
 0x5c1   :  { %v1423_v37 = vpop.permute.xlu0 %1422 }
 0x5c3   :  { %v1427_v36 = vpop.permute.xlu1 %1426 }
 0x5c4   :  { %v1429_v31 = vsel %vm275_vm0, %v1423_v37, %v1427_v36 }
 0x5c5   :  { %v1430_v33 = vsel %vm1295_vm1, %v1429_v31, 0.0 }
 0x5c6   :  { %3569 = vmatmul.mubr.msk.f32.vlgmr.msra.gmra.mxu0 %vm1192_vm2, %v1430_v33  ;;  %3714 = vmatmul.mubr.msk.f32.vlgmr.msra.gmra.mxu1 %vm1192_vm2, %v1430_v33 }
 0x5c7   :  { %1719 = vmatpush1.msra.mxu0 %v4278_v51  ;;  %3717 = vmatpush3.msra.mxu1 %v4540_v43  ;;  %v182_v51 = vrot.slane %v4422_v39, %v4489_v48 }
 0x5c8   :  { %1720 = vmatprep.subr.mxu0 %v4280_v52  ;;  %3718 = vmatprep.subr.mxu1 %v5384_v16  ;;  %v186_v52 = vrot.slane %v4422_v39, %v4494_v12 }
 0x5c9   :  { %1721 = vmatpush1.msra.mxu0 %v4285_v53  ;;  %3719 = vmatpush3.msra.mxu1 %v4542_v41  ;;  %v559_v53 = vadd.f32 %v4480_v42, %v182_v51 }
 0x5ca   :  { %1722 = vmatprep.subr.mxu0 %v4288_v54  ;;  %3720 = vmatprep.subr.mxu1 %v5384_v16 }
 0x5cb   :  { %1723 = vmatpush1.msra.mxu0 %v4292_v55  ;;  %3721 = vmatpush3.msra.mxu1 %v4546_v24 }
 0x5cc   :  { %1724 = vmatprep.subr.mxu0 %v4295_v56  ;;  %3722 = vmatprep.subr.mxu1 %v5384_v16  ;;  %v561_v56 = vadd.f32 %v4483_v44, %v186_v52 }
 0x5cd   :  { %1725 = vmatpush1.msra.mxu0 %v4298_v57  ;;  %3723 = vmatpush3.msra.mxu1 %v4550_v30 }
 0x5ce   :  { %1726 = vmatprep.subr.mxu0 %v4301_v58  ;;  %3724 = vmatprep.subr.mxu1 %v5384_v16 }
 0x5cf   :  { %1727 = vmatpush1.msra.mxu0 %v4304_v59  ;;  %3725 = vmatpush3.msra.mxu1 %v4554_v14 }
 0x5d0   :  { %1728 = vmatprep.subr.mxu0 %v4307_v60  ;;  %3726 = vmatprep.subr.mxu1 %v5384_v16 }
 0x5d1   :  { %1729 = vmatpush1.msra.mxu0 %v4310_v61  ;;  %3727 = vmatpush3.msra.mxu1 %v4558_v9 }
 0x5d2   :  { %1730 = vmatprep.subr.mxu0 %v4313_v62  ;;  %3728 = vmatprep.subr.mxu1 %v5384_v16 }
 0x5d3   :  { %1731 = vmatpush1.msra.mxu0 %v4316_v63  ;;  %3729 = vmatpush3.msra.mxu1 %v4563_v18 }
 0x5d4   :  { %1732 = vmatprep.subr.mxu0 %v4319_v1  ;;  %3730 = vmatprep.subr.mxu1 %v5384_v16 }
 0x5d5   :  { %1733 = vmatpush1.msra.mxu0 %v4322_v2  ;;  %3731 = vmatpush3.msra.mxu1 %v4568_v34 }
 0x5d6   :  { %1734 = vmatprep.subr.mxu0 %v4325_v3  ;;  %3732 = vmatprep.subr.mxu1 %v5384_v16 }
 0x5d7   :  { %1735 = vmatpush1.msra.mxu0 %v4328_v4  ;;  %3733 = vmatpush3.msra.mxu1 %v4572_v25 }
 0x5d8   :  { %1736 = vmatprep.subr.mxu0 %v4331_v5  ;;  %3734 = vmatprep.subr.mxu1 %v5384_v16 }
 0x5d9   :  { %1737 = vmatpush1.msra.mxu0 %v4334_v6  ;;  %3735 = vmatpush3.msra.mxu1 %v4576_v28 }
 0x5da   :  { %1738 = vmatprep.subr.mxu0 %v4337_v7  ;;  %3736 = vmatprep.subr.mxu1 %v5384_v16 }
 0x5db   :  { %1739 = vmatpush1.msra.mxu0 %v4340_v8  ;;  %3737 = vmatpush3.msra.mxu1 %v4582_v45 }
 0x5dc   :  { %1740 = vmatprep.subr.mxu0 %v4343_v10  ;;  %3738 = vmatprep.subr.mxu1 %v5384_v16 }
 0x5dd   :  { %1741 = vmatpush1.msra.mxu0 %v4346_v11  ;;  %1774 = vmatprep.mubr.f32.mxu0 %v5384_v16 }
 0x5de   :  { %3739 = vmatpush3.msra.mxu1 %v4586_v23  ;;  %3740 = vmatprep.mubr.msk.f32.mxu1 %vm4204_vm3, %v5384_v16 }
 0x5df   :  { %3743 = vmatprep.subr.mxu1 %v5384_v16 }
 0x686   :  { %v1503_v54 = vpop.f32.mrf.mxu0  ;;  %v1574_v55 = vpop.f32.mrf.mxu1 }
 0x687   :  { %v1504_v57 = vadd.f32 %v1503_v54, %v559_v53  ;;  %v1575_v60 = vadd.f32 %v1574_v55, %v4389_v20 }
 0x688   :  { %v1505_v58 = vpop.f32.mrf.mxu0  ;;  %v3715_v59 = vpop.f32.mrf.mxu1 }
 0x689   :  { %3947 = vtanh.f32 %v1504_v57  ;;  %v1506_v61 = vadd.f32 %v1505_v58, %v561_v56  ;;  %v1578_v2 = vsub.f32 0.0, %v1504_v57  ;;  %v1580_v5 = vsub.f32 0.0, %v1575_v60 }
 0x68b   :  { %3949 = vtanh.f32 %v1506_v61  ;;  %v1579_v3 = vsub.f32 0.0, %v1506_v61  ;;  %v1581_v4 = vmul.f32 1.442695, %v1578_v2  ;;  %v1585_v7 = vmul.f32 1.442695, %v1580_v5 }
 0x68c   :  { %3951 = vtanh.f32 %v1575_v60 }
 0x68d   :  { %v1583_v6 = vmul.f32 1.442695, %v1579_v3  ;;  %3953 = vpow2.f32 %v1581_v4 }
 0x68f   :  { %3955 = vpow2.f32 %v1583_v6  ;;  %v5385_v6 = vsub.s32 1, %v4378_v13 }
 0x690   :  { %3957 = vpow2.f32 %v1585_v7 }
 0x691   :  { %v194_v7 = vrot.slane %v4386_v17, %v5385_v6 }
 0x696   :  { %v3948_v62 = vpop.eup %3947 }
 0x697   :  { %1601 = vrot.lane.b32.xlu0 %v3948_v62, %s4202_s17 }
 0x698   :  { %v3950_v63 = vpop.eup %3949 }
 0x699   :  { %1618 = vrot.lane.b32.xlu1 %v3950_v63, %s4202_s17  ;;  %v3952_v1 = vpop.eup %3951 }
 0x69a   :  { %v3954_v8 = vpop.eup %3953 }
 0x69b   :  { %1635 = vrot.lane.b32.xlu0 %v3952_v1, %s4202_s17  ;;  %v1587_v11 = vadd.f32 1.0, %v3954_v8  ;;  %v5386_v8 = vsub.s32 2, %v4378_v13 }
 0x69c   :  { %v3956_v10 = vpop.eup %3955 }
 0x69d   :  { %v3958_v20 = vpop.eup %3957  ;;  %v1588_v31 = vadd.f32 1.0, %v3956_v10  ;;  %3959 = vrcp.f32 %v1587_v11  ;;  %v198_v10 = vrot.slane %v4386_v17, %v5386_v8  ;;  %v632_v11 = vadd.f32 %v4391_v21, %v194_v7 }
 0x69e   :  { %v1589_v33 = vadd.f32 1.0, %v3958_v20 }
 0x69f   :  { %3961 = vrcp.f32 %v1588_v31 }
 0x6a0   :  { %3963 = vrcp.f32 %v1589_v33  ;;  %v701_v33 = vadd.f32 %v4486_v46, %v198_v10 }
 0x6aa   :  { %v3960_v36 = vpop.eup %3959 }
 0x6ab   :  { %v1599_v35 = vmul.f32 %v3960_v36, %v4534_v0 }
 0x6ac   :  { %v3962_v42 = vpop.eup %3961 }
 0x6ad   :  { %v3964_v37 = vpop.eup %3963  ;;  %v1616_v51 = vmul.f32 %v3962_v42, %v4537_v15 }
 0x6ae   :  { %v1633_v54 = vmul.f32 0.0, %v3964_v37 }
 0x709   :  { %v1602_v38 = vpop.permute.xlu0 %1601 }
 0x70a   :  { %v1604_v39 = vmul.f32 %v3960_v36, %v1602_v38 }
 0x70b   :  { %v1619_v44 = vpop.permute.xlu1 %1618 }
 0x70c   :  { %v1621_v48 = vmul.f32 %v3962_v42, %v1619_v44  ;;  %1606 = vrot.lane.b32.xlu1 %v1604_v39, %s4203_s18 }
 0x70d   :  { %v1636_v50 = vpop.permute.xlu0 %1635 }
 0x70e   :  { %v1638_v32 = vmul.f32 %v3964_v37, %v1636_v50  ;;  %1623 = vrot.lane.b32.xlu0 %v1621_v48, %s4203_s18 }
 0x710   :  { %1640 = vrot.lane.b32.xlu1 %v1638_v32, %s4203_s18 }
 0x77e   :  { %v1607_v47 = vpop.permute.xlu1 %1606 }
 0x77f   :  { %v4662_v40 = vadd.f32 %v1607_v47, %v1599_v35 }
 0x780   :  { %v1624_v52 = vpop.permute.xlu0 %1623 }
 0x781   :  { %3965 = vtanh.f32 %v4662_v40  ;;  %v4666_v53 = vadd.f32 %v1624_v52, %v1616_v51 }
 0x782   :  { %v1641_v55 = vpop.permute.xlu1 %1640 }
 0x783   :  { %3967 = vtanh.f32 %v4666_v53  ;;  %v4669_v56 = vadd.f32 %v1641_v55, %v1633_v54 }
 0x785   :  { %3969 = vtanh.f32 %v4669_v56 }
 0x78e   :  { %v3966_v57 = vpop.eup %3965 }
 0x78f   :  { %1612 = vrot.lane.b32.xlu0 %v3966_v57, %s4202_s17 }
 0x790   :  { %v3968_v0 = vpop.eup %3967 }
 0x791   :  { %1629 = vrot.lane.b32.xlu1 %v3968_v0, %s4202_s17 }
 0x792   :  { %v3970_v15 = vpop.eup %3969 }
 0x793   :  { %1646 = vrot.lane.b32.xlu0 %v3970_v15, %s4202_s17 }
 0x801   :  { %v1613_v58 = vpop.permute.xlu0 %1612 }
 0x802   :  { %v1615_v59 = vmul.f32 %v3960_v36, %v1613_v58 }
 0x803   :  { %v1630_v60 = vpop.permute.xlu1 %1629 }
 0x804   :  { %v1632_v61 = vmul.f32 %v3962_v42, %v1630_v60  ;;  %1656 = vrot.lane.b32.xlu1 %v1615_v59, %s4203_s18 }
 0x805   :  { %v1647_v62 = vpop.permute.xlu0 %1646 }
 0x806   :  { %v4676_v63 = vmul.f32 %v3964_v37, %v1647_v62  ;;  %1660 = vrot.lane.b32.xlu0 %v1632_v61, %s4202_s17 }
 0x808   :  { %1663 = vrot.lane.b32.xlu1 %v4676_v63, %s4205_s19 }
 0x876   :  { %v1657_v1 = vpop.permute.xlu1 %1656 }
 0x878   :  { %v1661_v2 = vpop.permute.xlu0 %1660 }
 0x879   :  { %v1666_v3 = vsel %vm275_vm0, %v1657_v1, %v1661_v2 }
 0x87a   :  { %v1664_v4 = vpop.permute.xlu1 %1663 }
 0x87b   :  { %v1667_v5 = vsel %vm1295_vm1, %v1666_v3, %v1664_v4 }
 0x87c   :  { %3571 = vmatmul.mubr.msk.f32.vlgmr.msra.gmra.mxu0 %vm1192_vm2, %v1667_v5  ;;  %3741 = vmatmul.mubr.msk.f32.vlgmr.msra.gmra.mxu1 %vm1192_vm2, %v1667_v5 }
 0x87d   :  { %3744 = vmatpush3.msra.mxu1 %v4540_v43  ;;  %2047 = vmatprep.mubr.f32.mxu0 %v5384_v16 }
 0x87e   :  { %3745 = vmatprep.subr.mxu1 %v5384_v16  ;;  %3767 = vmatprep.mubr.msk.f32.mxu1 %vm4204_vm3, %v5384_v16 }
 0x87f   :  { %3746 = vmatpush3.msra.mxu1 %v4542_v41 }
 0x880   :  { %3747 = vmatprep.subr.mxu1 %v5384_v16 }
 0x881   :  { %3748 = vmatpush3.msra.mxu1 %v4546_v24 }
 0x882   :  { %3749 = vmatprep.subr.mxu1 %v5384_v16 }
 0x883   :  { %3750 = vmatpush3.msra.mxu1 %v4550_v30 }
 0x884   :  { %3751 = vmatprep.subr.mxu1 %v5384_v16 }
 0x885   :  { %3752 = vmatpush3.msra.mxu1 %v4554_v14 }
 0x886   :  { %3753 = vmatprep.subr.mxu1 %v5384_v16 }
 0x887   :  { %3754 = vmatpush3.msra.mxu1 %v4558_v9 }
 0x888   :  { %3755 = vmatprep.subr.mxu1 %v5384_v16 }
 0x889   :  { %3756 = vmatpush3.msra.mxu1 %v4563_v18 }
 0x88a   :  { %3757 = vmatprep.subr.mxu1 %v5384_v16 }
 0x88b   :  { %3758 = vmatpush3.msra.mxu1 %v4568_v34 }
 0x88c   :  { %3759 = vmatprep.subr.mxu1 %v5384_v16 }
 0x88d   :  { %3760 = vmatpush3.msra.mxu1 %v4572_v25 }
 0x88e   :  { %3761 = vmatprep.subr.mxu1 %v5384_v16 }
 0x88f   :  { %3762 = vmatpush3.msra.mxu1 %v4576_v28 }
 0x890   :  { %3763 = vmatprep.subr.mxu1 %v5384_v16 }
 0x891   :  { %3764 = vmatpush3.msra.mxu1 %v4582_v45 }
 0x892   :  { %3765 = vmatprep.subr.mxu1 %v5384_v16 }
 0x893   :  { %3766 = vmatpush3.msra.mxu1 %v4586_v23 }
 0x894   :  { %3770 = vmatprep.subr.mxu1 %v5384_v16 }
 0x93c   :  { %v1776_v20 = vpop.f32.mrf.mxu0  ;;  %v1847_v31 = vpop.f32.mrf.mxu1 }
 0x93d   :  { %v1777_v36 = vadd.f32 %v1776_v20, %v632_v11  ;;  %v1848_v42 = vadd.f32 %v1847_v31, %v4491_v49  ;;  %v4753_v31 = vld [vmem:[#allocation7 + $0x108] sm:$0xff] }
 0x93e   :  { %v1778_v38 = vpop.f32.mrf.mxu0  ;;  %v3742_v39 = vpop.f32.mrf.mxu1 }
 0x93f   :  { %3971 = vtanh.f32 %v1777_v36  ;;  %v1779_v44 = vadd.f32 %v1778_v38, %v701_v33  ;;  %v1851_v21 = vsub.f32 0.0, %v1777_v36  ;;  %v1853_v32 = vsub.f32 0.0, %v1848_v42  ;;  %v4758_v33 = vld [vmem:[#allocation7 + $0xf0] sm:$0xff]  ;;  %v4764_v36 = vld [vmem:[#allocation7 + $0xd8] sm:$0xff]  ;;  %v4767_v38 = vld [vmem:[#allocation7 + $0xc8] sm:$0xff] }
 0x940   :  { %v4770_v39 = vld [vmem:[#allocation7 + $0xc0] sm:$0xff] }
 0x941   :  { %3973 = vtanh.f32 %v1779_v44  ;;  %v1852_v46 = vsub.f32 0.0, %v1779_v44  ;;  %v1854_v50 = vmul.f32 1.442695, %v1851_v21  ;;  %v1858_v47 = vmul.f32 1.442695, %v1853_v32  ;;  %v4773_v44 = vld [vmem:[#allocation7 + $0xb0] sm:$0xff] }
 0x942   :  { %3975 = vtanh.f32 %v1848_v42  ;;  %v4784_v21 = vld [vmem:[#allocation7 + $0x90] sm:$0xff]  ;;  %v4791_v32 = vld [vmem:[#allocation7 + $0x78] sm:$0xff] }
 0x943   :  { %v1856_v35 = vmul.f32 1.442695, %v1852_v46  ;;  %3977 = vpow2.f32 %v1854_v50  ;;  %v4787_v50 = vld [vmem:[#allocation7 + $0x80] sm:$0xff] }
 0x945   :  { %3979 = vpow2.f32 %v1856_v35  ;;  %v4794_v35 = vld [vmem:[#allocation7 + $0x68] sm:$0xff] }
 0x946   :  { %3981 = vpow2.f32 %v1858_v47  ;;  %v4797_v47 = vld [vmem:[#allocation7 + $0x60] sm:$0xff] }
 0x94c   :  { %v3972_v48 = vpop.eup %3971 }
 0x94d   :  { %1874 = vrot.lane.b32.xlu0 %v3972_v48, %s4202_s17  ;;  %v4777_v48 = vld [vmem:[#allocation7 + $0xa8] sm:$0xff] }
 0x94e   :  { %v3974_v37 = vpop.eup %3973 }
 0x94f   :  { %1891 = vrot.lane.b32.xlu1 %v3974_v37, %s4202_s17  ;;  %v3976_v17 = vpop.eup %3975 }
 0x950   :  { %v3978_v49 = vpop.eup %3977 }
 0x951   :  { %1908 = vrot.lane.b32.xlu0 %v3976_v17, %s4202_s17  ;;  %v1860_v52 = vadd.f32 1.0, %v3978_v49  ;;  %v4780_v17 = vld [vmem:[#allocation7 + $0x98] sm:$0xff]  ;;  %v4800_v49 = vld [vmem:[#allocation7 + $0x50] sm:$0xff] }
 0x952   :  { %v3980_v51 = vpop.eup %3979 }
 0x953   :  { %v3982_v54 = vpop.eup %3981  ;;  %v1861_v55 = vadd.f32 1.0, %v3980_v51  ;;  %3983 = vrcp.f32 %v1860_v52  ;;  %v4803_v51 = vld [vmem:[#allocation7 + $0x48] sm:$0xff]  ;;  %v4806_v52 = vld [vmem:[#allocation7 + $0x38] sm:$0xff] }
 0x954   :  { %v1862_v57 = vadd.f32 1.0, %v3982_v54  ;;  %v4811_v54 = vld [vmem:[#allocation7 + $0x30] sm:$0xff] }
 0x955   :  { %3985 = vrcp.f32 %v1861_v55  ;;  %v4813_v55 = vld [vmem:[#allocation7 + $0x20] sm:$0xff] }
 0x956   :  { %3987 = vrcp.f32 %v1862_v57  ;;  %v4817_v57 = vld [vmem:[#allocation7 + $0x18] sm:$0xff] }
 0x960   :  { %v4724_v0 = vpop.eup %3983 }
 0x961   :  { %v1872_v3 = vmul.f32 %v4724_v0, %v4662_v40  ;;  %v4751_v40 = vld [vmem:[#allocation7 + $0x110] sm:$0xff] }
 0x962   :  { %v4727_v59 = vpop.eup %3985  ;;  %1991 = vmatprep.subr.mxu0 %v4751_v40 }
 0x963   :  { %v4731_v62 = vpop.eup %3987  ;;  %v1889_v6 = vmul.f32 %v4727_v59, %v4666_v53  ;;  %v4755_v53 = vld [vmem:[#allocation7 + $0xf8] sm:$0xff]  ;;  %1992 = vmatpush1.msra.mxu0 %v4753_v31 }
 0x964   :  { %v1906_v10 = vmul.f32 %v4731_v62, %v4669_v56  ;;  %v4761_v56 = vld [vmem:[#allocation7 + $0xe0] sm:$0xff]  ;;  %1993 = vmatprep.subr.mxu0 %v4755_v53 }
 0x965   :  { %1994 = vmatpush1.msra.mxu0 %v4758_v33 }
 0x966   :  { %1995 = vmatprep.subr.mxu0 %v4761_v56 }
 0x967   :  { %1996 = vmatpush1.msra.mxu0 %v4764_v36 }
 0x968   :  { %1997 = vmatprep.subr.mxu0 %v4767_v38 }
 0x969   :  { %1998 = vmatpush1.msra.mxu0 %v4770_v39 }
 0x96a   :  { %1999 = vmatprep.subr.mxu0 %v4773_v44 }
 0x96b   :  { %2000 = vmatpush1.msra.mxu0 %v4777_v48 }
 0x96c   :  { %2001 = vmatprep.subr.mxu0 %v4780_v17 }
 0x96d   :  { %2002 = vmatpush1.msra.mxu0 %v4784_v21 }
 0x96e   :  { %2003 = vmatprep.subr.mxu0 %v4787_v50 }
 0x96f   :  { %2004 = vmatpush1.msra.mxu0 %v4791_v32 }
 0x970   :  { %2005 = vmatprep.subr.mxu0 %v4794_v35 }
 0x971   :  { %2006 = vmatpush1.msra.mxu0 %v4797_v47 }
 0x972   :  { %2007 = vmatprep.subr.mxu0 %v4800_v49 }
 0x973   :  { %2008 = vmatpush1.msra.mxu0 %v4803_v51 }
 0x974   :  { %2009 = vmatprep.subr.mxu0 %v4806_v52 }
 0x975   :  { %2010 = vmatpush1.msra.mxu0 %v4811_v54 }
 0x976   :  { %2011 = vmatprep.subr.mxu0 %v4813_v55 }
 0x977   :  { %2012 = vmatpush1.msra.mxu0 %v4817_v57 }
 0x9bf   :  { %v1875_v15 = vpop.permute.xlu0 %1874 }
 0x9c0   :  { %v1877_v58 = vmul.f32 %v4724_v0, %v1875_v15  ;;  %v4819_v15 = vld [vmem:[#allocation7 + $0x8] sm:$0xff] }
 0x9c1   :  { %v1892_v60 = vpop.permute.xlu1 %1891  ;;  %2013 = vmatprep.subr.mxu0 %v4819_v15 }
 0x9c2   :  { %v1894_v61 = vmul.f32 %v4727_v59, %v1892_v60  ;;  %1879 = vrot.lane.b32.xlu1 %v1877_v58, %s4203_s18  ;;  %v4823_v58 = vld [vmem:[#allocation7] sm:$0xff] }
 0x9c3   :  { %v1909_v1 = vpop.permute.xlu0 %1908  ;;  %2014 = vmatpush1.msra.mxu0 %v4823_v58 }
 0x9c4   :  { %v1911_v2 = vmul.f32 %v4731_v62, %v1909_v1  ;;  %1896 = vrot.lane.b32.xlu0 %v1894_v61, %s4203_s18  ;;  %2264 = vmatprep.subr.mxu0 %v4751_v40 }
 0x9c6   :  { %1913 = vrot.lane.b32.xlu1 %v1911_v2, %s4203_s18 }
 0xa34   :  { %v1880_v4 = vpop.permute.xlu1 %1879 }
 0xa35   :  { %v4738_v5 = vadd.f32 %v1880_v4, %v1872_v3 }
 0xa36   :  { %v1897_v7 = vpop.permute.xlu0 %1896 }
 0xa37   :  { %3989 = vtanh.f32 %v4738_v5  ;;  %v4743_v8 = vadd.f32 %v1897_v7, %v1889_v6 }
 0xa38   :  { %v1914_v11 = vpop.permute.xlu1 %1913 }
 0xa39   :  { %3991 = vtanh.f32 %v4743_v8  ;;  %v4748_v20 = vadd.f32 %v1914_v11, %v1906_v10 }
 0xa3b   :  { %3993 = vtanh.f32 %v4748_v20 }
 0xa44   :  { %v3990_v42 = vpop.eup %3989 }
 0xa45   :  { %1885 = vrot.lane.b32.xlu0 %v3990_v42, %s4202_s17 }
 0xa46   :  { %v3992_v37 = vpop.eup %3991 }
 0xa47   :  { %1902 = vrot.lane.b32.xlu1 %v3992_v37, %s4202_s17 }
 0xa48   :  { %v3994_v46 = vpop.eup %3993 }
 0xa49   :  { %1919 = vrot.lane.b32.xlu0 %v3994_v46, %s4202_s17 }
 0xab7   :  { %v1886_v60 = vpop.permute.xlu0 %1885 }
 0xab8   :  { %v1888_v61 = vmul.f32 %v4724_v0, %v1886_v60 }
 0xab9   :  { %v1903_v1 = vpop.permute.xlu1 %1902 }
 0xaba   :  { %v1905_v2 = vmul.f32 %v4727_v59, %v1903_v1  ;;  %1929 = vrot.lane.b32.xlu1 %v1888_v61, %s4203_s18 }
 0xabb   :  { %v1920_v3 = vpop.permute.xlu0 %1919 }
 0xabc   :  { %v4831_v4 = vmul.f32 %v4731_v62, %v1920_v3  ;;  %1933 = vrot.lane.b32.xlu0 %v1905_v2, %s4202_s17 }
 0xabe   :  { %1936 = vrot.lane.b32.xlu1 %v4831_v4, %s4205_s19 }
 0xb2c   :  { %v1930_v6 = vpop.permute.xlu1 %1929 }
 0xb2e   :  { %v1934_v7 = vpop.permute.xlu0 %1933 }
 0xb2f   :  { %v1939_v10 = vsel %vm275_vm0, %v1930_v6, %v1934_v7 }
 0xb30   :  { %v1937_v11 = vpop.permute.xlu1 %1936 }
 0xb31   :  { %v1940_v0 = vsel %vm1295_vm1, %v1939_v10, %v1937_v11 }
 0xb32   :  { %3573 = vmatmul.mubr.msk.f32.vlgmr.msra.gmra.mxu0 %vm1192_vm2, %v1940_v0  ;;  %3768 = vmatmul.mubr.msk.f32.vlgmr.msra.gmra.mxu1 %vm1192_vm2, %v1940_v0 }
 0xb33   :  { %2265 = vmatpush1.msra.mxu0 %v4753_v31  ;;  %3771 = vmatpush3.msra.mxu1 %v4540_v43  ;;  %v4149_v43 = vld [vmem:[%s5366_s3 + $0x8] sm:$0xff] }
 0xb34   :  { %2266 = vmatprep.subr.mxu0 %v4755_v53  ;;  %3772 = vmatprep.subr.mxu1 %v5384_v16 }
 0xb35   :  { %2267 = vmatpush1.msra.mxu0 %v4758_v33  ;;  %3773 = vmatpush3.msra.mxu1 %v4542_v41  ;;  %v206_v41 = vrot.slane %v4149_v43, %v4521_v26 }
 0xb36   :  { %2268 = vmatprep.subr.mxu0 %v4761_v56  ;;  %3774 = vmatprep.subr.mxu1 %v5384_v16 }
 0xb37   :  { %2269 = vmatpush1.msra.mxu0 %v4764_v36  ;;  %3775 = vmatpush3.msra.mxu1 %v4546_v24  ;;  %v5387_v24 = vsub.s32 5, %v4378_v13 }
 0xb38   :  { %2270 = vmatprep.subr.mxu0 %v4767_v38  ;;  %3776 = vmatprep.subr.mxu1 %v5384_v16 }
 0xb39   :  { %2271 = vmatpush1.msra.mxu0 %v4770_v39  ;;  %3777 = vmatpush3.msra.mxu1 %v4550_v30  ;;  %v210_v30 = vrot.slane %v4149_v43, %v5387_v24 }
 0xb3a   :  { %2272 = vmatprep.subr.mxu0 %v4773_v44  ;;  %3778 = vmatprep.subr.mxu1 %v5384_v16 }
 0xb3b   :  { %2273 = vmatpush1.msra.mxu0 %v4777_v48  ;;  %3779 = vmatpush3.msra.mxu1 %v4554_v14  ;;  %v772_v14 = vadd.f32 %v4393_v22, %v206_v41 }
 0xb3c   :  { %2274 = vmatprep.subr.mxu0 %v4780_v17  ;;  %3780 = vmatprep.subr.mxu1 %v5384_v16 }
 0xb3d   :  { %2275 = vmatpush1.msra.mxu0 %v4784_v21  ;;  %3781 = vmatpush3.msra.mxu1 %v4558_v9 }
 0xb3e   :  { %2276 = vmatprep.subr.mxu0 %v4787_v50  ;;  %3782 = vmatprep.subr.mxu1 %v5384_v16 }
 0xb3f   :  { %2277 = vmatpush1.msra.mxu0 %v4791_v32  ;;  %3783 = vmatpush3.msra.mxu1 %v4563_v18 }
 0xb40   :  { %2278 = vmatprep.subr.mxu0 %v4794_v35  ;;  %3784 = vmatprep.subr.mxu1 %v5384_v16 }
 0xb41   :  { %2279 = vmatpush1.msra.mxu0 %v4797_v47  ;;  %3785 = vmatpush3.msra.mxu1 %v4568_v34  ;;  %v774_v34 = vadd.f32 %v4402_v27, %v210_v30 }
 0xb42   :  { %2280 = vmatprep.subr.mxu0 %v4800_v49  ;;  %3786 = vmatprep.subr.mxu1 %v5384_v16 }
 0xb43   :  { %2281 = vmatpush1.msra.mxu0 %v4803_v51  ;;  %3787 = vmatpush3.msra.mxu1 %v4572_v25 }
 0xb44   :  { %2282 = vmatprep.subr.mxu0 %v4806_v52  ;;  %3788 = vmatprep.subr.mxu1 %v5384_v16 }
 0xb45   :  { %2283 = vmatpush1.msra.mxu0 %v4811_v54  ;;  %3789 = vmatpush3.msra.mxu1 %v4576_v28 }
 0xb46   :  { %2284 = vmatprep.subr.mxu0 %v4813_v55  ;;  %3790 = vmatprep.subr.mxu1 %v5384_v16 }
 0xb47   :  { %2285 = vmatpush1.msra.mxu0 %v4817_v57  ;;  %3791 = vmatpush3.msra.mxu1 %v4582_v45 }
 0xb48   :  { %2286 = vmatprep.subr.mxu0 %v4819_v15  ;;  %3792 = vmatprep.subr.mxu1 %v5384_v16 }
 0xb49   :  { %2287 = vmatpush1.msra.mxu0 %v4823_v58  ;;  %2320 = vmatprep.mubr.f32.mxu0 %v5384_v16 }
 0xb4a   :  { %3793 = vmatpush3.msra.mxu1 %v4586_v23  ;;  %3794 = vmatprep.mubr.msk.f32.mxu1 %vm4204_vm3, %v5384_v16 }
 0xb4b   :  { %2537 = vmatprep.subr.mxu0 %v4751_v40  ;;  %3797 = vmatprep.subr.mxu1 %v5384_v16 }
 0xbf2   :  { %v2049_v9 = vpop.f32.mrf.mxu0  ;;  %v2120_v18 = vpop.f32.mrf.mxu1 }
 0xbf3   :  { %v2050_v25 = vadd.f32 %v2049_v9, %v772_v14  ;;  %v2121_v23 = vadd.f32 %v2120_v18, %v4500_v19 }
 0xbf4   :  { %v2051_v28 = vpop.f32.mrf.mxu0  ;;  %v3769_v45 = vpop.f32.mrf.mxu1 }
 0xbf5   :  { %3995 = vtanh.f32 %v2050_v25  ;;  %v2052_v59 = vadd.f32 %v2051_v28, %v774_v34  ;;  %v2124_v42 = vsub.f32 0.0, %v2050_v25  ;;  %v2126_v46 = vsub.f32 0.0, %v2121_v23 }
 0xbf7   :  { %3997 = vtanh.f32 %v2052_v59  ;;  %v2125_v27 = vsub.f32 0.0, %v2052_v59  ;;  %v2127_v37 = vmul.f32 1.442695, %v2124_v42  ;;  %v2131_v61 = vmul.f32 1.442695, %v2126_v46 }
 0xbf8   :  { %3999 = vtanh.f32 %v2121_v23 }
 0xbf9   :  { %v2129_v60 = vmul.f32 1.442695, %v2125_v27  ;;  %4001 = vpow2.f32 %v2127_v37 }
 0xbfb   :  { %4003 = vpow2.f32 %v2129_v60 }
 0xbfc   :  { %4005 = vpow2.f32 %v2131_v61 }
 0xc02   :  { %v3996_v62 = vpop.eup %3995 }
 0xc03   :  { %2147 = vrot.lane.b32.xlu0 %v3996_v62, %s4202_s17 }
 0xc04   :  { %v3998_v13 = vpop.eup %3997 }
 0xc05   :  { %2164 = vrot.lane.b32.xlu1 %v3998_v13, %s4202_s17  ;;  %v4000_v22 = vpop.eup %3999 }
 0xc06   :  { %v4002_v19 = vpop.eup %4001 }
 0xc07   :  { %2181 = vrot.lane.b32.xlu0 %v4000_v22, %s4202_s17  ;;  %v2133_v2 = vadd.f32 1.0, %v4002_v19 }
 0xc08   :  { %v4004_v1 = vpop.eup %4003 }
 0xc09   :  { %v4006_v3 = vpop.eup %4005  ;;  %v2134_v6 = vadd.f32 1.0, %v4004_v1  ;;  %4007 = vrcp.f32 %v2133_v2 }
 0xc0a   :  { %v2135_v7 = vadd.f32 1.0, %v4006_v3 }
 0xc0b   :  { %4009 = vrcp.f32 %v2134_v6 }
 0xc0c   :  { %4011 = vrcp.f32 %v2135_v7 }
 0xc16   :  { %v4008_v10 = vpop.eup %4007 }
 0xc17   :  { %v2145_v18 = vmul.f32 %v4008_v10, %v4738_v5 }
 0xc18   :  { %v4010_v43 = vpop.eup %4009 }
 0xc19   :  { %v4012_v30 = vpop.eup %4011  ;;  %v2162_v28 = vmul.f32 %v4010_v43, %v4743_v8 }
 0xc1a   :  { %v2179_v59 = vmul.f32 %v4012_v30, %v4748_v20 }
 0xc75   :  { %v2148_v11 = vpop.permute.xlu0 %2147 }
 0xc76   :  { %v2150_v0 = vmul.f32 %v4008_v10, %v2148_v11 }
 0xc77   :  { %v2165_v41 = vpop.permute.xlu1 %2164 }
 0xc78   :  { %v2167_v24 = vmul.f32 %v4010_v43, %v2165_v41  ;;  %2152 = vrot.lane.b32.xlu1 %v2150_v0, %s4203_s18 }
 0xc79   :  { %v2182_v14 = vpop.permute.xlu0 %2181 }
 0xc7a   :  { %v2184_v9 = vmul.f32 %v4012_v30, %v2182_v14  ;;  %2169 = vrot.lane.b32.xlu0 %v2167_v24, %s4203_s18  ;;  %v5389_v24 = vld [vmem:[#allocation11_spill] sm:$0xff] }
 0xc7c   :  { %2186 = vrot.lane.b32.xlu1 %v2184_v9, %s4203_s18 }
 0xcea   :  { %v2153_v34 = vpop.permute.xlu1 %2152 }
 0xceb   :  { %v4907_v25 = vadd.f32 %v2153_v34, %v2145_v18 }
 0xcec   :  { %v2170_v45 = vpop.permute.xlu0 %2169 }
 0xced   :  { %4013 = vtanh.f32 %v4907_v25  ;;  %v4911_v23 = vadd.f32 %v2170_v45, %v2162_v28 }
 0xcee   :  { %v2187_v62 = vpop.permute.xlu1 %2186 }
 0xcef   :  { %4015 = vtanh.f32 %v4911_v23  ;;  %v4915_v13 = vadd.f32 %v2187_v62, %v2179_v59 }
 0xcf1   :  { %4017 = vtanh.f32 %v4915_v13 }
 0xcfa   :  { %v4014_v5 = vpop.eup %4013 }
 0xcfb   :  { %2158 = vrot.lane.b32.xlu0 %v4014_v5, %s4202_s17 }
 0xcfc   :  { %v4016_v22 = vpop.eup %4015 }
 0xcfd   :  { %2175 = vrot.lane.b32.xlu1 %v4016_v22, %s4202_s17 }
 0xcfe   :  { %v4018_v8 = vpop.eup %4017 }
 0xcff   :  { %2192 = vrot.lane.b32.xlu0 %v4018_v8, %s4202_s17 }
 0xd6d   :  { %v2159_v42 = vpop.permute.xlu0 %2158 }
 0xd6e   :  { %v2161_v27 = vmul.f32 %v4008_v10, %v2159_v42 }
 0xd6f   :  { %v2176_v37 = vpop.permute.xlu1 %2175 }
 0xd70   :  { %v2178_v20 = vmul.f32 %v4010_v43, %v2176_v37  ;;  %2202 = vrot.lane.b32.xlu1 %v2161_v27, %s4203_s18  ;;  %v5388_v43 = vld [vmem:[#allocation12_spill] sm:$0xff] }
 0xd71   :  { %v2193_v46 = vpop.permute.xlu0 %2192 }
 0xd72   :  { %v4922_v60 = vmul.f32 %v4012_v30, %v2193_v46  ;;  %2206 = vrot.lane.b32.xlu0 %v2178_v20, %s4202_s17 }
 0xd74   :  { %2209 = vrot.lane.b32.xlu1 %v4922_v60, %s4205_s19 }
 0xde2   :  { %v2203_v61 = vpop.permute.xlu1 %2202 }
 0xde4   :  { %v2207_v19 = vpop.permute.xlu0 %2206 }
 0xde5   :  { %v2212_v1 = vsel %vm275_vm0, %v2203_v61, %v2207_v19 }
 0xde6   :  { %v2210_v2 = vpop.permute.xlu1 %2209 }
 0xde7   :  { %v2213_v3 = vsel %vm1295_vm1, %v2212_v1, %v2210_v2 }
 0xde8   :  { %3575 = vmatmul.mubr.msk.f32.vlgmr.msra.gmra.mxu0 %vm1192_vm2, %v2213_v3  ;;  %3795 = vmatmul.mubr.msk.f32.vlgmr.msra.gmra.mxu1 %vm1192_vm2, %v2213_v3 }
 0xde9   :  { %2538 = vmatpush1.msra.mxu0 %v4753_v31  ;;  %2593 = vmatprep.mubr.f32.mxu0 %v5384_v16 }
 0xdea   :  { %2539 = vmatprep.subr.mxu0 %v4755_v53  ;;  %3821 = vmatprep.mubr.msk.f32.mxu1 %vm4204_vm3, %v5384_v16 }
 0xdeb   :  { %2540 = vmatpush1.msra.mxu0 %v4758_v33 }
 0xdec   :  { %2541 = vmatprep.subr.mxu0 %v4761_v56 }
 0xded   :  { %2542 = vmatpush1.msra.mxu0 %v4764_v36 }
 0xdee   :  { %2543 = vmatprep.subr.mxu0 %v4767_v38 }
 0xdef   :  { %2544 = vmatpush1.msra.mxu0 %v4770_v39 }
 0xdf0   :  { %2545 = vmatprep.subr.mxu0 %v4773_v44 }
 0xdf1   :  { %2546 = vmatpush1.msra.mxu0 %v4777_v48 }
 0xdf2   :  { %2547 = vmatprep.subr.mxu0 %v4780_v17 }
 0xdf3   :  { %2548 = vmatpush1.msra.mxu0 %v4784_v21 }
 0xdf4   :  { %2549 = vmatprep.subr.mxu0 %v4787_v50 }
 0xdf5   :  { %2550 = vmatpush1.msra.mxu0 %v4791_v32 }
 0xdf6   :  { %2551 = vmatprep.subr.mxu0 %v4794_v35 }
 0xdf7   :  { %2552 = vmatpush1.msra.mxu0 %v4797_v47 }
 0xdf8   :  { %2553 = vmatprep.subr.mxu0 %v4800_v49 }
 0xdf9   :  { %2554 = vmatpush1.msra.mxu0 %v4803_v51 }
 0xdfa   :  { %2555 = vmatprep.subr.mxu0 %v4806_v52 }
 0xdfb   :  { %2556 = vmatpush1.msra.mxu0 %v4811_v54 }
 0xdfc   :  { %2557 = vmatprep.subr.mxu0 %v4813_v55 }
 0xdfd   :  { %2558 = vmatpush1.msra.mxu0 %v4817_v57 }
 0xdfe   :  { %2559 = vmatprep.subr.mxu0 %v4819_v15 }
 0xdff   :  { %2560 = vmatpush1.msra.mxu0 %v4823_v58 }
 0xe00   :  { %2810 = vmatprep.subr.mxu0 %v4751_v40 }
 0xea8   :  { %v2322_v6 = vpop.f32.mrf.mxu0  ;;  %v2393_v7 = vpop.f32.mrf.mxu1 }
 0xea9   :  { %v2323_v10 = vadd.f32 %v2322_v6, %v4503_v29  ;;  %v2394_v41 = vadd.f32 %v2393_v7, %v5388_v43 }
 0xeaa   :  { %v2324_v11 = vpop.f32.mrf.mxu0  ;;  %v3796_v0 = vpop.f32.mrf.mxu1 }
 0xeab   :  { %4019 = vtanh.f32 %v2323_v10  ;;  %v2325_v30 = vadd.f32 %v2324_v11, %v5389_v24  ;;  %v2397_v18 = vsub.f32 0.0, %v2323_v10  ;;  %v2399_v28 = vsub.f32 0.0, %v2394_v41 }
 0xead   :  { %4021 = vtanh.f32 %v2325_v30  ;;  %v2398_v29 = vsub.f32 0.0, %v2325_v30  ;;  %v2400_v34 = vmul.f32 1.442695, %v2397_v18  ;;  %v2404_v59 = vmul.f32 1.442695, %v2399_v28  ;;  %v5005_v18 = vld [vmem:[#allocation7 + $0xb8] sm:$0xff] }
 0xeae   :  { %4023 = vtanh.f32 %v2394_v41 }
 0xeaf   :  { %v2402_v45 = vmul.f32 1.442695, %v2398_v29  ;;  %4025 = vpow2.f32 %v2400_v34  ;;  %v5010_v34 = vld [vmem:[#allocation7 + $0xa0] sm:$0xff] }
 0xeb1   :  { %4027 = vpow2.f32 %v2402_v45  ;;  %v5015_v45 = vld [vmem:[#allocation7 + $0x88] sm:$0xff] }
 0xeb2   :  { %4029 = vpow2.f32 %v2404_v59  ;;  %v5020_v59 = vld [vmem:[#allocation7 + $0x70] sm:$0xff] }
 0xeb8   :  { %v4020_v14 = vpop.eup %4019 }
 0xeb9   :  { %2420 = vrot.lane.b32.xlu0 %v4020_v14, %s4202_s17 }
 0xeba   :  { %v4022_v9 = vpop.eup %4021 }
 0xebb   :  { %2437 = vrot.lane.b32.xlu1 %v4022_v9, %s4202_s17  ;;  %v4024_v40 = vpop.eup %4023  ;;  %v4993_v9 = vld [vmem:[#allocation7 + $0x100] sm:$0xff] }
 0xebc   :  { %v4026_v62 = vpop.eup %4025 }
 0xebd   :  { %2454 = vrot.lane.b32.xlu0 %v4024_v40, %s4202_s17  ;;  %v2406_v22 = vadd.f32 1.0, %v4026_v62  ;;  %v5024_v62 = vld [vmem:[#allocation7 + $0x58] sm:$0xff] }
 0xebe   :  { %v4028_v5 = vpop.eup %4027 }
 0xebf   :  { %v4030_v8 = vpop.eup %4029  ;;  %v2407_v42 = vadd.f32 1.0, %v4028_v5  ;;  %4031 = vrcp.f32 %v2406_v22  ;;  %v5030_v5 = vld [vmem:[#allocation7 + $0x40] sm:$0xff]  ;;  %v5034_v22 = vld [vmem:[#allocation7 + $0x28] sm:$0xff] }
 0xec0   :  { %v2408_v27 = vadd.f32 1.0, %v4030_v8  ;;  %v5038_v8 = vld [vmem:[#allocation7 + $0x10] sm:$0xff] }
 0xec1   :  { %4033 = vrcp.f32 %v2407_v42 }
 0xec2   :  { %4035 = vrcp.f32 %v2408_v27 }
 0xecc   :  { %v4964_v37 = vpop.eup %4031 }
 0xecd   :  { %v2418_v7 = vmul.f32 %v4964_v37, %v4907_v25  ;;  %v4991_v25 = vld [vmem:[#allocation7 + $0x118] sm:$0xff] }
 0xece   :  { %v4967_v61 = vpop.eup %4033  ;;  %3798 = vmatpush3.msra.mxu1 %v4991_v25 }
 0xecf   :  { %v4971_v2 = vpop.eup %4035  ;;  %v2435_v0 = vmul.f32 %v4967_v61, %v4911_v23  ;;  %3799 = vmatprep.subr.mxu1 %v5384_v16  ;;  %v4997_v23 = vld [vmem:[#allocation7 + $0xe8] sm:$0xff] }
 0xed0   :  { %v2452_v24 = vmul.f32 %v4971_v2, %v4915_v13  ;;  %3800 = vmatpush3.msra.mxu1 %v4993_v9  ;;  %v5001_v13 = vld [vmem:[#allocation7 + $0xd0] sm:$0xff] }
 0xed1   :  { %3801 = vmatprep.subr.mxu1 %v5384_v16 }
 0xed2   :  { %3802 = vmatpush3.msra.mxu1 %v4997_v23 }
 0xed3   :  { %3803 = vmatprep.subr.mxu1 %v5384_v16 }
 0xed4   :  { %3804 = vmatpush3.msra.mxu1 %v5001_v13 }
 0xed5   :  { %3805 = vmatprep.subr.mxu1 %v5384_v16 }
 0xed6   :  { %3806 = vmatpush3.msra.mxu1 %v5005_v18 }
 0xed7   :  { %3807 = vmatprep.subr.mxu1 %v5384_v16 }
 0xed8   :  { %3808 = vmatpush3.msra.mxu1 %v5010_v34 }
 0xed9   :  { %3809 = vmatprep.subr.mxu1 %v5384_v16 }
 0xeda   :  { %3810 = vmatpush3.msra.mxu1 %v5015_v45 }
 0xedb   :  { %3811 = vmatprep.subr.mxu1 %v5384_v16 }
 0xedc   :  { %3812 = vmatpush3.msra.mxu1 %v5020_v59 }
 0xedd   :  { %3813 = vmatprep.subr.mxu1 %v5384_v16 }
 0xede   :  { %3814 = vmatpush3.msra.mxu1 %v5024_v62 }
 0xedf   :  { %3815 = vmatprep.subr.mxu1 %v5384_v16 }
 0xee0   :  { %3816 = vmatpush3.msra.mxu1 %v5030_v5 }
 0xee1   :  { %3817 = vmatprep.subr.mxu1 %v5384_v16 }
 0xee2   :  { %3818 = vmatpush3.msra.mxu1 %v5034_v22 }
 0xee3   :  { %3819 = vmatprep.subr.mxu1 %v5384_v16 }
 0xee4   :  { %3820 = vmatpush3.msra.mxu1 %v5038_v8 }
 0xee5   :  { %3824 = vmatprep.subr.mxu1 %v5384_v16 }
 0xf2b   :  { %v2421_v20 = vpop.permute.xlu0 %2420 }
 0xf2c   :  { %v2423_v46 = vmul.f32 %v4964_v37, %v2421_v20 }
 0xf2d   :  { %v2438_v19 = vpop.permute.xlu1 %2437 }
 0xf2e   :  { %v2440_v1 = vmul.f32 %v4967_v61, %v2438_v19  ;;  %2425 = vrot.lane.b32.xlu1 %v2423_v46, %s4203_s18 }
 0xf2f   :  { %v2455_v3 = vpop.permute.xlu0 %2454 }
 0xf30   :  { %v2457_v6 = vmul.f32 %v4971_v2, %v2455_v3  ;;  %2442 = vrot.lane.b32.xlu0 %v2440_v1, %s4203_s18 }
 0xf32   :  { %2459 = vrot.lane.b32.xlu1 %v2457_v6, %s4203_s18 }
 0xfa0   :  { %v2426_v10 = vpop.permute.xlu1 %2425 }
 0xfa1   :  { %v4978_v11 = vadd.f32 %v2426_v10, %v2418_v7 }
 0xfa2   :  { %v2443_v43 = vpop.permute.xlu0 %2442 }
 0xfa3   :  { %4037 = vtanh.f32 %v4978_v11  ;;  %v4983_v41 = vadd.f32 %v2443_v43, %v2435_v0 }
 0xfa4   :  { %v2460_v30 = vpop.permute.xlu1 %2459 }
 0xfa5   :  { %4039 = vtanh.f32 %v4983_v41  ;;  %v4988_v14 = vadd.f32 %v2460_v30, %v2452_v24 }
 0xfa7   :  { %4041 = vtanh.f32 %v4988_v14 }
 0xfb0   :  { %v4038_v40 = vpop.eup %4037 }
 0xfb1   :  { %2431 = vrot.lane.b32.xlu0 %v4038_v40, %s4202_s17 }
 0xfb2   :  { %v4040_v29 = vpop.eup %4039 }
 0xfb3   :  { %2448 = vrot.lane.b32.xlu1 %v4040_v29, %s4202_s17 }
 0xfb4   :  { %v4042_v28 = vpop.eup %4041 }
 0xfb5   :  { %2465 = vrot.lane.b32.xlu0 %v4042_v28, %s4202_s17 }
0x1023   :  { %v2432_v42 = vpop.permute.xlu0 %2431 }
0x1024   :  { %v2434_v27 = vmul.f32 %v4964_v37, %v2432_v42 }
0x1025   :  { %v2449_v20 = vpop.permute.xlu1 %2448 }
0x1026   :  { %v2451_v46 = vmul.f32 %v4967_v61, %v2449_v20  ;;  %2475 = vrot.lane.b32.xlu1 %v2434_v27, %s4203_s18 }
0x1027   :  { %v2466_v19 = vpop.permute.xlu0 %2465 }
0x1028   :  { %v5046_v1 = vmul.f32 %v4971_v2, %v2466_v19  ;;  %2479 = vrot.lane.b32.xlu0 %v2451_v46, %s4202_s17 }
0x102a   :  { %2482 = vrot.lane.b32.xlu1 %v5046_v1, %s4205_s19 }
0x1098   :  { %v2476_v3 = vpop.permute.xlu1 %2475 }
0x109a   :  { %v2480_v6 = vpop.permute.xlu0 %2479 }
0x109b   :  { %v2485_v7 = vsel %vm275_vm0, %v2476_v3, %v2480_v6 }
0x109c   :  { %v2483_v10 = vpop.permute.xlu1 %2482 }
0x109d   :  { %v2486_v37 = vsel %vm1295_vm1, %v2485_v7, %v2483_v10 }
0x109e   :  { %3577 = vmatmul.mubr.msk.f32.vlgmr.msra.gmra.mxu0 %vm1192_vm2, %v2486_v37  ;;  %3822 = vmatmul.mubr.msk.f32.vlgmr.msra.gmra.mxu1 %vm1192_vm2, %v2486_v37 }
0x109f   :  { %2811 = vmatpush1.msra.mxu0 %v4753_v31  ;;  %3825 = vmatpush3.msra.mxu1 %v4991_v25  ;;  %v5108_v31 = vld [vmem:[%s5366_s3 + $0x10] sm:$0xff] }
0x10a0   :  { %2812 = vmatprep.subr.mxu0 %v4755_v53  ;;  %3826 = vmatprep.subr.mxu1 %v5384_v16  ;;  %v238_v53 = vrot.slane %v5108_v31, %v4521_v26 }
0x10a1   :  { %2813 = vmatpush1.msra.mxu0 %v4758_v33  ;;  %3827 = vmatpush3.msra.mxu1 %v4993_v9 }
0x10a2   :  { %2814 = vmatprep.subr.mxu0 %v4761_v56  ;;  %3828 = vmatprep.subr.mxu1 %v5384_v16 }
0x10a3   :  { %2815 = vmatpush1.msra.mxu0 %v4764_v36  ;;  %3829 = vmatpush3.msra.mxu1 %v4997_v23  ;;  %v5390_v36 = vld [vmem:[#allocation13_spill] sm:$0xff] }
0x10a4   :  { %2816 = vmatprep.subr.mxu0 %v4767_v38  ;;  %3830 = vmatprep.subr.mxu1 %v5384_v16  ;;  %v1056_v38 = vadd.f32 %v5390_v36, %v238_v53 }
0x10a5   :  { %2817 = vmatpush1.msra.mxu0 %v4770_v39  ;;  %3831 = vmatpush3.msra.mxu1 %v5001_v13  ;;  %v5391_v39 = vld [vmem:[#allocation15_spill] sm:$0xff] }
0x10a6   :  { %2818 = vmatprep.subr.mxu0 %v4773_v44  ;;  %3832 = vmatprep.subr.mxu1 %v5384_v16 }
0x10a7   :  { %2819 = vmatpush1.msra.mxu0 %v4777_v48  ;;  %3833 = vmatpush3.msra.mxu1 %v5005_v18 }
0x10a8   :  { %2820 = vmatprep.subr.mxu0 %v4780_v17  ;;  %3834 = vmatprep.subr.mxu1 %v5384_v16 }
0x10a9   :  { %2821 = vmatpush1.msra.mxu0 %v4784_v21  ;;  %3835 = vmatpush3.msra.mxu1 %v5010_v34 }
0x10aa   :  { %2822 = vmatprep.subr.mxu0 %v4787_v50  ;;  %3836 = vmatprep.subr.mxu1 %v5384_v16  ;;  %v5392_v50 = vld [vmem:[#allocation16_spill] sm:$0xff] }
0x10ab   :  { %2823 = vmatpush1.msra.mxu0 %v4791_v32  ;;  %3837 = vmatpush3.msra.mxu1 %v5015_v45 }
0x10ac   :  { %2824 = vmatprep.subr.mxu0 %v4794_v35  ;;  %3838 = vmatprep.subr.mxu1 %v5384_v16 }
0x10ad   :  { %2825 = vmatpush1.msra.mxu0 %v4797_v47  ;;  %3839 = vmatpush3.msra.mxu1 %v5020_v59 }
0x10ae   :  { %2826 = vmatprep.subr.mxu0 %v4800_v49  ;;  %3840 = vmatprep.subr.mxu1 %v5384_v16 }
0x10af   :  { %2827 = vmatpush1.msra.mxu0 %v4803_v51  ;;  %3841 = vmatpush3.msra.mxu1 %v5024_v62 }
0x10b0   :  { %2828 = vmatprep.subr.mxu0 %v4806_v52  ;;  %3842 = vmatprep.subr.mxu1 %v5384_v16 }
0x10b1   :  { %2829 = vmatpush1.msra.mxu0 %v4811_v54  ;;  %3843 = vmatpush3.msra.mxu1 %v5030_v5 }
0x10b2   :  { %2830 = vmatprep.subr.mxu0 %v4813_v55  ;;  %3844 = vmatprep.subr.mxu1 %v5384_v16 }
0x10b3   :  { %2831 = vmatpush1.msra.mxu0 %v4817_v57  ;;  %3845 = vmatpush3.msra.mxu1 %v5034_v22 }
0x10b4   :  { %2832 = vmatprep.subr.mxu0 %v4819_v15  ;;  %3846 = vmatprep.subr.mxu1 %v5384_v16 }
0x10b5   :  { %2833 = vmatpush1.msra.mxu0 %v4823_v58  ;;  %2866 = vmatprep.mubr.f32.mxu0 %v5384_v16 }
0x10b6   :  { %3847 = vmatpush3.msra.mxu1 %v5038_v8  ;;  %3848 = vmatprep.mubr.msk.f32.mxu1 %vm4204_vm3, %v5384_v16 }
0x10b7   :  { %3851 = vmatprep.subr.mxu1 %v5384_v16 }
0x115e   :  { %v2595_v33 = vpop.f32.mrf.mxu0  ;;  %v2666_v56 = vpop.f32.mrf.mxu1 }
0x115f   :  { %v2596_v44 = vadd.f32 %v2595_v33, %v5391_v39  ;;  %v2667_v21 = vadd.f32 %v2666_v56, %v1056_v38 }
0x1160   :  { %v2597_v48 = vpop.f32.mrf.mxu0  ;;  %v3823_v17 = vpop.f32.mrf.mxu1 }
0x1161   :  { %4043 = vtanh.f32 %v2596_v44  ;;  %v2598_v32 = vadd.f32 %v2597_v48, %v5392_v50  ;;  %v2670_v49 = vsub.f32 0.0, %v2596_v44  ;;  %v2672_v54 = vsub.f32 0.0, %v2667_v21 }
0x1163   :  { %4045 = vtanh.f32 %v2598_v32  ;;  %v2671_v51 = vsub.f32 0.0, %v2598_v32  ;;  %v2673_v52 = vmul.f32 1.442695, %v2670_v49  ;;  %v2677_v57 = vmul.f32 1.442695, %v2672_v54 }
0x1164   :  { %4047 = vtanh.f32 %v2667_v21 }
0x1165   :  { %v2675_v55 = vmul.f32 1.442695, %v2671_v51  ;;  %4049 = vpow2.f32 %v2673_v52  ;;  %v5393_v52 = vld [vmem:[#allocation18_spill] sm:$0xff] }
0x1167   :  { %4051 = vpow2.f32 %v2675_v55  ;;  %v5394_v55 = vld [vmem:[#allocation14_spill] sm:$0xff] }
0x1168   :  { %4053 = vpow2.f32 %v2677_v57 }
0x116e   :  { %v4044_v35 = vpop.eup %4043 }
0x116f   :  { %2693 = vrot.lane.b32.xlu0 %v4044_v35, %s4202_s17 }
0x1170   :  { %v4046_v47 = vpop.eup %4045 }
0x1171   :  { %2710 = vrot.lane.b32.xlu1 %v4046_v47, %s4202_s17  ;;  %v4048_v26 = vpop.eup %4047 }
0x1172   :  { %v4050_v15 = vpop.eup %4049 }
0x1173   :  { %2727 = vrot.lane.b32.xlu0 %v4048_v26, %s4202_s17  ;;  %v2679_v61 = vadd.f32 1.0, %v4050_v15  ;;  %v250_v26 = vrot.slane %v5108_v31, %v4494_v12 }
0x1174   :  { %v4052_v58 = vpop.eup %4051 }
0x1175   :  { %v4054_v2 = vpop.eup %4053  ;;  %v2680_v0 = vadd.f32 1.0, %v4052_v58  ;;  %4055 = vrcp.f32 %v2679_v61  ;;  %v5175_v54 = vadd.f32 %v5393_v52, %v250_v26  ;;  %v3064_v52 = vld [vmem:[#allocation7 + $0xf8] sm:$0xff] }
0x1176   :  { %v2681_v43 = vadd.f32 1.0, %v4054_v2  ;;  %v5395_v2 = vld [vmem:[#allocation17_spill] sm:$0xff] }
0x1177   :  { %4057 = vrcp.f32 %v2680_v0 }
0x1178   :  { %4059 = vrcp.f32 %v2681_v43 }
0x1182   :  { %v4056_v24 = vpop.eup %4055 }
0x1183   :  { %v2691_v19 = vmul.f32 %v4056_v24, %v4978_v11 }
0x1184   :  { %v4058_v29 = vpop.eup %4057 }
0x1185   :  { %v4060_v27 = vpop.eup %4059  ;;  %v2708_v7 = vmul.f32 %v4058_v29, %v4983_v41 }
0x1186   :  { %v2725_v53 = vmul.f32 %v4060_v27, %v4988_v14 }
0x11e1   :  { %v2694_v30 = vpop.permute.xlu0 %2693 }
0x11e2   :  { %v2696_v40 = vmul.f32 %v4056_v24, %v2694_v30 }
0x11e3   :  { %v2711_v28 = vpop.permute.xlu1 %2710 }
0x11e4   :  { %v2713_v42 = vmul.f32 %v4058_v29, %v2711_v28  ;;  %2698 = vrot.lane.b32.xlu1 %v2696_v40, %s4203_s18 }
0x11e5   :  { %v2728_v20 = vpop.permute.xlu0 %2727 }
0x11e6   :  { %v2730_v46 = vmul.f32 %v4060_v27, %v2728_v20  ;;  %2715 = vrot.lane.b32.xlu0 %v2713_v42, %s4203_s18 }
0x11e8   :  { %2732 = vrot.lane.b32.xlu1 %v2730_v46, %s4203_s18 }
0x1256   :  { %v2699_v3 = vpop.permute.xlu1 %2698 }
0x1257   :  { %v5122_v6 = vadd.f32 %v2699_v3, %v2691_v19 }
0x1258   :  { %v2716_v10 = vpop.permute.xlu0 %2715 }
0x1259   :  { %4061 = vtanh.f32 %v5122_v6  ;;  %v5126_v37 = vadd.f32 %v2716_v10, %v2708_v7 }
0x125a   :  { %v2733_v33 = vpop.permute.xlu1 %2732 }
0x125b   :  { %4063 = vtanh.f32 %v5126_v37  ;;  %v5130_v56 = vadd.f32 %v2733_v33, %v2725_v53 }
0x125d   :  { %4065 = vtanh.f32 %v5130_v56 }
0x1266   :  { %v4062_v11 = vpop.eup %4061 }
0x1267   :  { %2704 = vrot.lane.b32.xlu0 %v4062_v11, %s4202_s17 }
0x1268   :  { %v4064_v36 = vpop.eup %4063 }
0x1269   :  { %2721 = vrot.lane.b32.xlu1 %v4064_v36, %s4202_s17 }
0x126a   :  { %v4066_v41 = vpop.eup %4065 }
0x126b   :  { %2738 = vrot.lane.b32.xlu0 %v4066_v41, %s4202_s17 }
0x12d9   :  { %v2705_v38 = vpop.permute.xlu0 %2704 }
0x12da   :  { %v2707_v39 = vmul.f32 %v4056_v24, %v2705_v38 }
0x12db   :  { %v2722_v44 = vpop.permute.xlu1 %2721 }
0x12dc   :  { %v2724_v14 = vmul.f32 %v4058_v29, %v2722_v44  ;;  %2748 = vrot.lane.b32.xlu1 %v2707_v39, %s4203_s18 }
0x12dd   :  { %v2739_v48 = vpop.permute.xlu0 %2738 }
0x12de   :  { %v5137_v17 = vmul.f32 %v4060_v27, %v2739_v48  ;;  %2752 = vrot.lane.b32.xlu0 %v2724_v14, %s4202_s17 }
0x12e0   :  { %2755 = vrot.lane.b32.xlu1 %v5137_v17, %s4205_s19 }
0x134e   :  { %v2749_v21 = vpop.permute.xlu1 %2748 }
0x1350   :  { %v2753_v50 = vpop.permute.xlu0 %2752 }
0x1351   :  { %v2758_v32 = vsel %vm275_vm0, %v2749_v21, %v2753_v50 }
0x1352   :  { %v2756_v35 = vpop.permute.xlu1 %2755 }
0x1353   :  { %v2759_v47 = vsel %vm1295_vm1, %v2758_v32, %v2756_v35 }
0x1354   :  { %3579 = vmatmul.mubr.msk.f32.vlgmr.msra.gmra.mxu0 %vm1192_vm2, %v2759_v47  ;;  %3849 = vmatmul.mubr.msk.f32.vlgmr.msra.gmra.mxu1 %vm1192_vm2, %v2759_v47 }
0x1355   :  { %3852 = vmatpush3.msra.mxu1 %v4991_v25  ;;  %3138 = vmatprep.mubr.f32.mxu0 %v5384_v16 }
0x1356   :  { %3853 = vmatprep.subr.mxu1 %v5384_v16  ;;  %3875 = vmatprep.mubr.msk.f32.mxu1 %vm4204_vm3, %v5384_v16 }
0x1357   :  { %3854 = vmatpush3.msra.mxu1 %v4993_v9 }
0x1358   :  { %3855 = vmatprep.subr.mxu1 %v5384_v16 }
0x1359   :  { %3856 = vmatpush3.msra.mxu1 %v4997_v23 }
0x135a   :  { %3857 = vmatprep.subr.mxu1 %v5384_v16 }
0x135b   :  { %3858 = vmatpush3.msra.mxu1 %v5001_v13 }
0x135c   :  { %3859 = vmatprep.subr.mxu1 %v5384_v16 }
0x135d   :  { %3860 = vmatpush3.msra.mxu1 %v5005_v18 }
0x135e   :  { %3861 = vmatprep.subr.mxu1 %v5384_v16 }
0x135f   :  { %3862 = vmatpush3.msra.mxu1 %v5010_v34 }
0x1360   :  { %3863 = vmatprep.subr.mxu1 %v5384_v16 }
0x1361   :  { %3864 = vmatpush3.msra.mxu1 %v5015_v45 }
0x1362   :  { %3865 = vmatprep.subr.mxu1 %v5384_v16 }
0x1363   :  { %3866 = vmatpush3.msra.mxu1 %v5020_v59 }
0x1364   :  { %3867 = vmatprep.subr.mxu1 %v5384_v16 }
0x1365   :  { %3868 = vmatpush3.msra.mxu1 %v5024_v62 }
0x1366   :  { %3869 = vmatprep.subr.mxu1 %v5384_v16 }
0x1367   :  { %3870 = vmatpush3.msra.mxu1 %v5030_v5 }
0x1368   :  { %3871 = vmatprep.subr.mxu1 %v5384_v16 }
0x1369   :  { %3872 = vmatpush3.msra.mxu1 %v5034_v22 }
0x136a   :  { %3873 = vmatprep.subr.mxu1 %v5384_v16 }
0x136b   :  { %3874 = vmatpush3.msra.mxu1 %v5038_v8 }
0x1414   :  { %v2868_v49 = vpop.f32.mrf.mxu0  ;;  %v2939_v51 = vpop.f32.mrf.mxu1 }
0x1415   :  { %v2869_v57 = vadd.f32 %v2868_v49, %v5394_v55  ;;  %v2940_v61 = vadd.f32 %v2939_v51, %v5175_v54  ;;  %v3066_v51 = vld [vmem:[#allocation7 + $0x108] sm:$0xff]  ;;  %v3063_v55 = vld [vmem:[#allocation7 + $0xf0] sm:$0xff] }
0x1416   :  { %v2870_v15 = vpop.f32.mrf.mxu0  ;;  %v3850_v58 = vpop.f32.mrf.mxu1 }
0x1417   :  { %4067 = vtanh.f32 %v2869_v57  ;;  %v2871_v0 = vadd.f32 %v2870_v15, %v5395_v2  ;;  %v2943_v24 = vsub.f32 0.0, %v2869_v57  ;;  %v2945_v29 = vsub.f32 0.0, %v2940_v61  ;;  %v3060_v57 = vld [vmem:[#allocation7 + $0xd8] sm:$0xff]  ;;  %v3058_v15 = vld [vmem:[#allocation7 + $0xc8] sm:$0xff] }
0x1419   :  { %4069 = vtanh.f32 %v2871_v0  ;;  %v2944_v30 = vsub.f32 0.0, %v2871_v0  ;;  %v2946_v40 = vmul.f32 1.442695, %v2943_v24  ;;  %v2950_v42 = vmul.f32 1.442695, %v2945_v29  ;;  %v3054_v0 = vld [vmem:[#allocation7 + $0xa8] sm:$0xff] }
0x141a   :  { %4071 = vtanh.f32 %v2940_v61  ;;  %v3055_v61 = vld [vmem:[#allocation7 + $0xb0] sm:$0xff]  ;;  %v3046_v29 = vld [vmem:[#allocation7 + $0x68] sm:$0xff] }
0x141b   :  { %v2948_v28 = vmul.f32 1.442695, %v2944_v30  ;;  %4073 = vpow2.f32 %v2946_v40  ;;  %v3049_v30 = vld [vmem:[#allocation7 + $0x80] sm:$0xff]  ;;  %v3048_v40 = vld [vmem:[#allocation7 + $0x78] sm:$0xff] }
0x141d   :  { %4075 = vpow2.f32 %v2948_v28  ;;  %v3045_v28 = vld [vmem:[#allocation7 + $0x60] sm:$0xff] }
0x141e   :  { %4077 = vpow2.f32 %v2950_v42  ;;  %v3043_v42 = vld [vmem:[#allocation7 + $0x50] sm:$0xff] }
0x1424   :  { %v4068_v43 = vpop.eup %4067 }
0x1425   :  { %2966 = vrot.lane.b32.xlu0 %v4068_v43, %s4202_s17 }
0x1426   :  { %v4070_v12 = vpop.eup %4069 }
0x1427   :  { %2983 = vrot.lane.b32.xlu1 %v4070_v12, %s4202_s17  ;;  %v4072_v31 = vpop.eup %4071  ;;  %v3052_v12 = vld [vmem:[#allocation7 + $0x98] sm:$0xff] }
0x1428   :  { %v4074_v27 = vpop.eup %4073 }
0x1429   :  { %3000 = vrot.lane.b32.xlu0 %v4072_v31, %s4202_s17  ;;  %v2952_v46 = vadd.f32 1.0, %v4074_v27  ;;  %v3051_v31 = vld [vmem:[#allocation7 + $0x90] sm:$0xff]  ;;  %v3042_v27 = vld [vmem:[#allocation7 + $0x48] sm:$0xff] }
0x142a   :  { %v4076_v20 = vpop.eup %4075 }
0x142b   :  { %v4078_v19 = vpop.eup %4077  ;;  %v2953_v3 = vadd.f32 1.0, %v4076_v20  ;;  %4079 = vrcp.f32 %v2952_v46  ;;  %v3040_v20 = vld [vmem:[#allocation7 + $0x38] sm:$0xff]  ;;  %v3039_v46 = vld [vmem:[#allocation7 + $0x30] sm:$0xff] }
0x142c   :  { %v2954_v7 = vadd.f32 1.0, %v4078_v19  ;;  %v3037_v19 = vld [vmem:[#allocation7 + $0x20] sm:$0xff] }
0x142d   :  { %4081 = vrcp.f32 %v2953_v3  ;;  %v3036_v3 = vld [vmem:[#allocation7 + $0x18] sm:$0xff] }
0x142e   :  { %4083 = vrcp.f32 %v2954_v7  ;;  %v3034_v7 = vld [vmem:[#allocation7 + $0x8] sm:$0xff] }
0x1438   :  { %v5183_v10 = vpop.eup %4079 }
0x1439   :  { %v2964_v14 = vmul.f32 %v5183_v10, %v5122_v6  ;;  %v3067_v6 = vld [vmem:[#allocation7 + $0x110] sm:$0xff] }
0x143a   :  { %v5186_v11 = vpop.eup %4081  ;;  %3082 = vmatprep.subr.mxu0 %v3067_v6 }
0x143b   :  { %v5190_v38 = vpop.eup %4083  ;;  %v2981_v50 = vmul.f32 %v5186_v11, %v5126_v37  ;;  %3083 = vmatpush1.msra.mxu0 %v3066_v51  ;;  %v3061_v37 = vld [vmem:[#allocation7 + $0xe0] sm:$0xff] }
0x143c   :  { %v2998_v47 = vmul.f32 %v5190_v38, %v5130_v56  ;;  %3084 = vmatprep.subr.mxu0 %v3064_v52  ;;  %v3057_v56 = vld [vmem:[#allocation7 + $0xc0] sm:$0xff] }
0x143d   :  { %3085 = vmatpush1.msra.mxu0 %v3063_v55 }
0x143e   :  { %3086 = vmatprep.subr.mxu0 %v3061_v37 }
0x143f   :  { %3087 = vmatpush1.msra.mxu0 %v3060_v57 }
0x1440   :  { %3088 = vmatprep.subr.mxu0 %v3058_v15 }
0x1441   :  { %3089 = vmatpush1.msra.mxu0 %v3057_v56 }
0x1442   :  { %3090 = vmatprep.subr.mxu0 %v3055_v61 }
0x1443   :  { %3091 = vmatpush1.msra.mxu0 %v3054_v0 }
0x1444   :  { %3092 = vmatprep.subr.mxu0 %v3052_v12 }
0x1445   :  { %3093 = vmatpush1.msra.mxu0 %v3051_v31 }
0x1446   :  { %3094 = vmatprep.subr.mxu0 %v3049_v30 }
0x1447   :  { %3095 = vmatpush1.msra.mxu0 %v3048_v40 }
0x1448   :  { %3096 = vmatprep.subr.mxu0 %v3046_v29 }
0x1449   :  { %3097 = vmatpush1.msra.mxu0 %v3045_v28 }
0x144a   :  { %3098 = vmatprep.subr.mxu0 %v3043_v42 }
0x144b   :  { %3099 = vmatpush1.msra.mxu0 %v3042_v27 }
0x144c   :  { %3100 = vmatprep.subr.mxu0 %v3040_v20 }
0x144d   :  { %3101 = vmatpush1.msra.mxu0 %v3039_v46 }
0x144e   :  { %3102 = vmatprep.subr.mxu0 %v3037_v19 }
0x144f   :  { %3103 = vmatpush1.msra.mxu0 %v3036_v3 }
0x1450   :  { %3104 = vmatprep.subr.mxu0 %v3034_v7 }
0x1497   :  { %v2967_v53 = vpop.permute.xlu0 %2966 }
0x1498   :  { %v2969_v33 = vmul.f32 %v5183_v10, %v2967_v53  ;;  %v3033_v53 = vld [vmem:[#allocation7] sm:$0xff] }
0x1499   :  { %v2984_v36 = vpop.permute.xlu1 %2983  ;;  %3105 = vmatpush1.msra.mxu0 %v3033_v53 }
0x149a   :  { %v2986_v41 = vmul.f32 %v5186_v11, %v2984_v36  ;;  %2971 = vrot.lane.b32.xlu1 %v2969_v33, %s4203_s18  ;;  %3878 = vmatprep.subr.mxu0 %v5384_v16 }
0x149b   :  { %v3001_v39 = vpop.permute.xlu0 %3000 }
0x149c   :  { %v3003_v44 = vmul.f32 %v5190_v38, %v3001_v39  ;;  %2988 = vrot.lane.b32.xlu0 %v2986_v41, %s4203_s18 }
0x149e   :  { %3005 = vrot.lane.b32.xlu1 %v3003_v44, %s4203_s18 }
0x150c   :  { %v2972_v48 = vpop.permute.xlu1 %2971 }
0x150d   :  { %v2974_v21 = vadd.f32 %v2972_v48, %v2964_v14 }
0x150e   :  { %v2989_v32 = vpop.permute.xlu0 %2988 }
0x150f   :  { %4085 = vtanh.f32 %v2974_v21  ;;  %v5199_v35 = vadd.f32 %v2989_v32, %v2981_v50 }
0x1510   :  { %v3006_v26 = vpop.permute.xlu1 %3005 }
0x1511   :  { %4087 = vtanh.f32 %v5199_v35  ;;  %v5204_v49 = vadd.f32 %v3006_v26, %v2998_v47 }
0x1513   :  { %4089 = vtanh.f32 %v5204_v49 }
0x151c   :  { %v4086_v58 = vpop.eup %4085 }
0x151d   :  { %2977 = vrot.lane.b32.xlu0 %v4086_v58, %s4202_s17 }
0x151e   :  { %v4088_v43 = vpop.eup %4087 }
0x151f   :  { %2994 = vrot.lane.b32.xlu1 %v4088_v43, %s4202_s17 }
0x1520   :  { %v4090_v24 = vpop.eup %4089 }
0x1521   :  { %3011 = vrot.lane.b32.xlu0 %v4090_v24, %s4202_s17 }
0x158f   :  { %v2978_v33 = vpop.permute.xlu0 %2977 }
0x1590   :  { %v2980_v36 = vmul.f32 %v5183_v10, %v2978_v33 }
0x1591   :  { %v2995_v41 = vpop.permute.xlu1 %2994 }
0x1592   :  { %v2997_v39 = vmul.f32 %v5186_v11, %v2995_v41  ;;  %3021 = vrot.lane.b32.xlu1 %v2980_v36, %s4203_s18 }
0x1593   :  { %v3012_v44 = vpop.permute.xlu0 %3011 }
0x1594   :  { %v5215_v14 = vmul.f32 %v5190_v38, %v3012_v44  ;;  %3025 = vrot.lane.b32.xlu0 %v2997_v39, %s4202_s17 }
0x1596   :  { %3028 = vrot.lane.b32.xlu1 %v5215_v14, %s4205_s19 }
0x1604   :  { %v5220_v48 = vpop.permute.xlu1 %3021 }
0x1606   :  { %v3026_v21 = vpop.permute.xlu0 %3025 }
0x1607   :  { %v3031_v10 = vsel %vm275_vm0, %v5220_v48, %v3026_v21 }
0x1608   :  { %v3029_v50 = vpop.permute.xlu1 %3028 }
0x1609   :  { %v3032_v11 = vsel %vm1295_vm1, %v3031_v10, %v3029_v50 }
0x160a   :  { %3581 = vmatmul.mubr.msk.f32.vlgmr.msra.gmra.mxu0 %vm1192_vm2, %v3032_v11  ;;  %3876 = vmatmul.mubr.msk.f32.vlgmr.msra.gmra.mxu1 %vm1192_vm2, %v3032_v11 }
0x160b   :  { %3879 = vmatpush3.msra.mxu0 %v4991_v25  ;;  %3902 = vmatprep.mubr.msk.f32.mxu0 %vm4204_vm3, %v5384_v16 }
0x160c   :  { %3880 = vmatprep.subr.mxu0 %v5384_v16 }
0x160d   :  { %3881 = vmatpush3.msra.mxu0 %v4993_v9 }
0x160e   :  { %3882 = vmatprep.subr.mxu0 %v5384_v16 }
0x160f   :  { %3883 = vmatpush3.msra.mxu0 %v4997_v23 }
0x1610   :  { %3884 = vmatprep.subr.mxu0 %v5384_v16 }
0x1611   :  { %3885 = vmatpush3.msra.mxu0 %v5001_v13 }
0x1612   :  { %3886 = vmatprep.subr.mxu0 %v5384_v16 }
0x1613   :  { %3887 = vmatpush3.msra.mxu0 %v5005_v18 }
0x1614   :  { %3888 = vmatprep.subr.mxu0 %v5384_v16 }
0x1615   :  { %3889 = vmatpush3.msra.mxu0 %v5010_v34 }
0x1616   :  { %3890 = vmatprep.subr.mxu0 %v5384_v16 }
0x1617   :  { %3891 = vmatpush3.msra.mxu0 %v5015_v45 }
0x1618   :  { %3892 = vmatprep.subr.mxu0 %v5384_v16 }
0x1619   :  { %3893 = vmatpush3.msra.mxu0 %v5020_v59 }
0x161a   :  { %3894 = vmatprep.subr.mxu0 %v5384_v16 }
0x161b   :  { %3895 = vmatpush3.msra.mxu0 %v5024_v62 }
0x161c   :  { %3896 = vmatprep.subr.mxu0 %v5384_v16 }
0x161d   :  { %3897 = vmatpush3.msra.mxu0 %v5030_v5 }
0x161e   :  { %3898 = vmatprep.subr.mxu0 %v5384_v16 }
0x161f   :  { %3899 = vmatpush3.msra.mxu0 %v5034_v22 }
0x1620   :  { %3900 = vmatprep.subr.mxu0 %v5384_v16 }
0x1621   :  { %3901 = vmatpush3.msra.mxu0 %v5038_v8 }
0x16ca   :  { %v3140_v25 = vpop.f32.mrf.mxu0  ;;  %v3210_v9 = vpop.f32.mrf.mxu1 }
0x16cb   :  { %v3211_v23 = vadd.f32 %v3210_v9, %v5175_v54 }
0x16cc   :  { %v3141_v13 = vpop.f32.mrf.mxu0  ;;  %v3877_v18 = vpop.f32.mrf.mxu1 }
0x16cd   :  { %4091 = vtanh.f32 %v3211_v23  ;;  %v3142_v34 = vadd.f32 %v3141_v13, %v5395_v2  ;;  %v3215_v62 = vsub.f32 0.0, %v3211_v23  ;;  %v3584_v23 = vld [vmem:[%s5367_s4] ss:$0 sm:$0xff] }
0x16cf   :  { %4093 = vtanh.f32 %v3142_v34  ;;  %v3214_v16 = vsub.f32 0.0, %v3142_v34  ;;  %v3218_v5 = vmul.f32 1.442695, %v3215_v62 }
0x16d1   :  { %v3216_v22 = vmul.f32 1.442695, %v3214_v16  ;;  %4095 = vpow2.f32 %v3218_v5 }
0x16d3   :  { %4097 = vpow2.f32 %v3216_v22 }
0x16da   :  { %v4092_v45 = vpop.eup %4091 }
0x16db   :  { %3247 = vrot.lane.b32.xlu1 %v4092_v45, %s4202_s17 }
0x16dc   :  { %v4094_v59 = vpop.eup %4093 }
0x16dd   :  { %3230 = vrot.lane.b32.xlu0 %v4094_v59, %s4202_s17 }
0x16de   :  { %v4096_v8 = vpop.eup %4095 }
0x16df   :  { %v3221_v32 = vadd.f32 1.0, %v4096_v8 }
0x16e0   :  { %v4098_v38 = vpop.eup %4097 }
0x16e1   :  { %v3220_v47 = vadd.f32 1.0, %v4098_v38  ;;  %4099 = vrcp.f32 %v3221_v32  ;;  %v5318_v38 = vld [vmem:[%s5363_s0] sm:$0xff] }
0x16e3   :  { %4101 = vrcp.f32 %v3220_v47 }
0x16ee   :  { %v4100_v2 = vpop.eup %4099 }
0x16ef   :  { %v3245_v37 = vmul.f32 %v4100_v2, %v5204_v49 }
0x16f0   :  { %v4102_v51 = vpop.eup %4101 }
0x16f1   :  { %v3228_v56 = vmul.f32 %v4102_v51, %v5199_v35 }
0x174d   :  { %v3248_v26 = vpop.permute.xlu1 %3247 }
0x174e   :  { %v3250_v6 = vmul.f32 %v4100_v2, %v3248_v26 }
0x174f   :  { %v3231_v52 = vpop.permute.xlu0 %3230 }
0x1750   :  { %v3233_v55 = vmul.f32 %v4102_v51, %v3231_v52  ;;  %3252 = vrot.lane.b32.xlu1 %v3250_v6, %s4203_s18 }
0x1752   :  { %3235 = vrot.lane.b32.xlu0 %v3233_v55, %s4203_s18 }
0x17c2   :  { %v3253_v57 = vpop.permute.xlu1 %3252 }
0x17c3   :  { %v3255_v15 = vadd.f32 %v3253_v57, %v3245_v37 }
0x17c4   :  { %v3236_v58 = vpop.permute.xlu0 %3235 }
0x17c5   :  { %4103 = vtanh.f32 %v3255_v15  ;;  %v3238_v61 = vadd.f32 %v3236_v58, %v3228_v56 }
0x17c7   :  { %4105 = vtanh.f32 %v3238_v61 }
0x17d2   :  { %v4104_v0 = vpop.eup %4103 }
0x17d3   :  { %3258 = vrot.lane.b32.xlu1 %v4104_v0, %s4202_s17 }
0x17d4   :  { %v4106_v43 = vpop.eup %4105 }
0x17d5   :  { %3241 = vrot.lane.b32.xlu0 %v4106_v43, %s4202_s17 }
0x1845   :  { %v3259_v12 = vpop.permute.xlu1 %3258 }
0x1846   :  { %v3261_v31 = vmul.f32 %v4100_v2, %v3259_v12 }
0x1847   :  { %v3242_v24 = vpop.permute.xlu0 %3241 }
0x1848   :  { %v3244_v30 = vmul.f32 %v4102_v51, %v3242_v24  ;;  %3271 = vrot.lane.b32.xlu1 %v3261_v31, %s4205_s19 }
0x184a   :  { %3268 = vrot.lane.b32.xlu0 %v3244_v30, %s4202_s17 }
0x18ba   :  { %v3272_v35 = vpop.permute.xlu1 %3271 }
0x18bc   :  { %v3269_v49 = vpop.permute.xlu0 %3268 }
0x18bd   :  { %v3274_v40 = vsel %vm275_vm0, %v5220_v48, %v3269_v49 }
0x18be   :  { %v3275_v29 = vsel %vm1295_vm1, %v3274_v40, %v3272_v35 }
0x18bf   :  { %3903 = vmatmul.mubr.msk.f32.vlgmr.msra.gmra.mxu0 %vm1192_vm2, %v3275_v29 }
0x197f   :  { %v3358_v28 = vpop.f32.mrf.mxu0 }
0x1980   :  { %v3359_v42 = vadd.f32 %v3358_v28, %v5175_v54 }
0x1981   :  { %v3904_v27 = vpop.f32.mrf.mxu0 }
0x1982   :  { %4107 = vtanh.f32 %v3359_v42  ;;  %v3362_v46 = vsub.f32 0.0, %v3359_v42 }
0x1984   :  { %v3363_v19 = vmul.f32 1.442695, %v3362_v46 }
0x1986   :  { %4109 = vpow2.f32 %v3363_v19 }
0x198f   :  { %v4108_v20 = vpop.eup %4107 }
0x1990   :  { %3371 = vrot.lane.b32.xlu0 %v4108_v20, %s4202_s17 }
0x1993   :  { %v4110_v3 = vpop.eup %4109 }
0x1994   :  { %1924 = vrot.lane.b32.xlu0 %v4831_v4, %s4203_s18  ;;  %v3365_v7 = vadd.f32 1.0, %v4110_v3 }
0x1996   :  { %4111 = vrcp.f32 %v3365_v7 }
0x1998   :  { %2470 = vrot.lane.b32.xlu0 %v5046_v1, %s4203_s18 }
0x199c   :  { %3016 = vrot.lane.b32.xlu0 %v5215_v14, %s4203_s18 }
0x19a3   :  { %v5276_v54 = vpop.eup %4111 }
0x19a4   :  { %v3369_v41 = vmul.f32 %v5276_v54, %v3255_v15  ;;  %v3447_v15 = vstv %s5368_s5  ;;  %s4210_s5 = smov 104  }
0x1a02   :  { %v3372_v53 = vpop.permute.xlu0 %3371 }
0x1a03   :  { %v3374_v33 = vmul.f32 %v5276_v54, %v3372_v53 }
0x1a05   :  { %3376 = vrot.lane.b32.xlu1 %v3374_v33, %s4203_s18 }
0x1a06   :  { %v1925_v4 = vpop.permute.xlu0 %1924 }
0x1a07   :  { %1927 = vst.msk [vmem:[#allocation3 + $0x8] sm:$0xff] %vm275_vm0, %v1925_v4 }
0x1a09   :  { %1651 = vrot.lane.b32.xlu1 %v4676_v63, %s4203_s18 }
0x1a0a   :  { %v2471_v1 = vpop.permute.xlu0 %2470 }
0x1a0b   :  { %2473 = vst.msk [vmem:[#allocation3 + $0x18] sm:$0xff] %vm275_vm0, %v2471_v1 }
0x1a0d   :  { %2197 = vrot.lane.b32.xlu1 %v4922_v60, %s4203_s18 }
0x1a0e   :  { %v3017_v36 = vpop.permute.xlu0 %3016  ;;  %v5305_v11 = vld [vmem:[#allocation3 + $0x8] sm:$0xff] }
0x1a0f   :  { %3019 = vst.msk [vmem:[#allocation3 + $0x28] sm:$0xff] %vm275_vm0, %v3017_v36 }
0x1a11   :  { %2743 = vrot.lane.b32.xlu1 %v5137_v17, %s4203_s18 }
0x1a12   :  { %v5293_v60 = vld [vmem:[#allocation3 + $0x18] sm:$0xff] }
0x1a15   :  { %3263 = vrot.lane.b32.xlu1 %v3261_v31, %s4203_s18 }
0x1a16   :  { %v5336_v12 = vld [vmem:[#allocation3 + $0x28] sm:$0xff] }
0x1a77   :  { %v3377_v39 = vpop.permute.xlu1 %3376 }
0x1a78   :  { %v3379_v44 = vadd.f32 %v3377_v39, %v3369_v41 }
0x1a7a   :  { %4113 = vtanh.f32 %v3379_v44 }
0x1a7b   :  { %v1652_v63 = vpop.permute.xlu1 %1651  ;;  %4115 = vtanh.f32 %v5293_v60 }
0x1a7c   :  { %1654 = vst.msk [vmem:[#allocation3] sm:$0xff] %vm275_vm0, %v1652_v63 }
0x1a7f   :  { %v2198_v14 = vpop.permute.xlu1 %2197 }
0x1a80   :  { %2200 = vst.msk [vmem:[#allocation3 + $0x10] sm:$0xff] %vm275_vm0, %v2198_v14 }
0x1a83   :  { %v2744_v48 = vpop.permute.xlu1 %2743  ;;  %v5295_v21 = vld [vmem:[#allocation3] sm:$0xff] }
0x1a84   :  { %2746 = vst.msk [vmem:[#allocation3 + $0x20] sm:$0xff] %vm275_vm0, %v2744_v48  ;;  %4117 = vtanh.f32 %v5295_v21 }
0x1a87   :  { %v4114_v17 = vpop.eup %4113  ;;  %v3264_v10 = vpop.permute.xlu1 %3263  ;;  %v5328_v52 = vld [vmem:[#allocation3 + $0x10] sm:$0xff] }
0x1a88   :  { %3266 = vst.msk [vmem:[#allocation3 + $0x30] sm:$0xff] %vm275_vm0, %v3264_v10  ;;  %3382 = vrot.lane.b32.xlu0 %v4114_v17, %s4202_s17  ;;  %v4116_v25 = vpop.eup %4115 }
0x1a89   :  { %v3417_v34 = vmul.f32 %v4116_v25, %v3584_v23 }
0x1a8b   :  { %v5302_v50 = vld [vmem:[#allocation3 + $0x20] sm:$0xff]  ;;  %v3431_v45 = vsel %vm275_vm0, %v3417_v34, 0.0 }
0x1a8c   :  { %4119 = vtanh.f32 %v5302_v50 }
0x1a8d   :  { %4121 = vtanh.f32 %v5305_v11 }
0x1a8f   :  { %v5322_v32 = vld [vmem:[#allocation3 + $0x30] sm:$0xff] }
0x1a90   :  { %4123 = vtanh.f32 %v5322_v32 }
0x1a91   :  { %v4118_v9 = vpop.eup %4117  ;;  %4125 = vtanh.f32 %v5328_v52 }
0x1a92   :  { %v3414_v13 = vmul.f32 %v4118_v9, %v3584_v23  ;;  %4127 = vtanh.f32 %v5336_v12 }
0x1a94   :  { %v3422_v18 = vsel %vm275_vm0, %v3414_v13, 0.0 }
0x1a95   :  { %3423 = vadd.xlane.f32.xlu1 %v3422_v18 }
0x1a99   :  { %v4120_v59 = vpop.eup %4119  ;;  %3432 = vadd.xlane.f32.xlu1 %v3431_v45 }
0x1a9a   :  { %v3418_v62 = vmul.f32 %v4120_v59, %v3584_v23  ;;  %v4122_v5 = vpop.eup %4121 }
0x1a9b   :  { %v3415_v22 = vmul.f32 %v4122_v5, %v3584_v23 }
0x1a9c   :  { %v3434_v16 = vsel %vm275_vm0, %v3418_v62, 0.0 }
0x1a9d   :  { %3435 = vadd.xlane.f32.xlu1 %v3434_v16  ;;  %v3425_v8 = vsel %vm275_vm0, %v3415_v22, 0.0  ;;  %v4124_v47 = vpop.eup %4123 }
0x1a9e   :  { %v3420_v2 = vmul.f32 %v4124_v47, %v3584_v23  ;;  %v4126_v55 = vpop.eup %4125 }
0x1a9f   :  { %v3416_v37 = vmul.f32 %v4126_v55, %v3584_v23  ;;  %v4128_v31 = vpop.eup %4127 }
0x1aa0   :  { %v3440_v26 = vsel %vm275_vm0, %v3420_v2, 0.0  ;;  %v3419_v24 = vmul.f32 %v4128_v31, %v3584_v23 }
0x1aa1   :  { %v3428_v57 = vsel %vm275_vm0, %v3416_v37, 0.0 }
0x1aa2   :  { %v3437_v30 = vsel %vm275_vm0, %v3419_v24, 0.0 }
0x1aa7   :  { %3426 = vadd.xlane.f32.xlu0 %v3425_v8 }
0x1aae   :  { %3519 = vrot.lane.b32.xlu1 %v5318_v38, %s4206_s26 }
0x1ab2   :  { %3523 = vrot.lane.b32.xlu1 %v5318_v38, %s4207_s27 }
0x1ad6   :  { %3441 = vadd.xlane.f32.xlu1 %v3440_v26 }
0x1afa   :  { %v3383_v6 = vpop.permute.xlu0 %3382 }
0x1afb   :  { %v3385_v51 = vmul.f32 %v5276_v54, %v3383_v6 }
0x1afd   :  { %3387 = vrot.lane.b32.xlu0 %v3385_v51, %s4203_s18 }
0x1b1c   :  { %3429 = vadd.xlane.f32.xlu0 %v3428_v57 }
0x1b1e   :  { %v3424_v56 = vpop.xlane.xlu1 %3423 }
0x1b1f   :  { %v3448_v61 = vadd.f32 %v3447_v15, %v3424_v56 }
0x1b22   :  { %v3433_v42 = vpop.xlane.xlu1 %3432 }
0x1b23   :  { %v3451_v19 = vadd.f32 %v3447_v15, %v3433_v42 }
0x1b26   :  { %v3436_v46 = vpop.xlane.xlu1 %3435 }
0x1b27   :  { %v3452_v7 = vadd.f32 %v3447_v15, %v3436_v46 }
0x1b2a   :  { %v3520_v41 = vpop.permute.xlu1 %3519 }
0x1b2e   :  { %v3524_v39 = vpop.permute.xlu1 %3523 }
0x1b30   :  { %v3427_v58 = vpop.xlane.xlu0 %3426 }
0x1b31   :  { %v3449_v0 = vadd.f32 %v3447_v15, %v3427_v58 }
0x1b32   :  { %3515 = vrot.lane.b32.xlu0 %v5318_v38, %s4208_s29 }
0x1b33   :  { %v3456_v43 = vmax.f32 %v3448_v61, %v3449_v0 }
0x1b51   :  { %3438 = vadd.xlane.f32.xlu0 %v3437_v30 }
0x1b5f   :  { %v3442_v63 = vpop.xlane.xlu1 %3441 }
0x1b60   :  { %v3454_v17 = vadd.f32 %v3447_v15, %v3442_v63 }
0x1b67   :  { %3527 = vrot.lane.b32.xlu0 %v5318_v38, %s4209_s30 }
0x1b6b   :  { %3535 = vrot.lane.b32.xlu0 %v5318_v38, %s4210_s5 }
0x1b6f   :  { %v3388_v49 = vpop.permute.xlu0 %3387  ;;  %3539 = vrot.lane.b32.xlu0 %v5318_v38, %s4211_s7 }
0x1b70   :  { %3390 = vst.msk [vmem:[#allocation3 + $0x38] sm:$0xff] %vm275_vm0, %v3388_v49 }
0x1b77   :  { %v5344_v35 = vld [vmem:[#allocation3 + $0x38] sm:$0xff] }
0x1b78   :  { %4129 = vtanh.f32 %v5344_v35 }
0x1b85   :  { %v4130_v40 = vpop.eup %4129 }
0x1b86   :  { %v3421_v29 = vmul.f32 %v4130_v40, %v3584_v23 }
0x1b88   :  { %v3443_v28 = vsel %vm275_vm0, %v3421_v29, 0.0 }
0x1b89   :  { %3444 = vadd.xlane.f32.xlu1 %v3443_v28 }
0x1b9a   :  { %3531 = vrot.lane.b32.xlu1 %v5318_v38, %s4212_s8 }
0x1ba5   :  { %v3430_v27 = vpop.xlane.xlu0 %3429 }
0x1ba6   :  { %v3450_v20 = vadd.f32 %v3447_v15, %v3430_v27 }
0x1ba8   :  { %v3457_v3 = vmax.f32 %v3456_v43, %v3450_v20 }
0x1ba9   :  { %v3516_v33 = vpop.permute.xlu0 %3515 }
0x1baa   :  { %v3458_v54 = vmax.f32 %v3457_v3, %v3451_v19  ;;  %v3518_v44 = vmax.f32 %v5318_v38, %v3516_v33 }
0x1bac   :  { %v3459_v53 = vmax.f32 %v3458_v54, %v3452_v7  ;;  %v3522_v14 = vmax.f32 %v3518_v44, %v3520_v41 }
0x1bae   :  { %v3526_v23 = vmax.f32 %v3522_v14, %v3524_v39 }
0x1bda   :  { %v3439_v4 = vpop.xlane.xlu0 %3438 }
0x1bdb   :  { %v3453_v1 = vadd.f32 %v3447_v15, %v3439_v4 }
0x1bdd   :  { %v3460_v36 = vmax.f32 %v3459_v53, %v3453_v1 }
0x1bde   :  { %v3528_v48 = vpop.permute.xlu0 %3527 }
0x1bdf   :  { %v3461_v9 = vmax.f32 %v3460_v36, %v3454_v17  ;;  %v3530_v34 = vmax.f32 %v3526_v23, %v3528_v48 }
0x1be2   :  { %v3536_v13 = vpop.permute.xlu0 %3535 }
0x1be6   :  { %v3540_v55 = vpop.permute.xlu0 %3539 }
0x1c12   :  { %v3445_v10 = vpop.xlane.xlu1 %3444 }
0x1c13   :  { %v3455_v25 = vadd.f32 %v3447_v15, %v3445_v10 }
0x1c15   :  { %v3462_v18 = vmax.f32 %v3461_v9, %v3455_v25 }
0x1c16   :  { %v3532_v45 = vpop.permute.xlu1 %3531 }
0x1c17   :  { %v3463_v59 = vsub.f32 %v3448_v61, %v3462_v18  ;;  %v3469_v62 = vsub.f32 %v3449_v0, %v3462_v18  ;;  %v3475_v16 = vsub.f32 %v3450_v20, %v3462_v18  ;;  %v3481_v5 = vsub.f32 %v3451_v19, %v3462_v18 }
0x1c18   :  { %v3487_v22 = vsub.f32 %v3452_v7, %v3462_v18  ;;  %v3493_v8 = vsub.f32 %v3453_v1, %v3462_v18  ;;  %v3505_v47 = vsub.f32 %v3455_v25, %v3462_v18  ;;  %v3534_v6 = vmax.f32 %v3530_v34, %v3532_v45 }
0x1c19   :  { %v3464_v38 = vmul.f32 1.442695, %v3463_v59  ;;  %v3470_v2 = vmul.f32 1.442695, %v3469_v62  ;;  %v3476_v26 = vmul.f32 1.442695, %v3475_v16  ;;  %v3499_v15 = vsub.f32 %v3454_v17, %v3462_v18 }
0x1c1a   :  { %v3482_v51 = vmul.f32 1.442695, %v3481_v5  ;;  %v3538_v37 = vmax.f32 %v3534_v6, %v3536_v13  ;;  %v3488_v57 = vmul.f32 1.442695, %v3487_v22  ;;  %v3494_v58 = vmul.f32 1.442695, %v3493_v8 }
0x1c1b   :  { %4131 = vpow2.f32 %v3464_v38  ;;  %v3500_v61 = vmul.f32 1.442695, %v3499_v15  ;;  %v3506_v0 = vmul.f32 1.442695, %v3505_v47 }
0x1c1c   :  { %4133 = vpow2.f32 %v3470_v2  ;;  %v3542_v56 = vmax.f32 %v3538_v37, %v3540_v55 }
0x1c1d   :  { %4135 = vpow2.f32 %v3476_v26 }
0x1c1e   :  { %4137 = vpow2.f32 %v3482_v51  ;;  %3544 = vrot.lane.b32.xlu0 %v3542_v56, %s4203_s18 }
0x1c1f   :  { %4139 = vpow2.f32 %v3488_v57 }
0x1c20   :  { %4141 = vpow2.f32 %v3494_v58 }
0x1c21   :  { %4143 = vpow2.f32 %v3500_v61 }
0x1c22   :  { %4145 = vpow2.f32 %v3506_v0 }
0x1c28   :  { %v4132_v43 = vpop.eup %4131 }
0x1c29   :  { %v4134_v31 = vpop.eup %4133  ;;  %v3467_v24 = vmul.f32 %v4132_v43, %v5295_v21 }
0x1c2a   :  { %v4136_v30 = vpop.eup %4135  ;;  %v3472_v49 = vadd.f32 %v4134_v31, %v4132_v43  ;;  %v3473_v40 = vmul.f32 %v4134_v31, %v5305_v11 }
0x1c2b   :  { %v4138_v29 = vpop.eup %4137  ;;  %v3479_v27 = vmul.f32 %v4136_v30, %v5328_v52 }
0x1c2c   :  { %v3478_v28 = vadd.f32 %v4136_v30, %v3472_v49  ;;  %v3474_v42 = vadd.f32 %v3473_v40, %v3467_v24  ;;  %v4140_v20 = vpop.eup %4139  ;;  %v3485_v3 = vmul.f32 %v4138_v29, %v5293_v60 }
0x1c2d   :  { %v4142_v7 = vpop.eup %4141  ;;  %v3491_v33 = vmul.f32 %v4140_v20, %v5302_v50 }
0x1c2e   :  { %v3484_v46 = vadd.f32 %v4138_v29, %v3478_v28  ;;  %v3480_v19 = vadd.f32 %v3479_v27, %v3474_v42  ;;  %v4144_v21 = vpop.eup %4143  ;;  %v3497_v11 = vmul.f32 %v4142_v7, %v5336_v12 }
0x1c2f   :  { %v4146_v36 = vpop.eup %4145  ;;  %v3503_v52 = vmul.f32 %v4144_v21, %v5322_v32 }
0x1c30   :  { %v3490_v54 = vadd.f32 %v4140_v20, %v3484_v46  ;;  %v3486_v53 = vadd.f32 %v3485_v3, %v3480_v19  ;;  %v3509_v14 = vmul.f32 %v4146_v36, %v5344_v35 }
0x1c32   :  { %v3496_v4 = vadd.f32 %v4142_v7, %v3490_v54  ;;  %v3492_v1 = vadd.f32 %v3491_v33, %v3486_v53 }
0x1c34   :  { %v3502_v41 = vadd.f32 %v4144_v21, %v3496_v4  ;;  %v3498_v39 = vadd.f32 %v3497_v11, %v3492_v1 }
0x1c36   :  { %v3508_v44 = vadd.f32 %v4146_v36, %v3502_v41  ;;  %v3504_v63 = vadd.f32 %v3503_v52, %v3498_v39 }
0x1c38   :  { %4147 = vrcp.f32 %v3508_v44  ;;  %v3510_v60 = vadd.f32 %v3509_v14, %v3504_v63 }
0x1c45   :  { %v4148_v48 = vpop.eup %4147 }
0x1c46   :  { %v3512_v17 = vmul.f32 %v4148_v48, %v3510_v60 }
0x1c90   :  { %v3545_v50 = vpop.permute.xlu0 %3544 }
0x1c91   :  { %v3547_v10 = vsel %vm275_vm0, %v3512_v17, %v3545_v50 }
0x1c92   :  { %3549 = vst.msk [vmem:[%s5369_s6] sm:$0xff] %vm3548_vm4, %v3547_v10 }
0x1c93   :  { %3554 = vsyncpa [#allocation6], 1 }
0x1c94   :  { %3555 = vsyncpa [#allocation8], 1 }

</bundles_post_ra>
